<compile_context>
chip_gen: v7x
topology: tpu7x:2x2x1
jax: 0.10.0
libtpu: 0.0.40
codegen_flags: <defaults>
</compile_context>

<pallas_src>
import functools

import jax
import jax.numpy as jnp
from jax import lax
from jax.experimental import pallas as pl
from jax.experimental.pallas import tpu as pltpu


H = 100          # LSTM hidden size (fixed by the module)
HP = 128         # padded hidden size (lane aligned)
BN_EPS = 1e-5


def _round_up(x, m):
    return (x + m - 1) // m * m


def _lstm_onehot_kernel(T, B, idx_ref, wih_ref, whh_ref, gamma_ref,
                        beta_ref, wout_ref, bout_ref, o_ref, xproj_ref):
    """Full forward pass for one batch of prefixes.

    Static (closure): T sequence length, B true batch size (BP = padded batch).
    idx_ref:   (T * BP,) int32, SMEM    activity index per (t, b); pads -> C
    wih_ref:   (C_rows, 1, 4*HP) f32    input->gate rows with LSTM bias folded
                                        in (gate order i,f,g,o); row C is the
                                        bias-only "pad" row
    whh_ref:   (HP, 4*HP)  bf16         hidden->gate weights
    gamma/beta:(1, HP)     f32          BatchNorm affine params (zero padded)
    wout_ref:  (HP, CP)    f32          output projection (zero-padded rows/cols)
    bout_ref:  (1, CP)     f32          output bias (zero padded)
    o_ref:     (BP, CP)    f32          logits (padded; wrapper slices [:B, :C])
    xproj_ref: (T, BP, 4*HP) f32        scratch: gathered input projections
    """
    BP = xproj_ref.shape[1]

    # ---- Phase 1: input projection via one-hot row gather (off the serial
    # path).  Bias is already folded into every W_ih row, so this is a pure
    # row copy; phantom sublane-padding rows gather the bias-only pad row.
    for t in range(T):
        for b in range(BP):
            xproj_ref[t, b:b + 1, :] = wih_ref[idx_ref[t * BP + b]]

    # ---- Phase 2: recurrence, fully unrolled (T is small & static); state and
    # BatchNorm statistics live in vregs, only h @ W_hh hits the MXU per step.
    h = jnp.zeros((BP, HP), jnp.float32)
    c = jnp.zeros((BP, HP), jnp.float32)
    s = jnp.zeros((1, HP), jnp.float32)      # sum over (b, t) of h
    ss = jnp.zeros((1, HP), jnp.float32)     # sum over (b, t) of h^2
    for t in range(T):
        gates = xproj_ref[t] + jnp.dot(h.astype(jnp.bfloat16), whh_ref[...],
                                       preferred_element_type=jnp.float32)
        i_g = jax.nn.sigmoid(gates[:, 0 * HP:1 * HP])
        f_g = jax.nn.sigmoid(gates[:, 1 * HP:2 * HP])
        g_g = jnp.tanh(gates[:, 2 * HP:3 * HP])
        o_g = jax.nn.sigmoid(gates[:, 3 * HP:4 * HP])
        c = f_g * c + i_g * g_g
        h = o_g * jnp.tanh(c)
        hb = h[:B]                           # only real batch rows feed BN stats
        s = s + jnp.sum(hb, axis=0, keepdims=True)
        ss = ss + jnp.sum(hb * hb, axis=0, keepdims=True)

    # ---- Phase 3: BatchNorm1d (train mode, biased batch stats over (B, T)),
    # then the output projection.  Padded channels have gamma = beta = 0.
    n = jnp.float32(B * T)
    mean = s / n                                              # (1, HP)
    var = jnp.maximum(ss / n - mean * mean, 0.0)              # clamp cancellation
    y = (h - mean) * lax.rsqrt(var + BN_EPS) * gamma_ref[...] + beta_ref[...]
    o_ref[...] = (jnp.dot(y, wout_ref[...], preferred_element_type=jnp.float32)
                  + bout_ref[...])


def lstm_onehot_forward(prefixes, params):
    """prefixes: (B, T, C) float32 one-hot prefixes (batch_first, PyTorch layout)."""
    (w_ih, w_hh, b_ih, b_hh, gamma, beta, w_out, b_out) = params
    B, T, C = prefixes.shape
    BP = _round_up(max(B, 8), 8)            # sublane-padded batch
    CP = _round_up(max(C, 128), 128)        # lane-dense output vocabulary
    C_rows = C + 1                          # +1 bias-only row for pad rows

    # --- one-hot -> integer indices (plain-JAX layout plumbing).  A real
    # caller can pass indices directly and never materialize the one-hot.
    x = prefixes.astype(jnp.float32)
    idx = jnp.argmax(x, axis=-1).astype(jnp.int32)            # (B, T)
    is_pad = jnp.sum(x, axis=-1) == 0.0                       # all-zero rows
    idx = jnp.where(is_pad, jnp.int32(C), idx)                # pad -> row C
    idx = jnp.pad(idx, ((0, BP - B), (0, 0)), constant_values=C)   # phantom rows
    idx_flat = jnp.transpose(idx, (1, 0)).reshape(T * BP)     # time-major, flat

    # --- parameter packing / padding (gate order i, f, g, o; H -> HP pad) ----
    def pack_gate_cols(w):                  # (4H, K) -> (K, 4*HP)
        parts = []
        for k in range(4):
            wk = w[k * H:(k + 1) * H, :].T                    # (K, H)
            parts.append(jnp.pad(wk, ((0, 0), (0, HP - H))))
        return jnp.concatenate(parts, axis=1)

    b_packed = jnp.concatenate(
        [jnp.pad((b_ih + b_hh)[k * H:(k + 1) * H], (0, HP - H)) for k in range(4)]
    )                                                         # (4*HP,)
    wih_p = pack_gate_cols(w_ih)                              # (C, 4*HP)
    wih_p = jnp.pad(wih_p, ((0, C_rows - C), (0, 0)))         # zero pad row C
    wih_p = wih_p + b_packed[None, :]                         # fold bias into rows
    wih_p = wih_p[:, None, :]                                 # (C_rows, 1, 4*HP)
    whh_p = jnp.pad(pack_gate_cols(w_hh), ((0, HP - H), (0, 0)))
    whh_p = whh_p.astype(jnp.bfloat16)                        # (HP, 4*HP) bf16
    gamma_p = jnp.pad(gamma, (0, HP - H))[None, :]            # (1, HP)
    beta_p = jnp.pad(beta, (0, HP - H))[None, :]              # (1, HP)
    wout_p = jnp.pad(w_out.T, ((0, HP - H), (0, CP - C)))     # (HP, CP)
    bout_p = jnp.pad(b_out, (0, CP - C))[None, :]             # (1, CP)

    kernel = functools.partial(_lstm_onehot_kernel, T, B)
    vmem = pl.BlockSpec(memory_space=pltpu.MemorySpace.VMEM)
    smem = pl.BlockSpec(memory_space=pltpu.MemorySpace.SMEM)
    out = pl.pallas_call(
        kernel,
        out_shape=jax.ShapeDtypeStruct((BP, CP), jnp.float32),
        in_specs=[smem, vmem, vmem, vmem, vmem, vmem, vmem],
        out_specs=vmem,
        scratch_shapes=[pltpu.VMEM((T, BP, 4 * HP), jnp.float32)],
    )(idx_flat, wih_p, whh_p, gamma_p, beta_p, wout_p, bout_p)
    return out[:B, :C]


def reference_forward(prefixes, params, match_kernel_precision=True):
    """Pure-JAX replica of the PyTorch forward.

    With match_kernel_precision=True the recurrent weights / h operand are
    rounded to bf16 (exactly what the kernel feeds the MXU), so the comparison
    only measures implementation error.  With False it is the exact f32
    PyTorch numerics (differs from the kernel by O(1e-3) from bf16 W_hh).
    """
    (w_ih, w_hh, b_ih, b_hh, gamma, beta, w_out, b_out) = params
    Bsz, T, C = prefixes.shape
    x = prefixes.astype(jnp.float32)
    w_hh_eff = (w_hh.astype(jnp.bfloat16).astype(jnp.float32)
                if match_kernel_precision else w_hh)
    h = jnp.zeros((Bsz, H), jnp.float32)
    c = jnp.zeros((Bsz, H), jnp.float32)
    hs = []
    for t in range(T):
        h_in = (h.astype(jnp.bfloat16).astype(jnp.float32)
                if match_kernel_precision else h)
        gates = (jnp.dot(x[:, t, :], w_ih.T, precision=lax.Precision.HIGHEST)
                 + jnp.dot(h_in, w_hh_eff.T, precision=lax.Precision.HIGHEST)
                 + b_ih + b_hh)
        i = jax.nn.sigmoid(gates[:, :H])
        f = jax.nn.sigmoid(gates[:, H:2 * H])
        g = jnp.tanh(gates[:, 2 * H:3 * H])
        o = jax.nn.sigmoid(gates[:, 3 * H:])
        c = f * c + i * g
        h = o * jnp.tanh(c)
        hs.append(h)
    hs = jnp.stack(hs, axis=1)                                # (B, T, H)
    n = jnp.float32(Bsz * T)
    mean = jnp.sum(hs, axis=(0, 1)) / n
    var = jnp.maximum(jnp.sum(hs * hs, axis=(0, 1)) / n - mean * mean, 0.0)
    y = (hs[:, -1, :] - mean) * lax.rsqrt(var + BN_EPS) * gamma + beta
    return jnp.dot(y, w_out.T, precision=lax.Precision.HIGHEST) + b_out


def init_params(key, num_categories):
    """Deterministic synthetic init mimicking the module's parameter shapes."""
    k = 1.0 / jnp.sqrt(jnp.float32(H))
    keys = jax.random.split(key, 6)
    w_ih = jax.random.uniform(keys[0], (4 * H, num_categories), jnp.float32, -k, k)
    w_hh = jax.random.uniform(keys[1], (4 * H, H), jnp.float32, -k, k)
    b_ih = jax.random.uniform(keys[2], (4 * H,), jnp.float32, -k, k)
    b_hh = jax.random.uniform(keys[3], (4 * H,), jnp.float32, -k, k)
    gamma = jnp.ones((H,), jnp.float32)                       # BatchNorm weight
    beta = jnp.zeros((H,), jnp.float32)                       # BatchNorm bias
    kl = 1.0 / jnp.sqrt(jnp.float32(H))
    w_out = jax.random.uniform(keys[4], (num_categories, H), jnp.float32, -kl, kl)
    b_out = jax.random.uniform(keys[5], (num_categories,), jnp.float32, -kl, kl)
    return (w_ih, w_hh, b_ih, b_hh, gamma, beta, w_out, b_out)


if __name__ == "__main__":
    B, T, C = 2, 8, 16      # batch, prefix length, num_categories (one-hot size)

    key = jax.random.PRNGKey(0)
    k_act, k_param = jax.random.split(key)

    # deterministic one-hot prefixes; zero out the tail of sequence 1 to mimic
    # pad_sequence padding (all-zero one-hot rows).
    acts = jax.random.randint(k_act, (B, T), 0, C)
    prefixes = jax.nn.one_hot(acts, C, dtype=jnp.float32)     # (B, T, C)
    prefixes = prefixes.at[1, T - 2:, :].set(0.0)

    params = init_params(k_param, C)

    out = jax.block_until_ready(lstm_onehot_forward(prefixes, params))

    ref = jax.block_until_ready(reference_forward(prefixes, params))
    assert out.shape == (B, C)
    assert jnp.allclose(out, ref, atol=1e-3, rtol=1e-3), (
        float(jnp.max(jnp.abs(out - ref))), out, ref)

    print("KERNEL_OK")
</pallas_src>

<mosaic_0001>
module attributes {stable_mosaic.version = 11 : i64} {
  func.func @_lstm_onehot_kernel(%arg0: memref<64xi32, #tpu.memory_space<smem>>, %arg1: memref<17x1x512xf32, #tpu.memory_space<vmem>>, %arg2: memref<128x512xbf16, #tpu.memory_space<vmem>>, %arg3: memref<1x128xf32, #tpu.memory_space<vmem>>, %arg4: memref<1x128xf32, #tpu.memory_space<vmem>>, %arg5: memref<128x128xf32, #tpu.memory_space<vmem>>, %arg6: memref<1x128xf32, #tpu.memory_space<vmem>>, %arg7: memref<8x128xf32, #tpu.memory_space<vmem>>, %arg8: memref<8x8x512xf32, #tpu.memory_space<vmem>>) attributes {dimension_semantics = [], scalar_prefetch = 0 : i64, scratch_operands = 1 : i64, tpu.core_type = #tpu.core_type<tc>} {
    %c0 = arith.constant 0 : index
    %0 = memref.load %arg0[%c0] : memref<64xi32, #tpu.memory_space<smem>>
    %1 = arith.index_cast %0 : i32 to index
    %c0_0 = arith.constant 0 : index
    %c0_1 = arith.constant 0 : index
    %2 = vector.load %arg1[%1, %c0_0, %c0_1] : memref<17x1x512xf32, #tpu.memory_space<vmem>>, vector<1x1x512xf32>
    %3 = vector.shape_cast %2 : vector<1x1x512xf32> to vector<1x512xf32>
    %c0_2 = arith.constant 0 : index
    %c0_3 = arith.constant 0 : index
    %c0_4 = arith.constant 0 : index
    %4 = vector.load %arg8[%c0_2, %c0_3, %c0_4] : memref<8x8x512xf32, #tpu.memory_space<vmem>>, vector<1x1x512xf32>
    %5 = vector.shape_cast %4 : vector<1x1x512xf32> to vector<1x512xf32>
    %6 = vector.shape_cast %3 : vector<1x512xf32> to vector<1x1x512xf32>
    tpu.vector_store %arg8[%c0_2, %c0_3, %c0_4], %6 {strides = array<i32>} : memref<8x8x512xf32, #tpu.memory_space<vmem>>, vector<1x1x512xf32>,
    %c1 = arith.constant 1 : index
    %7 = memref.load %arg0[%c1] : memref<64xi32, #tpu.memory_space<smem>>
    %8 = arith.index_cast %7 : i32 to index
    %c0_5 = arith.constant 0 : index
    %c0_6 = arith.constant 0 : index
    %9 = vector.load %arg1[%8, %c0_5, %c0_6] : memref<17x1x512xf32, #tpu.memory_space<vmem>>, vector<1x1x512xf32>
    %10 = vector.shape_cast %9 : vector<1x1x512xf32> to vector<1x512xf32>
    %c0_7 = arith.constant 0 : index
    %c1_8 = arith.constant 1 : index
    %c0_9 = arith.constant 0 : index
    %11 = vector.load %arg8[%c0_7, %c1_8, %c0_9] : memref<8x8x512xf32, #tpu.memory_space<vmem>>, vector<1x1x512xf32>
    %12 = vector.shape_cast %11 : vector<1x1x512xf32> to vector<1x512xf32>
    %13 = vector.shape_cast %10 : vector<1x512xf32> to vector<1x1x512xf32>
    tpu.vector_store %arg8[%c0_7, %c1_8, %c0_9], %13 {strides = array<i32>} : memref<8x8x512xf32, #tpu.memory_space<vmem>>, vector<1x1x512xf32>,
    %c2 = arith.constant 2 : index
    %14 = memref.load %arg0[%c2] : memref<64xi32, #tpu.memory_space<smem>>
    %15 = arith.index_cast %14 : i32 to index
    %c0_10 = arith.constant 0 : index
    %c0_11 = arith.constant 0 : index
    %16 = vector.load %arg1[%15, %c0_10, %c0_11] : memref<17x1x512xf32, #tpu.memory_space<vmem>>, vector<1x1x512xf32>
    %17 = vector.shape_cast %16 : vector<1x1x512xf32> to vector<1x512xf32>
    %c0_12 = arith.constant 0 : index
    %c2_13 = arith.constant 2 : index
    %c0_14 = arith.constant 0 : index
    %18 = vector.load %arg8[%c0_12, %c2_13, %c0_14] : memref<8x8x512xf32, #tpu.memory_space<vmem>>, vector<1x1x512xf32>
    %19 = vector.shape_cast %18 : vector<1x1x512xf32> to vector<1x512xf32>
    %20 = vector.shape_cast %17 : vector<1x512xf32> to vector<1x1x512xf32>
    tpu.vector_store %arg8[%c0_12, %c2_13, %c0_14], %20 {strides = array<i32>} : memref<8x8x512xf32, #tpu.memory_space<vmem>>, vector<1x1x512xf32>,
    %c3 = arith.constant 3 : index
    %21 = memref.load %arg0[%c3] : memref<64xi32, #tpu.memory_space<smem>>
    %22 = arith.index_cast %21 : i32 to index
    %c0_15 = arith.constant 0 : index
    %c0_16 = arith.constant 0 : index
    %23 = vector.load %arg1[%22, %c0_15, %c0_16] : memref<17x1x512xf32, #tpu.memory_space<vmem>>, vector<1x1x512xf32>
    %24 = vector.shape_cast %23 : vector<1x1x512xf32> to vector<1x512xf32>
    %c0_17 = arith.constant 0 : index
    %c3_18 = arith.constant 3 : index
    %c0_19 = arith.constant 0 : index
    %25 = vector.load %arg8[%c0_17, %c3_18, %c0_19] : memref<8x8x512xf32, #tpu.memory_space<vmem>>, vector<1x1x512xf32>
    %26 = vector.shape_cast %25 : vector<1x1x512xf32> to vector<1x512xf32>
    %27 = vector.shape_cast %24 : vector<1x512xf32> to vector<1x1x512xf32>
    tpu.vector_store %arg8[%c0_17, %c3_18, %c0_19], %27 {strides = array<i32>} : memref<8x8x512xf32, #tpu.memory_space<vmem>>, vector<1x1x512xf32>,
    %c4 = arith.constant 4 : index
    %28 = memref.load %arg0[%c4] : memref<64xi32, #tpu.memory_space<smem>>
    %29 = arith.index_cast %28 : i32 to index
    %c0_20 = arith.constant 0 : index
    %c0_21 = arith.constant 0 : index
    %30 = vector.load %arg1[%29, %c0_20, %c0_21] : memref<17x1x512xf32, #tpu.memory_space<vmem>>, vector<1x1x512xf32>
    %31 = vector.shape_cast %30 : vector<1x1x512xf32> to vector<1x512xf32>
    %c0_22 = arith.constant 0 : index
    %c4_23 = arith.constant 4 : index
    %c0_24 = arith.constant 0 : index
    %32 = vector.load %arg8[%c0_22, %c4_23, %c0_24] : memref<8x8x512xf32, #tpu.memory_space<vmem>>, vector<1x1x512xf32>
    %33 = vector.shape_cast %32 : vector<1x1x512xf32> to vector<1x512xf32>
    %34 = vector.shape_cast %31 : vector<1x512xf32> to vector<1x1x512xf32>
    tpu.vector_store %arg8[%c0_22, %c4_23, %c0_24], %34 {strides = array<i32>} : memref<8x8x512xf32, #tpu.memory_space<vmem>>, vector<1x1x512xf32>,
    %c5 = arith.constant 5 : index
    %35 = memref.load %arg0[%c5] : memref<64xi32, #tpu.memory_space<smem>>
    %36 = arith.index_cast %35 : i32 to index
    %c0_25 = arith.constant 0 : index
    %c0_26 = arith.constant 0 : index
    %37 = vector.load %arg1[%36, %c0_25, %c0_26] : memref<17x1x512xf32, #tpu.memory_space<vmem>>, vector<1x1x512xf32>
    %38 = vector.shape_cast %37 : vector<1x1x512xf32> to vector<1x512xf32>
    %c0_27 = arith.constant 0 : index
    %c5_28 = arith.constant 5 : index
    %c0_29 = arith.constant 0 : index
    %39 = vector.load %arg8[%c0_27, %c5_28, %c0_29] : memref<8x8x512xf32, #tpu.memory_space<vmem>>, vector<1x1x512xf32>
    %40 = vector.shape_cast %39 : vector<1x1x512xf32> to vector<1x512xf32>
    %41 = vector.shape_cast %38 : vector<1x512xf32> to vector<1x1x512xf32>
    tpu.vector_store %arg8[%c0_27, %c5_28, %c0_29], %41 {strides = array<i32>} : memref<8x8x512xf32, #tpu.memory_space<vmem>>, vector<1x1x512xf32>,
    %c6 = arith.constant 6 : index
    %42 = memref.load %arg0[%c6] : memref<64xi32, #tpu.memory_space<smem>>
    %43 = arith.index_cast %42 : i32 to index
    %c0_30 = arith.constant 0 : index
    %c0_31 = arith.constant 0 : index
    %44 = vector.load %arg1[%43, %c0_30, %c0_31] : memref<17x1x512xf32, #tpu.memory_space<vmem>>, vector<1x1x512xf32>
    %45 = vector.shape_cast %44 : vector<1x1x512xf32> to vector<1x512xf32>
    %c0_32 = arith.constant 0 : index
    %c6_33 = arith.constant 6 : index
    %c0_34 = arith.constant 0 : index
    %46 = vector.load %arg8[%c0_32, %c6_33, %c0_34] : memref<8x8x512xf32, #tpu.memory_space<vmem>>, vector<1x1x512xf32>
    %47 = vector.shape_cast %46 : vector<1x1x512xf32> to vector<1x512xf32>
    %48 = vector.shape_cast %45 : vector<1x512xf32> to vector<1x1x512xf32>
    tpu.vector_store %arg8[%c0_32, %c6_33, %c0_34], %48 {strides = array<i32>} : memref<8x8x512xf32, #tpu.memory_space<vmem>>, vector<1x1x512xf32>,
    %c7 = arith.constant 7 : index
    %49 = memref.load %arg0[%c7] : memref<64xi32, #tpu.memory_space<smem>>
    %50 = arith.index_cast %49 : i32 to index
    %c0_35 = arith.constant 0 : index
    %c0_36 = arith.constant 0 : index
    %51 = vector.load %arg1[%50, %c0_35, %c0_36] : memref<17x1x512xf32, #tpu.memory_space<vmem>>, vector<1x1x512xf32>
    %52 = vector.shape_cast %51 : vector<1x1x512xf32> to vector<1x512xf32>
    %c0_37 = arith.constant 0 : index
    %c7_38 = arith.constant 7 : index
    %c0_39 = arith.constant 0 : index
    %53 = vector.load %arg8[%c0_37, %c7_38, %c0_39] : memref<8x8x512xf32, #tpu.memory_space<vmem>>, vector<1x1x512xf32>
    %54 = vector.shape_cast %53 : vector<1x1x512xf32> to vector<1x512xf32>
    %55 = vector.shape_cast %52 : vector<1x512xf32> to vector<1x1x512xf32>
    tpu.vector_store %arg8[%c0_37, %c7_38, %c0_39], %55 {strides = array<i32>} : memref<8x8x512xf32, #tpu.memory_space<vmem>>, vector<1x1x512xf32>,
    %c8 = arith.constant 8 : index
    %56 = memref.load %arg0[%c8] : memref<64xi32, #tpu.memory_space<smem>>
    %57 = arith.index_cast %56 : i32 to index
    %c0_40 = arith.constant 0 : index
    %c0_41 = arith.constant 0 : index
    %58 = vector.load %arg1[%57, %c0_40, %c0_41] : memref<17x1x512xf32, #tpu.memory_space<vmem>>, vector<1x1x512xf32>
    %59 = vector.shape_cast %58 : vector<1x1x512xf32> to vector<1x512xf32>
    %c1_42 = arith.constant 1 : index
    %c0_43 = arith.constant 0 : index
    %c0_44 = arith.constant 0 : index
    %60 = vector.load %arg8[%c1_42, %c0_43, %c0_44] : memref<8x8x512xf32, #tpu.memory_space<vmem>>, vector<1x1x512xf32>
    %61 = vector.shape_cast %60 : vector<1x1x512xf32> to vector<1x512xf32>
    %62 = vector.shape_cast %59 : vector<1x512xf32> to vector<1x1x512xf32>
    tpu.vector_store %arg8[%c1_42, %c0_43, %c0_44], %62 {strides = array<i32>} : memref<8x8x512xf32, #tpu.memory_space<vmem>>, vector<1x1x512xf32>,
    %c9 = arith.constant 9 : index
    %63 = memref.load %arg0[%c9] : memref<64xi32, #tpu.memory_space<smem>>
    %64 = arith.index_cast %63 : i32 to index
    %c0_45 = arith.constant 0 : index
    %c0_46 = arith.constant 0 : index
    %65 = vector.load %arg1[%64, %c0_45, %c0_46] : memref<17x1x512xf32, #tpu.memory_space<vmem>>, vector<1x1x512xf32>
    %66 = vector.shape_cast %65 : vector<1x1x512xf32> to vector<1x512xf32>
    %c1_47 = arith.constant 1 : index
    %c1_48 = arith.constant 1 : index
    %c0_49 = arith.constant 0 : index
    %67 = vector.load %arg8[%c1_47, %c1_48, %c0_49] : memref<8x8x512xf32, #tpu.memory_space<vmem>>, vector<1x1x512xf32>
    %68 = vector.shape_cast %67 : vector<1x1x512xf32> to vector<1x512xf32>
    %69 = vector.shape_cast %66 : vector<1x512xf32> to vector<1x1x512xf32>
    tpu.vector_store %arg8[%c1_47, %c1_48, %c0_49], %69 {strides = array<i32>} : memref<8x8x512xf32, #tpu.memory_space<vmem>>, vector<1x1x512xf32>,
    %c10 = arith.constant 10 : index
    %70 = memref.load %arg0[%c10] : memref<64xi32, #tpu.memory_space<smem>>
    %71 = arith.index_cast %70 : i32 to index
    %c0_50 = arith.constant 0 : index
    %c0_51 = arith.constant 0 : index
    %72 = vector.load %arg1[%71, %c0_50, %c0_51] : memref<17x1x512xf32, #tpu.memory_space<vmem>>, vector<1x1x512xf32>
    %73 = vector.shape_cast %72 : vector<1x1x512xf32> to vector<1x512xf32>
    %c1_52 = arith.constant 1 : index
    %c2_53 = arith.constant 2 : index
    %c0_54 = arith.constant 0 : index
    %74 = vector.load %arg8[%c1_52, %c2_53, %c0_54] : memref<8x8x512xf32, #tpu.memory_space<vmem>>, vector<1x1x512xf32>
    %75 = vector.shape_cast %74 : vector<1x1x512xf32> to vector<1x512xf32>
    %76 = vector.shape_cast %73 : vector<1x512xf32> to vector<1x1x512xf32>
    tpu.vector_store %arg8[%c1_52, %c2_53, %c0_54], %76 {strides = array<i32>} : memref<8x8x512xf32, #tpu.memory_space<vmem>>, vector<1x1x512xf32>,
    %c11 = arith.constant 11 : index
    %77 = memref.load %arg0[%c11] : memref<64xi32, #tpu.memory_space<smem>>
    %78 = arith.index_cast %77 : i32 to index
    %c0_55 = arith.constant 0 : index
    %c0_56 = arith.constant 0 : index
    %79 = vector.load %arg1[%78, %c0_55, %c0_56] : memref<17x1x512xf32, #tpu.memory_space<vmem>>, vector<1x1x512xf32>
    %80 = vector.shape_cast %79 : vector<1x1x512xf32> to vector<1x512xf32>
    %c1_57 = arith.constant 1 : index
    %c3_58 = arith.constant 3 : index
    %c0_59 = arith.constant 0 : index
    %81 = vector.load %arg8[%c1_57, %c3_58, %c0_59] : memref<8x8x512xf32, #tpu.memory_space<vmem>>, vector<1x1x512xf32>
    %82 = vector.shape_cast %81 : vector<1x1x512xf32> to vector<1x512xf32>
    %83 = vector.shape_cast %80 : vector<1x512xf32> to vector<1x1x512xf32>
    tpu.vector_store %arg8[%c1_57, %c3_58, %c0_59], %83 {strides = array<i32>} : memref<8x8x512xf32, #tpu.memory_space<vmem>>, vector<1x1x512xf32>,
    %c12 = arith.constant 12 : index
    %84 = memref.load %arg0[%c12] : memref<64xi32, #tpu.memory_space<smem>>
    %85 = arith.index_cast %84 : i32 to index
    %c0_60 = arith.constant 0 : index
    %c0_61 = arith.constant 0 : index
    %86 = vector.load %arg1[%85, %c0_60, %c0_61] : memref<17x1x512xf32, #tpu.memory_space<vmem>>, vector<1x1x512xf32>
    %87 = vector.shape_cast %86 : vector<1x1x512xf32> to vector<1x512xf32>
    %c1_62 = arith.constant 1 : index
    %c4_63 = arith.constant 4 : index
    %c0_64 = arith.constant 0 : index
    %88 = vector.load %arg8[%c1_62, %c4_63, %c0_64] : memref<8x8x512xf32, #tpu.memory_space<vmem>>, vector<1x1x512xf32>
    %89 = vector.shape_cast %88 : vector<1x1x512xf32> to vector<1x512xf32>
    %90 = vector.shape_cast %87 : vector<1x512xf32> to vector<1x1x512xf32>
    tpu.vector_store %arg8[%c1_62, %c4_63, %c0_64], %90 {strides = array<i32>} : memref<8x8x512xf32, #tpu.memory_space<vmem>>, vector<1x1x512xf32>,
    %c13 = arith.constant 13 : index
    %91 = memref.load %arg0[%c13] : memref<64xi32, #tpu.memory_space<smem>>
    %92 = arith.index_cast %91 : i32 to index
    %c0_65 = arith.constant 0 : index
    %c0_66 = arith.constant 0 : index
    %93 = vector.load %arg1[%92, %c0_65, %c0_66] : memref<17x1x512xf32, #tpu.memory_space<vmem>>, vector<1x1x512xf32>
    %94 = vector.shape_cast %93 : vector<1x1x512xf32> to vector<1x512xf32>
    %c1_67 = arith.constant 1 : index
    %c5_68 = arith.constant 5 : index
    %c0_69 = arith.constant 0 : index
    %95 = vector.load %arg8[%c1_67, %c5_68, %c0_69] : memref<8x8x512xf32, #tpu.memory_space<vmem>>, vector<1x1x512xf32>
    %96 = vector.shape_cast %95 : vector<1x1x512xf32> to vector<1x512xf32>
    %97 = vector.shape_cast %94 : vector<1x512xf32> to vector<1x1x512xf32>
    tpu.vector_store %arg8[%c1_67, %c5_68, %c0_69], %97 {strides = array<i32>} : memref<8x8x512xf32, #tpu.memory_space<vmem>>, vector<1x1x512xf32>,
    %c14 = arith.constant 14 : index
    %98 = memref.load %arg0[%c14] : memref<64xi32, #tpu.memory_space<smem>>
    %99 = arith.index_cast %98 : i32 to index
    %c0_70 = arith.constant 0 : index
    %c0_71 = arith.constant 0 : index
    %100 = vector.load %arg1[%99, %c0_70, %c0_71] : memref<17x1x512xf32, #tpu.memory_space<vmem>>, vector<1x1x512xf32>
    %101 = vector.shape_cast %100 : vector<1x1x512xf32> to vector<1x512xf32>
    %c1_72 = arith.constant 1 : index
    %c6_73 = arith.constant 6 : index
    %c0_74 = arith.constant 0 : index
    %102 = vector.load %arg8[%c1_72, %c6_73, %c0_74] : memref<8x8x512xf32, #tpu.memory_space<vmem>>, vector<1x1x512xf32>
    %103 = vector.shape_cast %102 : vector<1x1x512xf32> to vector<1x512xf32>
    %104 = vector.shape_cast %101 : vector<1x512xf32> to vector<1x1x512xf32>
    tpu.vector_store %arg8[%c1_72, %c6_73, %c0_74], %104 {strides = array<i32>} : memref<8x8x512xf32, #tpu.memory_space<vmem>>, vector<1x1x512xf32>,
    %c15 = arith.constant 15 : index
    %105 = memref.load %arg0[%c15] : memref<64xi32, #tpu.memory_space<smem>>
    %106 = arith.index_cast %105 : i32 to index
    %c0_75 = arith.constant 0 : index
    %c0_76 = arith.constant 0 : index
    %107 = vector.load %arg1[%106, %c0_75, %c0_76] : memref<17x1x512xf32, #tpu.memory_space<vmem>>, vector<1x1x512xf32>
    %108 = vector.shape_cast %107 : vector<1x1x512xf32> to vector<1x512xf32>
    %c1_77 = arith.constant 1 : index
    %c7_78 = arith.constant 7 : index
    %c0_79 = arith.constant 0 : index
    %109 = vector.load %arg8[%c1_77, %c7_78, %c0_79] : memref<8x8x512xf32, #tpu.memory_space<vmem>>, vector<1x1x512xf32>
    %110 = vector.shape_cast %109 : vector<1x1x512xf32> to vector<1x512xf32>
    %111 = vector.shape_cast %108 : vector<1x512xf32> to vector<1x1x512xf32>
    tpu.vector_store %arg8[%c1_77, %c7_78, %c0_79], %111 {strides = array<i32>} : memref<8x8x512xf32, #tpu.memory_space<vmem>>, vector<1x1x512xf32>,
    %c16 = arith.constant 16 : index
    %112 = memref.load %arg0[%c16] : memref<64xi32, #tpu.memory_space<smem>>
    %113 = arith.index_cast %112 : i32 to index
    %c0_80 = arith.constant 0 : index
    %c0_81 = arith.constant 0 : index
    %114 = vector.load %arg1[%113, %c0_80, %c0_81] : memref<17x1x512xf32, #tpu.memory_space<vmem>>, vector<1x1x512xf32>
    %115 = vector.shape_cast %114 : vector<1x1x512xf32> to vector<1x512xf32>
    %c2_82 = arith.constant 2 : index
    %c0_83 = arith.constant 0 : index
    %c0_84 = arith.constant 0 : index
    %116 = vector.load %arg8[%c2_82, %c0_83, %c0_84] : memref<8x8x512xf32, #tpu.memory_space<vmem>>, vector<1x1x512xf32>
    %117 = vector.shape_cast %116 : vector<1x1x512xf32> to vector<1x512xf32>
    %118 = vector.shape_cast %115 : vector<1x512xf32> to vector<1x1x512xf32>
    tpu.vector_store %arg8[%c2_82, %c0_83, %c0_84], %118 {strides = array<i32>} : memref<8x8x512xf32, #tpu.memory_space<vmem>>, vector<1x1x512xf32>,
    %c17 = arith.constant 17 : index
    %119 = memref.load %arg0[%c17] : memref<64xi32, #tpu.memory_space<smem>>
    %120 = arith.index_cast %119 : i32 to index
    %c0_85 = arith.constant 0 : index
    %c0_86 = arith.constant 0 : index
    %121 = vector.load %arg1[%120, %c0_85, %c0_86] : memref<17x1x512xf32, #tpu.memory_space<vmem>>, vector<1x1x512xf32>
    %122 = vector.shape_cast %121 : vector<1x1x512xf32> to vector<1x512xf32>
    %c2_87 = arith.constant 2 : index
    %c1_88 = arith.constant 1 : index
    %c0_89 = arith.constant 0 : index
    %123 = vector.load %arg8[%c2_87, %c1_88, %c0_89] : memref<8x8x512xf32, #tpu.memory_space<vmem>>, vector<1x1x512xf32>
    %124 = vector.shape_cast %123 : vector<1x1x512xf32> to vector<1x512xf32>
    %125 = vector.shape_cast %122 : vector<1x512xf32> to vector<1x1x512xf32>
    tpu.vector_store %arg8[%c2_87, %c1_88, %c0_89], %125 {strides = array<i32>} : memref<8x8x512xf32, #tpu.memory_space<vmem>>, vector<1x1x512xf32>,
    %c18 = arith.constant 18 : index
    %126 = memref.load %arg0[%c18] : memref<64xi32, #tpu.memory_space<smem>>
    %127 = arith.index_cast %126 : i32 to index
    %c0_90 = arith.constant 0 : index
    %c0_91 = arith.constant 0 : index
    %128 = vector.load %arg1[%127, %c0_90, %c0_91] : memref<17x1x512xf32, #tpu.memory_space<vmem>>, vector<1x1x512xf32>
    %129 = vector.shape_cast %128 : vector<1x1x512xf32> to vector<1x512xf32>
    %c2_92 = arith.constant 2 : index
    %c2_93 = arith.constant 2 : index
    %c0_94 = arith.constant 0 : index
    %130 = vector.load %arg8[%c2_92, %c2_93, %c0_94] : memref<8x8x512xf32, #tpu.memory_space<vmem>>, vector<1x1x512xf32>
    %131 = vector.shape_cast %130 : vector<1x1x512xf32> to vector<1x512xf32>
    %132 = vector.shape_cast %129 : vector<1x512xf32> to vector<1x1x512xf32>
    tpu.vector_store %arg8[%c2_92, %c2_93, %c0_94], %132 {strides = array<i32>} : memref<8x8x512xf32, #tpu.memory_space<vmem>>, vector<1x1x512xf32>,
    %c19 = arith.constant 19 : index
    %133 = memref.load %arg0[%c19] : memref<64xi32, #tpu.memory_space<smem>>
    %134 = arith.index_cast %133 : i32 to index
    %c0_95 = arith.constant 0 : index
    %c0_96 = arith.constant 0 : index
    %135 = vector.load %arg1[%134, %c0_95, %c0_96] : memref<17x1x512xf32, #tpu.memory_space<vmem>>, vector<1x1x512xf32>
    %136 = vector.shape_cast %135 : vector<1x1x512xf32> to vector<1x512xf32>
    %c2_97 = arith.constant 2 : index
    %c3_98 = arith.constant 3 : index
    %c0_99 = arith.constant 0 : index
    %137 = vector.load %arg8[%c2_97, %c3_98, %c0_99] : memref<8x8x512xf32, #tpu.memory_space<vmem>>, vector<1x1x512xf32>
    %138 = vector.shape_cast %137 : vector<1x1x512xf32> to vector<1x512xf32>
    %139 = vector.shape_cast %136 : vector<1x512xf32> to vector<1x1x512xf32>
    tpu.vector_store %arg8[%c2_97, %c3_98, %c0_99], %139 {strides = array<i32>} : memref<8x8x512xf32, #tpu.memory_space<vmem>>, vector<1x1x512xf32>,
    %c20 = arith.constant 20 : index
    %140 = memref.load %arg0[%c20] : memref<64xi32, #tpu.memory_space<smem>>
    %141 = arith.index_cast %140 : i32 to index
    %c0_100 = arith.constant 0 : index
    %c0_101 = arith.constant 0 : index
    %142 = vector.load %arg1[%141, %c0_100, %c0_101] : memref<17x1x512xf32, #tpu.memory_space<vmem>>, vector<1x1x512xf32>
    %143 = vector.shape_cast %142 : vector<1x1x512xf32> to vector<1x512xf32>
    %c2_102 = arith.constant 2 : index
    %c4_103 = arith.constant 4 : index
    %c0_104 = arith.constant 0 : index
    %144 = vector.load %arg8[%c2_102, %c4_103, %c0_104] : memref<8x8x512xf32, #tpu.memory_space<vmem>>, vector<1x1x512xf32>
    %145 = vector.shape_cast %144 : vector<1x1x512xf32> to vector<1x512xf32>
    %146 = vector.shape_cast %143 : vector<1x512xf32> to vector<1x1x512xf32>
    tpu.vector_store %arg8[%c2_102, %c4_103, %c0_104], %146 {strides = array<i32>} : memref<8x8x512xf32, #tpu.memory_space<vmem>>, vector<1x1x512xf32>,
    %c21 = arith.constant 21 : index
    %147 = memref.load %arg0[%c21] : memref<64xi32, #tpu.memory_space<smem>>
    %148 = arith.index_cast %147 : i32 to index
    %c0_105 = arith.constant 0 : index
    %c0_106 = arith.constant 0 : index
    %149 = vector.load %arg1[%148, %c0_105, %c0_106] : memref<17x1x512xf32, #tpu.memory_space<vmem>>, vector<1x1x512xf32>
    %150 = vector.shape_cast %149 : vector<1x1x512xf32> to vector<1x512xf32>
    %c2_107 = arith.constant 2 : index
    %c5_108 = arith.constant 5 : index
    %c0_109 = arith.constant 0 : index
    %151 = vector.load %arg8[%c2_107, %c5_108, %c0_109] : memref<8x8x512xf32, #tpu.memory_space<vmem>>, vector<1x1x512xf32>
    %152 = vector.shape_cast %151 : vector<1x1x512xf32> to vector<1x512xf32>
    %153 = vector.shape_cast %150 : vector<1x512xf32> to vector<1x1x512xf32>
    tpu.vector_store %arg8[%c2_107, %c5_108, %c0_109], %153 {strides = array<i32>} : memref<8x8x512xf32, #tpu.memory_space<vmem>>, vector<1x1x512xf32>,
    %c22 = arith.constant 22 : index
    %154 = memref.load %arg0[%c22] : memref<64xi32, #tpu.memory_space<smem>>
    %155 = arith.index_cast %154 : i32 to index
    %c0_110 = arith.constant 0 : index
    %c0_111 = arith.constant 0 : index
    %156 = vector.load %arg1[%155, %c0_110, %c0_111] : memref<17x1x512xf32, #tpu.memory_space<vmem>>, vector<1x1x512xf32>
    %157 = vector.shape_cast %156 : vector<1x1x512xf32> to vector<1x512xf32>
    %c2_112 = arith.constant 2 : index
    %c6_113 = arith.constant 6 : index
    %c0_114 = arith.constant 0 : index
    %158 = vector.load %arg8[%c2_112, %c6_113, %c0_114] : memref<8x8x512xf32, #tpu.memory_space<vmem>>, vector<1x1x512xf32>
    %159 = vector.shape_cast %158 : vector<1x1x512xf32> to vector<1x512xf32>
    %160 = vector.shape_cast %157 : vector<1x512xf32> to vector<1x1x512xf32>
    tpu.vector_store %arg8[%c2_112, %c6_113, %c0_114], %160 {strides = array<i32>} : memref<8x8x512xf32, #tpu.memory_space<vmem>>, vector<1x1x512xf32>,
    %c23 = arith.constant 23 : index
    %161 = memref.load %arg0[%c23] : memref<64xi32, #tpu.memory_space<smem>>
    %162 = arith.index_cast %161 : i32 to index
    %c0_115 = arith.constant 0 : index
    %c0_116 = arith.constant 0 : index
    %163 = vector.load %arg1[%162, %c0_115, %c0_116] : memref<17x1x512xf32, #tpu.memory_space<vmem>>, vector<1x1x512xf32>
    %164 = vector.shape_cast %163 : vector<1x1x512xf32> to vector<1x512xf32>
    %c2_117 = arith.constant 2 : index
    %c7_118 = arith.constant 7 : index
    %c0_119 = arith.constant 0 : index
    %165 = vector.load %arg8[%c2_117, %c7_118, %c0_119] : memref<8x8x512xf32, #tpu.memory_space<vmem>>, vector<1x1x512xf32>
    %166 = vector.shape_cast %165 : vector<1x1x512xf32> to vector<1x512xf32>
    %167 = vector.shape_cast %164 : vector<1x512xf32> to vector<1x1x512xf32>
    tpu.vector_store %arg8[%c2_117, %c7_118, %c0_119], %167 {strides = array<i32>} : memref<8x8x512xf32, #tpu.memory_space<vmem>>, vector<1x1x512xf32>,
    %c24 = arith.constant 24 : index
    %168 = memref.load %arg0[%c24] : memref<64xi32, #tpu.memory_space<smem>>
    %169 = arith.index_cast %168 : i32 to index
    %c0_120 = arith.constant 0 : index
    %c0_121 = arith.constant 0 : index
    %170 = vector.load %arg1[%169, %c0_120, %c0_121] : memref<17x1x512xf32, #tpu.memory_space<vmem>>, vector<1x1x512xf32>
    %171 = vector.shape_cast %170 : vector<1x1x512xf32> to vector<1x512xf32>
    %c3_122 = arith.constant 3 : index
    %c0_123 = arith.constant 0 : index
    %c0_124 = arith.constant 0 : index
    %172 = vector.load %arg8[%c3_122, %c0_123, %c0_124] : memref<8x8x512xf32, #tpu.memory_space<vmem>>, vector<1x1x512xf32>
    %173 = vector.shape_cast %172 : vector<1x1x512xf32> to vector<1x512xf32>
    %174 = vector.shape_cast %171 : vector<1x512xf32> to vector<1x1x512xf32>
    tpu.vector_store %arg8[%c3_122, %c0_123, %c0_124], %174 {strides = array<i32>} : memref<8x8x512xf32, #tpu.memory_space<vmem>>, vector<1x1x512xf32>,
    %c25 = arith.constant 25 : index
    %175 = memref.load %arg0[%c25] : memref<64xi32, #tpu.memory_space<smem>>
    %176 = arith.index_cast %175 : i32 to index
    %c0_125 = arith.constant 0 : index
    %c0_126 = arith.constant 0 : index
    %177 = vector.load %arg1[%176, %c0_125, %c0_126] : memref<17x1x512xf32, #tpu.memory_space<vmem>>, vector<1x1x512xf32>
    %178 = vector.shape_cast %177 : vector<1x1x512xf32> to vector<1x512xf32>
    %c3_127 = arith.constant 3 : index
    %c1_128 = arith.constant 1 : index
    %c0_129 = arith.constant 0 : index
    %179 = vector.load %arg8[%c3_127, %c1_128, %c0_129] : memref<8x8x512xf32, #tpu.memory_space<vmem>>, vector<1x1x512xf32>
    %180 = vector.shape_cast %179 : vector<1x1x512xf32> to vector<1x512xf32>
    %181 = vector.shape_cast %178 : vector<1x512xf32> to vector<1x1x512xf32>
    tpu.vector_store %arg8[%c3_127, %c1_128, %c0_129], %181 {strides = array<i32>} : memref<8x8x512xf32, #tpu.memory_space<vmem>>, vector<1x1x512xf32>,
    %c26 = arith.constant 26 : index
    %182 = memref.load %arg0[%c26] : memref<64xi32, #tpu.memory_space<smem>>
    %183 = arith.index_cast %182 : i32 to index
    %c0_130 = arith.constant 0 : index
    %c0_131 = arith.constant 0 : index
    %184 = vector.load %arg1[%183, %c0_130, %c0_131] : memref<17x1x512xf32, #tpu.memory_space<vmem>>, vector<1x1x512xf32>
    %185 = vector.shape_cast %184 : vector<1x1x512xf32> to vector<1x512xf32>
    %c3_132 = arith.constant 3 : index
    %c2_133 = arith.constant 2 : index
    %c0_134 = arith.constant 0 : index
    %186 = vector.load %arg8[%c3_132, %c2_133, %c0_134] : memref<8x8x512xf32, #tpu.memory_space<vmem>>, vector<1x1x512xf32>
    %187 = vector.shape_cast %186 : vector<1x1x512xf32> to vector<1x512xf32>
    %188 = vector.shape_cast %185 : vector<1x512xf32> to vector<1x1x512xf32>
    tpu.vector_store %arg8[%c3_132, %c2_133, %c0_134], %188 {strides = array<i32>} : memref<8x8x512xf32, #tpu.memory_space<vmem>>, vector<1x1x512xf32>,
    %c27 = arith.constant 27 : index
    %189 = memref.load %arg0[%c27] : memref<64xi32, #tpu.memory_space<smem>>
    %190 = arith.index_cast %189 : i32 to index
    %c0_135 = arith.constant 0 : index
    %c0_136 = arith.constant 0 : index
    %191 = vector.load %arg1[%190, %c0_135, %c0_136] : memref<17x1x512xf32, #tpu.memory_space<vmem>>, vector<1x1x512xf32>
    %192 = vector.shape_cast %191 : vector<1x1x512xf32> to vector<1x512xf32>
    %c3_137 = arith.constant 3 : index
    %c3_138 = arith.constant 3 : index
    %c0_139 = arith.constant 0 : index
    %193 = vector.load %arg8[%c3_137, %c3_138, %c0_139] : memref<8x8x512xf32, #tpu.memory_space<vmem>>, vector<1x1x512xf32>
    %194 = vector.shape_cast %193 : vector<1x1x512xf32> to vector<1x512xf32>
    %195 = vector.shape_cast %192 : vector<1x512xf32> to vector<1x1x512xf32>
    tpu.vector_store %arg8[%c3_137, %c3_138, %c0_139], %195 {strides = array<i32>} : memref<8x8x512xf32, #tpu.memory_space<vmem>>, vector<1x1x512xf32>,
    %c28 = arith.constant 28 : index
    %196 = memref.load %arg0[%c28] : memref<64xi32, #tpu.memory_space<smem>>
    %197 = arith.index_cast %196 : i32 to index
    %c0_140 = arith.constant 0 : index
    %c0_141 = arith.constant 0 : index
    %198 = vector.load %arg1[%197, %c0_140, %c0_141] : memref<17x1x512xf32, #tpu.memory_space<vmem>>, vector<1x1x512xf32>
    %199 = vector.shape_cast %198 : vector<1x1x512xf32> to vector<1x512xf32>
    %c3_142 = arith.constant 3 : index
    %c4_143 = arith.constant 4 : index
    %c0_144 = arith.constant 0 : index
    %200 = vector.load %arg8[%c3_142, %c4_143, %c0_144] : memref<8x8x512xf32, #tpu.memory_space<vmem>>, vector<1x1x512xf32>
    %201 = vector.shape_cast %200 : vector<1x1x512xf32> to vector<1x512xf32>
    %202 = vector.shape_cast %199 : vector<1x512xf32> to vector<1x1x512xf32>
    tpu.vector_store %arg8[%c3_142, %c4_143, %c0_144], %202 {strides = array<i32>} : memref<8x8x512xf32, #tpu.memory_space<vmem>>, vector<1x1x512xf32>,
    %c29 = arith.constant 29 : index
    %203 = memref.load %arg0[%c29] : memref<64xi32, #tpu.memory_space<smem>>
    %204 = arith.index_cast %203 : i32 to index
    %c0_145 = arith.constant 0 : index
    %c0_146 = arith.constant 0 : index
    %205 = vector.load %arg1[%204, %c0_145, %c0_146] : memref<17x1x512xf32, #tpu.memory_space<vmem>>, vector<1x1x512xf32>
    %206 = vector.shape_cast %205 : vector<1x1x512xf32> to vector<1x512xf32>
    %c3_147 = arith.constant 3 : index
    %c5_148 = arith.constant 5 : index
    %c0_149 = arith.constant 0 : index
    %207 = vector.load %arg8[%c3_147, %c5_148, %c0_149] : memref<8x8x512xf32, #tpu.memory_space<vmem>>, vector<1x1x512xf32>
    %208 = vector.shape_cast %207 : vector<1x1x512xf32> to vector<1x512xf32>
    %209 = vector.shape_cast %206 : vector<1x512xf32> to vector<1x1x512xf32>
    tpu.vector_store %arg8[%c3_147, %c5_148, %c0_149], %209 {strides = array<i32>} : memref<8x8x512xf32, #tpu.memory_space<vmem>>, vector<1x1x512xf32>,
    %c30 = arith.constant 30 : index
    %210 = memref.load %arg0[%c30] : memref<64xi32, #tpu.memory_space<smem>>
    %211 = arith.index_cast %210 : i32 to index
    %c0_150 = arith.constant 0 : index
    %c0_151 = arith.constant 0 : index
    %212 = vector.load %arg1[%211, %c0_150, %c0_151] : memref<17x1x512xf32, #tpu.memory_space<vmem>>, vector<1x1x512xf32>
    %213 = vector.shape_cast %212 : vector<1x1x512xf32> to vector<1x512xf32>
    %c3_152 = arith.constant 3 : index
    %c6_153 = arith.constant 6 : index
    %c0_154 = arith.constant 0 : index
    %214 = vector.load %arg8[%c3_152, %c6_153, %c0_154] : memref<8x8x512xf32, #tpu.memory_space<vmem>>, vector<1x1x512xf32>
    %215 = vector.shape_cast %214 : vector<1x1x512xf32> to vector<1x512xf32>
    %216 = vector.shape_cast %213 : vector<1x512xf32> to vector<1x1x512xf32>
    tpu.vector_store %arg8[%c3_152, %c6_153, %c0_154], %216 {strides = array<i32>} : memref<8x8x512xf32, #tpu.memory_space<vmem>>, vector<1x1x512xf32>,
    %c31 = arith.constant 31 : index
    %217 = memref.load %arg0[%c31] : memref<64xi32, #tpu.memory_space<smem>>
    %218 = arith.index_cast %217 : i32 to index
    %c0_155 = arith.constant 0 : index
    %c0_156 = arith.constant 0 : index
    %219 = vector.load %arg1[%218, %c0_155, %c0_156] : memref<17x1x512xf32, #tpu.memory_space<vmem>>, vector<1x1x512xf32>
    %220 = vector.shape_cast %219 : vector<1x1x512xf32> to vector<1x512xf32>
    %c3_157 = arith.constant 3 : index
    %c7_158 = arith.constant 7 : index
    %c0_159 = arith.constant 0 : index
    %221 = vector.load %arg8[%c3_157, %c7_158, %c0_159] : memref<8x8x512xf32, #tpu.memory_space<vmem>>, vector<1x1x512xf32>
    %222 = vector.shape_cast %221 : vector<1x1x512xf32> to vector<1x512xf32>
    %223 = vector.shape_cast %220 : vector<1x512xf32> to vector<1x1x512xf32>
    tpu.vector_store %arg8[%c3_157, %c7_158, %c0_159], %223 {strides = array<i32>} : memref<8x8x512xf32, #tpu.memory_space<vmem>>, vector<1x1x512xf32>,
    %c32 = arith.constant 32 : index
    %224 = memref.load %arg0[%c32] : memref<64xi32, #tpu.memory_space<smem>>
    %225 = arith.index_cast %224 : i32 to index
    %c0_160 = arith.constant 0 : index
    %c0_161 = arith.constant 0 : index
    %226 = vector.load %arg1[%225, %c0_160, %c0_161] : memref<17x1x512xf32, #tpu.memory_space<vmem>>, vector<1x1x512xf32>
    %227 = vector.shape_cast %226 : vector<1x1x512xf32> to vector<1x512xf32>
    %c4_162 = arith.constant 4 : index
    %c0_163 = arith.constant 0 : index
    %c0_164 = arith.constant 0 : index
    %228 = vector.load %arg8[%c4_162, %c0_163, %c0_164] : memref<8x8x512xf32, #tpu.memory_space<vmem>>, vector<1x1x512xf32>
    %229 = vector.shape_cast %228 : vector<1x1x512xf32> to vector<1x512xf32>
    %230 = vector.shape_cast %227 : vector<1x512xf32> to vector<1x1x512xf32>
    tpu.vector_store %arg8[%c4_162, %c0_163, %c0_164], %230 {strides = array<i32>} : memref<8x8x512xf32, #tpu.memory_space<vmem>>, vector<1x1x512xf32>,
    %c33 = arith.constant 33 : index
    %231 = memref.load %arg0[%c33] : memref<64xi32, #tpu.memory_space<smem>>
    %232 = arith.index_cast %231 : i32 to index
    %c0_165 = arith.constant 0 : index
    %c0_166 = arith.constant 0 : index
    %233 = vector.load %arg1[%232, %c0_165, %c0_166] : memref<17x1x512xf32, #tpu.memory_space<vmem>>, vector<1x1x512xf32>
    %234 = vector.shape_cast %233 : vector<1x1x512xf32> to vector<1x512xf32>
    %c4_167 = arith.constant 4 : index
    %c1_168 = arith.constant 1 : index
    %c0_169 = arith.constant 0 : index
    %235 = vector.load %arg8[%c4_167, %c1_168, %c0_169] : memref<8x8x512xf32, #tpu.memory_space<vmem>>, vector<1x1x512xf32>
    %236 = vector.shape_cast %235 : vector<1x1x512xf32> to vector<1x512xf32>
    %237 = vector.shape_cast %234 : vector<1x512xf32> to vector<1x1x512xf32>
    tpu.vector_store %arg8[%c4_167, %c1_168, %c0_169], %237 {strides = array<i32>} : memref<8x8x512xf32, #tpu.memory_space<vmem>>, vector<1x1x512xf32>,
    %c34 = arith.constant 34 : index
    %238 = memref.load %arg0[%c34] : memref<64xi32, #tpu.memory_space<smem>>
    %239 = arith.index_cast %238 : i32 to index
    %c0_170 = arith.constant 0 : index
    %c0_171 = arith.constant 0 : index
    %240 = vector.load %arg1[%239, %c0_170, %c0_171] : memref<17x1x512xf32, #tpu.memory_space<vmem>>, vector<1x1x512xf32>
    %241 = vector.shape_cast %240 : vector<1x1x512xf32> to vector<1x512xf32>
    %c4_172 = arith.constant 4 : index
    %c2_173 = arith.constant 2 : index
    %c0_174 = arith.constant 0 : index
    %242 = vector.load %arg8[%c4_172, %c2_173, %c0_174] : memref<8x8x512xf32, #tpu.memory_space<vmem>>, vector<1x1x512xf32>
    %243 = vector.shape_cast %242 : vector<1x1x512xf32> to vector<1x512xf32>
    %244 = vector.shape_cast %241 : vector<1x512xf32> to vector<1x1x512xf32>
    tpu.vector_store %arg8[%c4_172, %c2_173, %c0_174], %244 {strides = array<i32>} : memref<8x8x512xf32, #tpu.memory_space<vmem>>, vector<1x1x512xf32>,
    %c35 = arith.constant 35 : index
    %245 = memref.load %arg0[%c35] : memref<64xi32, #tpu.memory_space<smem>>
    %246 = arith.index_cast %245 : i32 to index
    %c0_175 = arith.constant 0 : index
    %c0_176 = arith.constant 0 : index
    %247 = vector.load %arg1[%246, %c0_175, %c0_176] : memref<17x1x512xf32, #tpu.memory_space<vmem>>, vector<1x1x512xf32>
    %248 = vector.shape_cast %247 : vector<1x1x512xf32> to vector<1x512xf32>
    %c4_177 = arith.constant 4 : index
    %c3_178 = arith.constant 3 : index
    %c0_179 = arith.constant 0 : index
    %249 = vector.load %arg8[%c4_177, %c3_178, %c0_179] : memref<8x8x512xf32, #tpu.memory_space<vmem>>, vector<1x1x512xf32>
    %250 = vector.shape_cast %249 : vector<1x1x512xf32> to vector<1x512xf32>
    %251 = vector.shape_cast %248 : vector<1x512xf32> to vector<1x1x512xf32>
    tpu.vector_store %arg8[%c4_177, %c3_178, %c0_179], %251 {strides = array<i32>} : memref<8x8x512xf32, #tpu.memory_space<vmem>>, vector<1x1x512xf32>,
    %c36 = arith.constant 36 : index
    %252 = memref.load %arg0[%c36] : memref<64xi32, #tpu.memory_space<smem>>
    %253 = arith.index_cast %252 : i32 to index
    %c0_180 = arith.constant 0 : index
    %c0_181 = arith.constant 0 : index
    %254 = vector.load %arg1[%253, %c0_180, %c0_181] : memref<17x1x512xf32, #tpu.memory_space<vmem>>, vector<1x1x512xf32>
    %255 = vector.shape_cast %254 : vector<1x1x512xf32> to vector<1x512xf32>
    %c4_182 = arith.constant 4 : index
    %c4_183 = arith.constant 4 : index
    %c0_184 = arith.constant 0 : index
    %256 = vector.load %arg8[%c4_182, %c4_183, %c0_184] : memref<8x8x512xf32, #tpu.memory_space<vmem>>, vector<1x1x512xf32>
    %257 = vector.shape_cast %256 : vector<1x1x512xf32> to vector<1x512xf32>
    %258 = vector.shape_cast %255 : vector<1x512xf32> to vector<1x1x512xf32>
    tpu.vector_store %arg8[%c4_182, %c4_183, %c0_184], %258 {strides = array<i32>} : memref<8x8x512xf32, #tpu.memory_space<vmem>>, vector<1x1x512xf32>,
    %c37 = arith.constant 37 : index
    %259 = memref.load %arg0[%c37] : memref<64xi32, #tpu.memory_space<smem>>
    %260 = arith.index_cast %259 : i32 to index
    %c0_185 = arith.constant 0 : index
    %c0_186 = arith.constant 0 : index
    %261 = vector.load %arg1[%260, %c0_185, %c0_186] : memref<17x1x512xf32, #tpu.memory_space<vmem>>, vector<1x1x512xf32>
    %262 = vector.shape_cast %261 : vector<1x1x512xf32> to vector<1x512xf32>
    %c4_187 = arith.constant 4 : index
    %c5_188 = arith.constant 5 : index
    %c0_189 = arith.constant 0 : index
    %263 = vector.load %arg8[%c4_187, %c5_188, %c0_189] : memref<8x8x512xf32, #tpu.memory_space<vmem>>, vector<1x1x512xf32>
    %264 = vector.shape_cast %263 : vector<1x1x512xf32> to vector<1x512xf32>
    %265 = vector.shape_cast %262 : vector<1x512xf32> to vector<1x1x512xf32>
    tpu.vector_store %arg8[%c4_187, %c5_188, %c0_189], %265 {strides = array<i32>} : memref<8x8x512xf32, #tpu.memory_space<vmem>>, vector<1x1x512xf32>,
    %c38 = arith.constant 38 : index
    %266 = memref.load %arg0[%c38] : memref<64xi32, #tpu.memory_space<smem>>
    %267 = arith.index_cast %266 : i32 to index
    %c0_190 = arith.constant 0 : index
    %c0_191 = arith.constant 0 : index
    %268 = vector.load %arg1[%267, %c0_190, %c0_191] : memref<17x1x512xf32, #tpu.memory_space<vmem>>, vector<1x1x512xf32>
    %269 = vector.shape_cast %268 : vector<1x1x512xf32> to vector<1x512xf32>
    %c4_192 = arith.constant 4 : index
    %c6_193 = arith.constant 6 : index
    %c0_194 = arith.constant 0 : index
    %270 = vector.load %arg8[%c4_192, %c6_193, %c0_194] : memref<8x8x512xf32, #tpu.memory_space<vmem>>, vector<1x1x512xf32>
    %271 = vector.shape_cast %270 : vector<1x1x512xf32> to vector<1x512xf32>
    %272 = vector.shape_cast %269 : vector<1x512xf32> to vector<1x1x512xf32>
    tpu.vector_store %arg8[%c4_192, %c6_193, %c0_194], %272 {strides = array<i32>} : memref<8x8x512xf32, #tpu.memory_space<vmem>>, vector<1x1x512xf32>,
    %c39 = arith.constant 39 : index
    %273 = memref.load %arg0[%c39] : memref<64xi32, #tpu.memory_space<smem>>
    %274 = arith.index_cast %273 : i32 to index
    %c0_195 = arith.constant 0 : index
    %c0_196 = arith.constant 0 : index
    %275 = vector.load %arg1[%274, %c0_195, %c0_196] : memref<17x1x512xf32, #tpu.memory_space<vmem>>, vector<1x1x512xf32>
    %276 = vector.shape_cast %275 : vector<1x1x512xf32> to vector<1x512xf32>
    %c4_197 = arith.constant 4 : index
    %c7_198 = arith.constant 7 : index
    %c0_199 = arith.constant 0 : index
    %277 = vector.load %arg8[%c4_197, %c7_198, %c0_199] : memref<8x8x512xf32, #tpu.memory_space<vmem>>, vector<1x1x512xf32>
    %278 = vector.shape_cast %277 : vector<1x1x512xf32> to vector<1x512xf32>
    %279 = vector.shape_cast %276 : vector<1x512xf32> to vector<1x1x512xf32>
    tpu.vector_store %arg8[%c4_197, %c7_198, %c0_199], %279 {strides = array<i32>} : memref<8x8x512xf32, #tpu.memory_space<vmem>>, vector<1x1x512xf32>,
    %c40 = arith.constant 40 : index
    %280 = memref.load %arg0[%c40] : memref<64xi32, #tpu.memory_space<smem>>
    %281 = arith.index_cast %280 : i32 to index
    %c0_200 = arith.constant 0 : index
    %c0_201 = arith.constant 0 : index
    %282 = vector.load %arg1[%281, %c0_200, %c0_201] : memref<17x1x512xf32, #tpu.memory_space<vmem>>, vector<1x1x512xf32>
    %283 = vector.shape_cast %282 : vector<1x1x512xf32> to vector<1x512xf32>
    %c5_202 = arith.constant 5 : index
    %c0_203 = arith.constant 0 : index
    %c0_204 = arith.constant 0 : index
    %284 = vector.load %arg8[%c5_202, %c0_203, %c0_204] : memref<8x8x512xf32, #tpu.memory_space<vmem>>, vector<1x1x512xf32>
    %285 = vector.shape_cast %284 : vector<1x1x512xf32> to vector<1x512xf32>
    %286 = vector.shape_cast %283 : vector<1x512xf32> to vector<1x1x512xf32>
    tpu.vector_store %arg8[%c5_202, %c0_203, %c0_204], %286 {strides = array<i32>} : memref<8x8x512xf32, #tpu.memory_space<vmem>>, vector<1x1x512xf32>,
    %c41 = arith.constant 41 : index
    %287 = memref.load %arg0[%c41] : memref<64xi32, #tpu.memory_space<smem>>
    %288 = arith.index_cast %287 : i32 to index
    %c0_205 = arith.constant 0 : index
    %c0_206 = arith.constant 0 : index
    %289 = vector.load %arg1[%288, %c0_205, %c0_206] : memref<17x1x512xf32, #tpu.memory_space<vmem>>, vector<1x1x512xf32>
    %290 = vector.shape_cast %289 : vector<1x1x512xf32> to vector<1x512xf32>
    %c5_207 = arith.constant 5 : index
    %c1_208 = arith.constant 1 : index
    %c0_209 = arith.constant 0 : index
    %291 = vector.load %arg8[%c5_207, %c1_208, %c0_209] : memref<8x8x512xf32, #tpu.memory_space<vmem>>, vector<1x1x512xf32>
    %292 = vector.shape_cast %291 : vector<1x1x512xf32> to vector<1x512xf32>
    %293 = vector.shape_cast %290 : vector<1x512xf32> to vector<1x1x512xf32>
    tpu.vector_store %arg8[%c5_207, %c1_208, %c0_209], %293 {strides = array<i32>} : memref<8x8x512xf32, #tpu.memory_space<vmem>>, vector<1x1x512xf32>,
    %c42 = arith.constant 42 : index
    %294 = memref.load %arg0[%c42] : memref<64xi32, #tpu.memory_space<smem>>
    %295 = arith.index_cast %294 : i32 to index
    %c0_210 = arith.constant 0 : index
    %c0_211 = arith.constant 0 : index
    %296 = vector.load %arg1[%295, %c0_210, %c0_211] : memref<17x1x512xf32, #tpu.memory_space<vmem>>, vector<1x1x512xf32>
    %297 = vector.shape_cast %296 : vector<1x1x512xf32> to vector<1x512xf32>
    %c5_212 = arith.constant 5 : index
    %c2_213 = arith.constant 2 : index
    %c0_214 = arith.constant 0 : index
    %298 = vector.load %arg8[%c5_212, %c2_213, %c0_214] : memref<8x8x512xf32, #tpu.memory_space<vmem>>, vector<1x1x512xf32>
    %299 = vector.shape_cast %298 : vector<1x1x512xf32> to vector<1x512xf32>
    %300 = vector.shape_cast %297 : vector<1x512xf32> to vector<1x1x512xf32>
    tpu.vector_store %arg8[%c5_212, %c2_213, %c0_214], %300 {strides = array<i32>} : memref<8x8x512xf32, #tpu.memory_space<vmem>>, vector<1x1x512xf32>,
    %c43 = arith.constant 43 : index
    %301 = memref.load %arg0[%c43] : memref<64xi32, #tpu.memory_space<smem>>
    %302 = arith.index_cast %301 : i32 to index
    %c0_215 = arith.constant 0 : index
    %c0_216 = arith.constant 0 : index
    %303 = vector.load %arg1[%302, %c0_215, %c0_216] : memref<17x1x512xf32, #tpu.memory_space<vmem>>, vector<1x1x512xf32>
    %304 = vector.shape_cast %303 : vector<1x1x512xf32> to vector<1x512xf32>
    %c5_217 = arith.constant 5 : index
    %c3_218 = arith.constant 3 : index
    %c0_219 = arith.constant 0 : index
    %305 = vector.load %arg8[%c5_217, %c3_218, %c0_219] : memref<8x8x512xf32, #tpu.memory_space<vmem>>, vector<1x1x512xf32>
    %306 = vector.shape_cast %305 : vector<1x1x512xf32> to vector<1x512xf32>
    %307 = vector.shape_cast %304 : vector<1x512xf32> to vector<1x1x512xf32>
    tpu.vector_store %arg8[%c5_217, %c3_218, %c0_219], %307 {strides = array<i32>} : memref<8x8x512xf32, #tpu.memory_space<vmem>>, vector<1x1x512xf32>,
    %c44 = arith.constant 44 : index
    %308 = memref.load %arg0[%c44] : memref<64xi32, #tpu.memory_space<smem>>
    %309 = arith.index_cast %308 : i32 to index
    %c0_220 = arith.constant 0 : index
    %c0_221 = arith.constant 0 : index
    %310 = vector.load %arg1[%309, %c0_220, %c0_221] : memref<17x1x512xf32, #tpu.memory_space<vmem>>, vector<1x1x512xf32>
    %311 = vector.shape_cast %310 : vector<1x1x512xf32> to vector<1x512xf32>
    %c5_222 = arith.constant 5 : index
    %c4_223 = arith.constant 4 : index
    %c0_224 = arith.constant 0 : index
    %312 = vector.load %arg8[%c5_222, %c4_223, %c0_224] : memref<8x8x512xf32, #tpu.memory_space<vmem>>, vector<1x1x512xf32>
    %313 = vector.shape_cast %312 : vector<1x1x512xf32> to vector<1x512xf32>
    %314 = vector.shape_cast %311 : vector<1x512xf32> to vector<1x1x512xf32>
    tpu.vector_store %arg8[%c5_222, %c4_223, %c0_224], %314 {strides = array<i32>} : memref<8x8x512xf32, #tpu.memory_space<vmem>>, vector<1x1x512xf32>,
    %c45 = arith.constant 45 : index
    %315 = memref.load %arg0[%c45] : memref<64xi32, #tpu.memory_space<smem>>
    %316 = arith.index_cast %315 : i32 to index
    %c0_225 = arith.constant 0 : index
    %c0_226 = arith.constant 0 : index
    %317 = vector.load %arg1[%316, %c0_225, %c0_226] : memref<17x1x512xf32, #tpu.memory_space<vmem>>, vector<1x1x512xf32>
    %318 = vector.shape_cast %317 : vector<1x1x512xf32> to vector<1x512xf32>
    %c5_227 = arith.constant 5 : index
    %c5_228 = arith.constant 5 : index
    %c0_229 = arith.constant 0 : index
    %319 = vector.load %arg8[%c5_227, %c5_228, %c0_229] : memref<8x8x512xf32, #tpu.memory_space<vmem>>, vector<1x1x512xf32>
    %320 = vector.shape_cast %319 : vector<1x1x512xf32> to vector<1x512xf32>
    %321 = vector.shape_cast %318 : vector<1x512xf32> to vector<1x1x512xf32>
    tpu.vector_store %arg8[%c5_227, %c5_228, %c0_229], %321 {strides = array<i32>} : memref<8x8x512xf32, #tpu.memory_space<vmem>>, vector<1x1x512xf32>,
    %c46 = arith.constant 46 : index
    %322 = memref.load %arg0[%c46] : memref<64xi32, #tpu.memory_space<smem>>
    %323 = arith.index_cast %322 : i32 to index
    %c0_230 = arith.constant 0 : index
    %c0_231 = arith.constant 0 : index
    %324 = vector.load %arg1[%323, %c0_230, %c0_231] : memref<17x1x512xf32, #tpu.memory_space<vmem>>, vector<1x1x512xf32>
    %325 = vector.shape_cast %324 : vector<1x1x512xf32> to vector<1x512xf32>
    %c5_232 = arith.constant 5 : index
    %c6_233 = arith.constant 6 : index
    %c0_234 = arith.constant 0 : index
    %326 = vector.load %arg8[%c5_232, %c6_233, %c0_234] : memref<8x8x512xf32, #tpu.memory_space<vmem>>, vector<1x1x512xf32>
    %327 = vector.shape_cast %326 : vector<1x1x512xf32> to vector<1x512xf32>
    %328 = vector.shape_cast %325 : vector<1x512xf32> to vector<1x1x512xf32>
    tpu.vector_store %arg8[%c5_232, %c6_233, %c0_234], %328 {strides = array<i32>} : memref<8x8x512xf32, #tpu.memory_space<vmem>>, vector<1x1x512xf32>,
    %c47 = arith.constant 47 : index
    %329 = memref.load %arg0[%c47] : memref<64xi32, #tpu.memory_space<smem>>
    %330 = arith.index_cast %329 : i32 to index
    %c0_235 = arith.constant 0 : index
    %c0_236 = arith.constant 0 : index
    %331 = vector.load %arg1[%330, %c0_235, %c0_236] : memref<17x1x512xf32, #tpu.memory_space<vmem>>, vector<1x1x512xf32>
    %332 = vector.shape_cast %331 : vector<1x1x512xf32> to vector<1x512xf32>
    %c5_237 = arith.constant 5 : index
    %c7_238 = arith.constant 7 : index
    %c0_239 = arith.constant 0 : index
    %333 = vector.load %arg8[%c5_237, %c7_238, %c0_239] : memref<8x8x512xf32, #tpu.memory_space<vmem>>, vector<1x1x512xf32>
    %334 = vector.shape_cast %333 : vector<1x1x512xf32> to vector<1x512xf32>
    %335 = vector.shape_cast %332 : vector<1x512xf32> to vector<1x1x512xf32>
    tpu.vector_store %arg8[%c5_237, %c7_238, %c0_239], %335 {strides = array<i32>} : memref<8x8x512xf32, #tpu.memory_space<vmem>>, vector<1x1x512xf32>,
    %c48 = arith.constant 48 : index
    %336 = memref.load %arg0[%c48] : memref<64xi32, #tpu.memory_space<smem>>
    %337 = arith.index_cast %336 : i32 to index
    %c0_240 = arith.constant 0 : index
    %c0_241 = arith.constant 0 : index
    %338 = vector.load %arg1[%337, %c0_240, %c0_241] : memref<17x1x512xf32, #tpu.memory_space<vmem>>, vector<1x1x512xf32>
    %339 = vector.shape_cast %338 : vector<1x1x512xf32> to vector<1x512xf32>
    %c6_242 = arith.constant 6 : index
    %c0_243 = arith.constant 0 : index
    %c0_244 = arith.constant 0 : index
    %340 = vector.load %arg8[%c6_242, %c0_243, %c0_244] : memref<8x8x512xf32, #tpu.memory_space<vmem>>, vector<1x1x512xf32>
    %341 = vector.shape_cast %340 : vector<1x1x512xf32> to vector<1x512xf32>
    %342 = vector.shape_cast %339 : vector<1x512xf32> to vector<1x1x512xf32>
    tpu.vector_store %arg8[%c6_242, %c0_243, %c0_244], %342 {strides = array<i32>} : memref<8x8x512xf32, #tpu.memory_space<vmem>>, vector<1x1x512xf32>,
    %c49 = arith.constant 49 : index
    %343 = memref.load %arg0[%c49] : memref<64xi32, #tpu.memory_space<smem>>
    %344 = arith.index_cast %343 : i32 to index
    %c0_245 = arith.constant 0 : index
    %c0_246 = arith.constant 0 : index
    %345 = vector.load %arg1[%344, %c0_245, %c0_246] : memref<17x1x512xf32, #tpu.memory_space<vmem>>, vector<1x1x512xf32>
    %346 = vector.shape_cast %345 : vector<1x1x512xf32> to vector<1x512xf32>
    %c6_247 = arith.constant 6 : index
    %c1_248 = arith.constant 1 : index
    %c0_249 = arith.constant 0 : index
    %347 = vector.load %arg8[%c6_247, %c1_248, %c0_249] : memref<8x8x512xf32, #tpu.memory_space<vmem>>, vector<1x1x512xf32>
    %348 = vector.shape_cast %347 : vector<1x1x512xf32> to vector<1x512xf32>
    %349 = vector.shape_cast %346 : vector<1x512xf32> to vector<1x1x512xf32>
    tpu.vector_store %arg8[%c6_247, %c1_248, %c0_249], %349 {strides = array<i32>} : memref<8x8x512xf32, #tpu.memory_space<vmem>>, vector<1x1x512xf32>,
    %c50 = arith.constant 50 : index
    %350 = memref.load %arg0[%c50] : memref<64xi32, #tpu.memory_space<smem>>
    %351 = arith.index_cast %350 : i32 to index
    %c0_250 = arith.constant 0 : index
    %c0_251 = arith.constant 0 : index
    %352 = vector.load %arg1[%351, %c0_250, %c0_251] : memref<17x1x512xf32, #tpu.memory_space<vmem>>, vector<1x1x512xf32>
    %353 = vector.shape_cast %352 : vector<1x1x512xf32> to vector<1x512xf32>
    %c6_252 = arith.constant 6 : index
    %c2_253 = arith.constant 2 : index
    %c0_254 = arith.constant 0 : index
    %354 = vector.load %arg8[%c6_252, %c2_253, %c0_254] : memref<8x8x512xf32, #tpu.memory_space<vmem>>, vector<1x1x512xf32>
    %355 = vector.shape_cast %354 : vector<1x1x512xf32> to vector<1x512xf32>
    %356 = vector.shape_cast %353 : vector<1x512xf32> to vector<1x1x512xf32>
    tpu.vector_store %arg8[%c6_252, %c2_253, %c0_254], %356 {strides = array<i32>} : memref<8x8x512xf32, #tpu.memory_space<vmem>>, vector<1x1x512xf32>,
    %c51 = arith.constant 51 : index
    %357 = memref.load %arg0[%c51] : memref<64xi32, #tpu.memory_space<smem>>
    %358 = arith.index_cast %357 : i32 to index
    %c0_255 = arith.constant 0 : index
    %c0_256 = arith.constant 0 : index
    %359 = vector.load %arg1[%358, %c0_255, %c0_256] : memref<17x1x512xf32, #tpu.memory_space<vmem>>, vector<1x1x512xf32>
    %360 = vector.shape_cast %359 : vector<1x1x512xf32> to vector<1x512xf32>
    %c6_257 = arith.constant 6 : index
    %c3_258 = arith.constant 3 : index
    %c0_259 = arith.constant 0 : index
    %361 = vector.load %arg8[%c6_257, %c3_258, %c0_259] : memref<8x8x512xf32, #tpu.memory_space<vmem>>, vector<1x1x512xf32>
    %362 = vector.shape_cast %361 : vector<1x1x512xf32> to vector<1x512xf32>
    %363 = vector.shape_cast %360 : vector<1x512xf32> to vector<1x1x512xf32>
    tpu.vector_store %arg8[%c6_257, %c3_258, %c0_259], %363 {strides = array<i32>} : memref<8x8x512xf32, #tpu.memory_space<vmem>>, vector<1x1x512xf32>,
    %c52 = arith.constant 52 : index
    %364 = memref.load %arg0[%c52] : memref<64xi32, #tpu.memory_space<smem>>
    %365 = arith.index_cast %364 : i32 to index
    %c0_260 = arith.constant 0 : index
    %c0_261 = arith.constant 0 : index
    %366 = vector.load %arg1[%365, %c0_260, %c0_261] : memref<17x1x512xf32, #tpu.memory_space<vmem>>, vector<1x1x512xf32>
    %367 = vector.shape_cast %366 : vector<1x1x512xf32> to vector<1x512xf32>
    %c6_262 = arith.constant 6 : index
    %c4_263 = arith.constant 4 : index
    %c0_264 = arith.constant 0 : index
    %368 = vector.load %arg8[%c6_262, %c4_263, %c0_264] : memref<8x8x512xf32, #tpu.memory_space<vmem>>, vector<1x1x512xf32>
    %369 = vector.shape_cast %368 : vector<1x1x512xf32> to vector<1x512xf32>
    %370 = vector.shape_cast %367 : vector<1x512xf32> to vector<1x1x512xf32>
    tpu.vector_store %arg8[%c6_262, %c4_263, %c0_264], %370 {strides = array<i32>} : memref<8x8x512xf32, #tpu.memory_space<vmem>>, vector<1x1x512xf32>,
    %c53 = arith.constant 53 : index
    %371 = memref.load %arg0[%c53] : memref<64xi32, #tpu.memory_space<smem>>
    %372 = arith.index_cast %371 : i32 to index
    %c0_265 = arith.constant 0 : index
    %c0_266 = arith.constant 0 : index
    %373 = vector.load %arg1[%372, %c0_265, %c0_266] : memref<17x1x512xf32, #tpu.memory_space<vmem>>, vector<1x1x512xf32>
    %374 = vector.shape_cast %373 : vector<1x1x512xf32> to vector<1x512xf32>
    %c6_267 = arith.constant 6 : index
    %c5_268 = arith.constant 5 : index
    %c0_269 = arith.constant 0 : index
    %375 = vector.load %arg8[%c6_267, %c5_268, %c0_269] : memref<8x8x512xf32, #tpu.memory_space<vmem>>, vector<1x1x512xf32>
    %376 = vector.shape_cast %375 : vector<1x1x512xf32> to vector<1x512xf32>
    %377 = vector.shape_cast %374 : vector<1x512xf32> to vector<1x1x512xf32>
    tpu.vector_store %arg8[%c6_267, %c5_268, %c0_269], %377 {strides = array<i32>} : memref<8x8x512xf32, #tpu.memory_space<vmem>>, vector<1x1x512xf32>,
    %c54 = arith.constant 54 : index
    %378 = memref.load %arg0[%c54] : memref<64xi32, #tpu.memory_space<smem>>
    %379 = arith.index_cast %378 : i32 to index
    %c0_270 = arith.constant 0 : index
    %c0_271 = arith.constant 0 : index
    %380 = vector.load %arg1[%379, %c0_270, %c0_271] : memref<17x1x512xf32, #tpu.memory_space<vmem>>, vector<1x1x512xf32>
    %381 = vector.shape_cast %380 : vector<1x1x512xf32> to vector<1x512xf32>
    %c6_272 = arith.constant 6 : index
    %c6_273 = arith.constant 6 : index
    %c0_274 = arith.constant 0 : index
    %382 = vector.load %arg8[%c6_272, %c6_273, %c0_274] : memref<8x8x512xf32, #tpu.memory_space<vmem>>, vector<1x1x512xf32>
    %383 = vector.shape_cast %382 : vector<1x1x512xf32> to vector<1x512xf32>
    %384 = vector.shape_cast %381 : vector<1x512xf32> to vector<1x1x512xf32>
    tpu.vector_store %arg8[%c6_272, %c6_273, %c0_274], %384 {strides = array<i32>} : memref<8x8x512xf32, #tpu.memory_space<vmem>>, vector<1x1x512xf32>,
    %c55 = arith.constant 55 : index
    %385 = memref.load %arg0[%c55] : memref<64xi32, #tpu.memory_space<smem>>
    %386 = arith.index_cast %385 : i32 to index
    %c0_275 = arith.constant 0 : index
    %c0_276 = arith.constant 0 : index
    %387 = vector.load %arg1[%386, %c0_275, %c0_276] : memref<17x1x512xf32, #tpu.memory_space<vmem>>, vector<1x1x512xf32>
    %388 = vector.shape_cast %387 : vector<1x1x512xf32> to vector<1x512xf32>
    %c6_277 = arith.constant 6 : index
    %c7_278 = arith.constant 7 : index
    %c0_279 = arith.constant 0 : index
    %389 = vector.load %arg8[%c6_277, %c7_278, %c0_279] : memref<8x8x512xf32, #tpu.memory_space<vmem>>, vector<1x1x512xf32>
    %390 = vector.shape_cast %389 : vector<1x1x512xf32> to vector<1x512xf32>
    %391 = vector.shape_cast %388 : vector<1x512xf32> to vector<1x1x512xf32>
    tpu.vector_store %arg8[%c6_277, %c7_278, %c0_279], %391 {strides = array<i32>} : memref<8x8x512xf32, #tpu.memory_space<vmem>>, vector<1x1x512xf32>,
    %c56 = arith.constant 56 : index
    %392 = memref.load %arg0[%c56] : memref<64xi32, #tpu.memory_space<smem>>
    %393 = arith.index_cast %392 : i32 to index
    %c0_280 = arith.constant 0 : index
    %c0_281 = arith.constant 0 : index
    %394 = vector.load %arg1[%393, %c0_280, %c0_281] : memref<17x1x512xf32, #tpu.memory_space<vmem>>, vector<1x1x512xf32>
    %395 = vector.shape_cast %394 : vector<1x1x512xf32> to vector<1x512xf32>
    %c7_282 = arith.constant 7 : index
    %c0_283 = arith.constant 0 : index
    %c0_284 = arith.constant 0 : index
    %396 = vector.load %arg8[%c7_282, %c0_283, %c0_284] : memref<8x8x512xf32, #tpu.memory_space<vmem>>, vector<1x1x512xf32>
    %397 = vector.shape_cast %396 : vector<1x1x512xf32> to vector<1x512xf32>
    %398 = vector.shape_cast %395 : vector<1x512xf32> to vector<1x1x512xf32>
    tpu.vector_store %arg8[%c7_282, %c0_283, %c0_284], %398 {strides = array<i32>} : memref<8x8x512xf32, #tpu.memory_space<vmem>>, vector<1x1x512xf32>,
    %c57 = arith.constant 57 : index
    %399 = memref.load %arg0[%c57] : memref<64xi32, #tpu.memory_space<smem>>
    %400 = arith.index_cast %399 : i32 to index
    %c0_285 = arith.constant 0 : index
    %c0_286 = arith.constant 0 : index
    %401 = vector.load %arg1[%400, %c0_285, %c0_286] : memref<17x1x512xf32, #tpu.memory_space<vmem>>, vector<1x1x512xf32>
    %402 = vector.shape_cast %401 : vector<1x1x512xf32> to vector<1x512xf32>
    %c7_287 = arith.constant 7 : index
    %c1_288 = arith.constant 1 : index
    %c0_289 = arith.constant 0 : index
    %403 = vector.load %arg8[%c7_287, %c1_288, %c0_289] : memref<8x8x512xf32, #tpu.memory_space<vmem>>, vector<1x1x512xf32>
    %404 = vector.shape_cast %403 : vector<1x1x512xf32> to vector<1x512xf32>
    %405 = vector.shape_cast %402 : vector<1x512xf32> to vector<1x1x512xf32>
    tpu.vector_store %arg8[%c7_287, %c1_288, %c0_289], %405 {strides = array<i32>} : memref<8x8x512xf32, #tpu.memory_space<vmem>>, vector<1x1x512xf32>,
    %c58 = arith.constant 58 : index
    %406 = memref.load %arg0[%c58] : memref<64xi32, #tpu.memory_space<smem>>
    %407 = arith.index_cast %406 : i32 to index
    %c0_290 = arith.constant 0 : index
    %c0_291 = arith.constant 0 : index
    %408 = vector.load %arg1[%407, %c0_290, %c0_291] : memref<17x1x512xf32, #tpu.memory_space<vmem>>, vector<1x1x512xf32>
    %409 = vector.shape_cast %408 : vector<1x1x512xf32> to vector<1x512xf32>
    %c7_292 = arith.constant 7 : index
    %c2_293 = arith.constant 2 : index
    %c0_294 = arith.constant 0 : index
    %410 = vector.load %arg8[%c7_292, %c2_293, %c0_294] : memref<8x8x512xf32, #tpu.memory_space<vmem>>, vector<1x1x512xf32>
    %411 = vector.shape_cast %410 : vector<1x1x512xf32> to vector<1x512xf32>
    %412 = vector.shape_cast %409 : vector<1x512xf32> to vector<1x1x512xf32>
    tpu.vector_store %arg8[%c7_292, %c2_293, %c0_294], %412 {strides = array<i32>} : memref<8x8x512xf32, #tpu.memory_space<vmem>>, vector<1x1x512xf32>,
    %c59 = arith.constant 59 : index
    %413 = memref.load %arg0[%c59] : memref<64xi32, #tpu.memory_space<smem>>
    %414 = arith.index_cast %413 : i32 to index
    %c0_295 = arith.constant 0 : index
    %c0_296 = arith.constant 0 : index
    %415 = vector.load %arg1[%414, %c0_295, %c0_296] : memref<17x1x512xf32, #tpu.memory_space<vmem>>, vector<1x1x512xf32>
    %416 = vector.shape_cast %415 : vector<1x1x512xf32> to vector<1x512xf32>
    %c7_297 = arith.constant 7 : index
    %c3_298 = arith.constant 3 : index
    %c0_299 = arith.constant 0 : index
    %417 = vector.load %arg8[%c7_297, %c3_298, %c0_299] : memref<8x8x512xf32, #tpu.memory_space<vmem>>, vector<1x1x512xf32>
    %418 = vector.shape_cast %417 : vector<1x1x512xf32> to vector<1x512xf32>
    %419 = vector.shape_cast %416 : vector<1x512xf32> to vector<1x1x512xf32>
    tpu.vector_store %arg8[%c7_297, %c3_298, %c0_299], %419 {strides = array<i32>} : memref<8x8x512xf32, #tpu.memory_space<vmem>>, vector<1x1x512xf32>,
    %c60 = arith.constant 60 : index
    %420 = memref.load %arg0[%c60] : memref<64xi32, #tpu.memory_space<smem>>
    %421 = arith.index_cast %420 : i32 to index
    %c0_300 = arith.constant 0 : index
    %c0_301 = arith.constant 0 : index
    %422 = vector.load %arg1[%421, %c0_300, %c0_301] : memref<17x1x512xf32, #tpu.memory_space<vmem>>, vector<1x1x512xf32>
    %423 = vector.shape_cast %422 : vector<1x1x512xf32> to vector<1x512xf32>
    %c7_302 = arith.constant 7 : index
    %c4_303 = arith.constant 4 : index
    %c0_304 = arith.constant 0 : index
    %424 = vector.load %arg8[%c7_302, %c4_303, %c0_304] : memref<8x8x512xf32, #tpu.memory_space<vmem>>, vector<1x1x512xf32>
    %425 = vector.shape_cast %424 : vector<1x1x512xf32> to vector<1x512xf32>
    %426 = vector.shape_cast %423 : vector<1x512xf32> to vector<1x1x512xf32>
    tpu.vector_store %arg8[%c7_302, %c4_303, %c0_304], %426 {strides = array<i32>} : memref<8x8x512xf32, #tpu.memory_space<vmem>>, vector<1x1x512xf32>,
    %c61 = arith.constant 61 : index
    %427 = memref.load %arg0[%c61] : memref<64xi32, #tpu.memory_space<smem>>
    %428 = arith.index_cast %427 : i32 to index
    %c0_305 = arith.constant 0 : index
    %c0_306 = arith.constant 0 : index
    %429 = vector.load %arg1[%428, %c0_305, %c0_306] : memref<17x1x512xf32, #tpu.memory_space<vmem>>, vector<1x1x512xf32>
    %430 = vector.shape_cast %429 : vector<1x1x512xf32> to vector<1x512xf32>
    %c7_307 = arith.constant 7 : index
    %c5_308 = arith.constant 5 : index
    %c0_309 = arith.constant 0 : index
    %431 = vector.load %arg8[%c7_307, %c5_308, %c0_309] : memref<8x8x512xf32, #tpu.memory_space<vmem>>, vector<1x1x512xf32>
    %432 = vector.shape_cast %431 : vector<1x1x512xf32> to vector<1x512xf32>
    %433 = vector.shape_cast %430 : vector<1x512xf32> to vector<1x1x512xf32>
    tpu.vector_store %arg8[%c7_307, %c5_308, %c0_309], %433 {strides = array<i32>} : memref<8x8x512xf32, #tpu.memory_space<vmem>>, vector<1x1x512xf32>,
    %c62 = arith.constant 62 : index
    %434 = memref.load %arg0[%c62] : memref<64xi32, #tpu.memory_space<smem>>
    %435 = arith.index_cast %434 : i32 to index
    %c0_310 = arith.constant 0 : index
    %c0_311 = arith.constant 0 : index
    %436 = vector.load %arg1[%435, %c0_310, %c0_311] : memref<17x1x512xf32, #tpu.memory_space<vmem>>, vector<1x1x512xf32>
    %437 = vector.shape_cast %436 : vector<1x1x512xf32> to vector<1x512xf32>
    %c7_312 = arith.constant 7 : index
    %c6_313 = arith.constant 6 : index
    %c0_314 = arith.constant 0 : index
    %438 = vector.load %arg8[%c7_312, %c6_313, %c0_314] : memref<8x8x512xf32, #tpu.memory_space<vmem>>, vector<1x1x512xf32>
    %439 = vector.shape_cast %438 : vector<1x1x512xf32> to vector<1x512xf32>
    %440 = vector.shape_cast %437 : vector<1x512xf32> to vector<1x1x512xf32>
    tpu.vector_store %arg8[%c7_312, %c6_313, %c0_314], %440 {strides = array<i32>} : memref<8x8x512xf32, #tpu.memory_space<vmem>>, vector<1x1x512xf32>,
    %c63 = arith.constant 63 : index
    %441 = memref.load %arg0[%c63] : memref<64xi32, #tpu.memory_space<smem>>
    %442 = arith.index_cast %441 : i32 to index
    %c0_315 = arith.constant 0 : index
    %c0_316 = arith.constant 0 : index
    %443 = vector.load %arg1[%442, %c0_315, %c0_316] : memref<17x1x512xf32, #tpu.memory_space<vmem>>, vector<1x1x512xf32>
    %444 = vector.shape_cast %443 : vector<1x1x512xf32> to vector<1x512xf32>
    %c7_317 = arith.constant 7 : index
    %c7_318 = arith.constant 7 : index
    %c0_319 = arith.constant 0 : index
    %445 = vector.load %arg8[%c7_317, %c7_318, %c0_319] : memref<8x8x512xf32, #tpu.memory_space<vmem>>, vector<1x1x512xf32>
    %446 = vector.shape_cast %445 : vector<1x1x512xf32> to vector<1x512xf32>
    %447 = vector.shape_cast %444 : vector<1x512xf32> to vector<1x1x512xf32>
    tpu.vector_store %arg8[%c7_317, %c7_318, %c0_319], %447 {strides = array<i32>} : memref<8x8x512xf32, #tpu.memory_space<vmem>>, vector<1x1x512xf32>,
    %cst = arith.constant 0.000000e+00 : f32
    %448 = vector.broadcast %cst : f32 to vector<8x128xf32>
    %cst_320 = arith.constant 0.000000e+00 : f32
    %449 = vector.broadcast %cst_320 : f32 to vector<8x128xf32>
    %cst_321 = arith.constant 0.000000e+00 : f32
    %450 = vector.broadcast %cst_321 : f32 to vector<1x128xf32>
    %cst_322 = arith.constant 0.000000e+00 : f32
    %451 = vector.broadcast %cst_322 : f32 to vector<1x128xf32>
    %c0_323 = arith.constant 0 : index
    %c0_324 = arith.constant 0 : index
    %c0_325 = arith.constant 0 : index
    %452 = vector.load %arg8[%c0_323, %c0_324, %c0_325] : memref<8x8x512xf32, #tpu.memory_space<vmem>>, vector<1x8x512xf32>
    %453 = vector.shape_cast %452 : vector<1x8x512xf32> to vector<8x512xf32>
    %454 = arith.truncf %448 : vector<8x128xf32> to vector<8x128xbf16>
    %c0_326 = arith.constant 0 : index
    %c0_327 = arith.constant 0 : index
    %455 = vector.load %arg2[%c0_326, %c0_327] : memref<128x512xbf16, #tpu.memory_space<vmem>>, vector<128x512xbf16>
    %cst_328 = arith.constant dense<0.000000e+00> : vector<8x512xf32>
    %456 = tpu.matmul %454, %455, %cst_328 {dimension_numbers = #tpu.dot_dimension_numbers<[1], [0], [0], [1], [0, 0, 1, 1], [], []>} : vector<8x128xbf16>, vector<128x512xbf16>, vector<8x512xf32> -> vector<8x512xf32>
    %457 = arith.addf %453, %456 : vector<8x512xf32>
    %458 = vector.extract_strided_slice %457 {offsets = [0, 0], sizes = [8, 128], strides = [1, 1]} : vector<8x512xf32> to vector<8x128xf32>
    %459 = arith.negf %458 : vector<8x128xf32>
    %460 = math.exp %459 : vector<8x128xf32>
    %cst_329 = arith.constant 1.000000e+00 : f32
    %461 = vector.broadcast %cst_329 : f32 to vector<8x128xf32>
    %462 = arith.addf %461, %460 : vector<8x128xf32>
    %463 = arith.divf %461, %462 : vector<8x128xf32>
    %464 = vector.extract_strided_slice %457 {offsets = [0, 128], sizes = [8, 128], strides = [1, 1]} : vector<8x512xf32> to vector<8x128xf32>
    %465 = arith.negf %464 : vector<8x128xf32>
    %466 = math.exp %465 : vector<8x128xf32>
    %cst_330 = arith.constant 1.000000e+00 : f32
    %467 = vector.broadcast %cst_330 : f32 to vector<8x128xf32>
    %468 = arith.addf %467, %466 : vector<8x128xf32>
    %469 = arith.divf %467, %468 : vector<8x128xf32>
    %470 = vector.extract_strided_slice %457 {offsets = [0, 256], sizes = [8, 128], strides = [1, 1]} : vector<8x512xf32> to vector<8x128xf32>
    %471 = math.tanh %470 : vector<8x128xf32>
    %472 = vector.extract_strided_slice %457 {offsets = [0, 384], sizes = [8, 128], strides = [1, 1]} : vector<8x512xf32> to vector<8x128xf32>
    %473 = arith.negf %472 : vector<8x128xf32>
    %474 = math.exp %473 : vector<8x128xf32>
    %cst_331 = arith.constant 1.000000e+00 : f32
    %475 = vector.broadcast %cst_331 : f32 to vector<8x128xf32>
    %476 = arith.addf %475, %474 : vector<8x128xf32>
    %477 = arith.divf %475, %476 : vector<8x128xf32>
    %478 = arith.mulf %469, %449 : vector<8x128xf32>
    %479 = arith.mulf %463, %471 : vector<8x128xf32>
    %480 = arith.addf %478, %479 : vector<8x128xf32>
    %481 = math.tanh %480 : vector<8x128xf32>
    %482 = arith.mulf %477, %481 : vector<8x128xf32>
    %483 = vector.extract_strided_slice %482 {offsets = [0, 0], sizes = [2, 128], strides = [1, 1]} : vector<8x128xf32> to vector<2x128xf32>
    %cst_332 = arith.constant dense<0.000000e+00> : vector<128xf32>
    %484 = vector.multi_reduction <add>, %483, %cst_332 [0] : vector<2x128xf32> to vector<128xf32>
    %485 = vector.shape_cast %484 : vector<128xf32> to vector<1x128xf32>
    %486 = arith.addf %450, %485 : vector<1x128xf32>
    %487 = arith.mulf %483, %483 : vector<2x128xf32>
    %cst_333 = arith.constant dense<0.000000e+00> : vector<128xf32>
    %488 = vector.multi_reduction <add>, %487, %cst_333 [0] : vector<2x128xf32> to vector<128xf32>
    %489 = vector.shape_cast %488 : vector<128xf32> to vector<1x128xf32>
    %490 = arith.addf %451, %489 : vector<1x128xf32>
    %c1_334 = arith.constant 1 : index
    %c0_335 = arith.constant 0 : index
    %c0_336 = arith.constant 0 : index
    %491 = vector.load %arg8[%c1_334, %c0_335, %c0_336] : memref<8x8x512xf32, #tpu.memory_space<vmem>>, vector<1x8x512xf32>
    %492 = vector.shape_cast %491 : vector<1x8x512xf32> to vector<8x512xf32>
    %493 = arith.truncf %482 : vector<8x128xf32> to vector<8x128xbf16>
    %c0_337 = arith.constant 0 : index
    %c0_338 = arith.constant 0 : index
    %494 = vector.load %arg2[%c0_337, %c0_338] : memref<128x512xbf16, #tpu.memory_space<vmem>>, vector<128x512xbf16>
    %cst_339 = arith.constant dense<0.000000e+00> : vector<8x512xf32>
    %495 = tpu.matmul %493, %494, %cst_339 {dimension_numbers = #tpu.dot_dimension_numbers<[1], [0], [0], [1], [0, 0, 1, 1], [], []>} : vector<8x128xbf16>, vector<128x512xbf16>, vector<8x512xf32> -> vector<8x512xf32>
    %496 = arith.addf %492, %495 : vector<8x512xf32>
    %497 = vector.extract_strided_slice %496 {offsets = [0, 0], sizes = [8, 128], strides = [1, 1]} : vector<8x512xf32> to vector<8x128xf32>
    %498 = arith.negf %497 : vector<8x128xf32>
    %499 = math.exp %498 : vector<8x128xf32>
    %cst_340 = arith.constant 1.000000e+00 : f32
    %500 = vector.broadcast %cst_340 : f32 to vector<8x128xf32>
    %501 = arith.addf %500, %499 : vector<8x128xf32>
    %502 = arith.divf %500, %501 : vector<8x128xf32>
    %503 = vector.extract_strided_slice %496 {offsets = [0, 128], sizes = [8, 128], strides = [1, 1]} : vector<8x512xf32> to vector<8x128xf32>
    %504 = arith.negf %503 : vector<8x128xf32>
    %505 = math.exp %504 : vector<8x128xf32>
    %cst_341 = arith.constant 1.000000e+00 : f32
    %506 = vector.broadcast %cst_341 : f32 to vector<8x128xf32>
    %507 = arith.addf %506, %505 : vector<8x128xf32>
    %508 = arith.divf %506, %507 : vector<8x128xf32>
    %509 = vector.extract_strided_slice %496 {offsets = [0, 256], sizes = [8, 128], strides = [1, 1]} : vector<8x512xf32> to vector<8x128xf32>
    %510 = math.tanh %509 : vector<8x128xf32>
    %511 = vector.extract_strided_slice %496 {offsets = [0, 384], sizes = [8, 128], strides = [1, 1]} : vector<8x512xf32> to vector<8x128xf32>
    %512 = arith.negf %511 : vector<8x128xf32>
    %513 = math.exp %512 : vector<8x128xf32>
    %cst_342 = arith.constant 1.000000e+00 : f32
    %514 = vector.broadcast %cst_342 : f32 to vector<8x128xf32>
    %515 = arith.addf %514, %513 : vector<8x128xf32>
    %516 = arith.divf %514, %515 : vector<8x128xf32>
    %517 = arith.mulf %508, %480 : vector<8x128xf32>
    %518 = arith.mulf %502, %510 : vector<8x128xf32>
    %519 = arith.addf %517, %518 : vector<8x128xf32>
    %520 = math.tanh %519 : vector<8x128xf32>
    %521 = arith.mulf %516, %520 : vector<8x128xf32>
    %522 = vector.extract_strided_slice %521 {offsets = [0, 0], sizes = [2, 128], strides = [1, 1]} : vector<8x128xf32> to vector<2x128xf32>
    %cst_343 = arith.constant dense<0.000000e+00> : vector<128xf32>
    %523 = vector.multi_reduction <add>, %522, %cst_343 [0] : vector<2x128xf32> to vector<128xf32>
    %524 = vector.shape_cast %523 : vector<128xf32> to vector<1x128xf32>
    %525 = arith.addf %486, %524 : vector<1x128xf32>
    %526 = arith.mulf %522, %522 : vector<2x128xf32>
    %cst_344 = arith.constant dense<0.000000e+00> : vector<128xf32>
    %527 = vector.multi_reduction <add>, %526, %cst_344 [0] : vector<2x128xf32> to vector<128xf32>
    %528 = vector.shape_cast %527 : vector<128xf32> to vector<1x128xf32>
    %529 = arith.addf %490, %528 : vector<1x128xf32>
    %c2_345 = arith.constant 2 : index
    %c0_346 = arith.constant 0 : index
    %c0_347 = arith.constant 0 : index
    %530 = vector.load %arg8[%c2_345, %c0_346, %c0_347] : memref<8x8x512xf32, #tpu.memory_space<vmem>>, vector<1x8x512xf32>
    %531 = vector.shape_cast %530 : vector<1x8x512xf32> to vector<8x512xf32>
    %532 = arith.truncf %521 : vector<8x128xf32> to vector<8x128xbf16>
    %c0_348 = arith.constant 0 : index
    %c0_349 = arith.constant 0 : index
    %533 = vector.load %arg2[%c0_348, %c0_349] : memref<128x512xbf16, #tpu.memory_space<vmem>>, vector<128x512xbf16>
    %cst_350 = arith.constant dense<0.000000e+00> : vector<8x512xf32>
    %534 = tpu.matmul %532, %533, %cst_350 {dimension_numbers = #tpu.dot_dimension_numbers<[1], [0], [0], [1], [0, 0, 1, 1], [], []>} : vector<8x128xbf16>, vector<128x512xbf16>, vector<8x512xf32> -> vector<8x512xf32>
    %535 = arith.addf %531, %534 : vector<8x512xf32>
    %536 = vector.extract_strided_slice %535 {offsets = [0, 0], sizes = [8, 128], strides = [1, 1]} : vector<8x512xf32> to vector<8x128xf32>
    %537 = arith.negf %536 : vector<8x128xf32>
    %538 = math.exp %537 : vector<8x128xf32>
    %cst_351 = arith.constant 1.000000e+00 : f32
    %539 = vector.broadcast %cst_351 : f32 to vector<8x128xf32>
    %540 = arith.addf %539, %538 : vector<8x128xf32>
    %541 = arith.divf %539, %540 : vector<8x128xf32>
    %542 = vector.extract_strided_slice %535 {offsets = [0, 128], sizes = [8, 128], strides = [1, 1]} : vector<8x512xf32> to vector<8x128xf32>
    %543 = arith.negf %542 : vector<8x128xf32>
    %544 = math.exp %543 : vector<8x128xf32>
    %cst_352 = arith.constant 1.000000e+00 : f32
    %545 = vector.broadcast %cst_352 : f32 to vector<8x128xf32>
    %546 = arith.addf %545, %544 : vector<8x128xf32>
    %547 = arith.divf %545, %546 : vector<8x128xf32>
    %548 = vector.extract_strided_slice %535 {offsets = [0, 256], sizes = [8, 128], strides = [1, 1]} : vector<8x512xf32> to vector<8x128xf32>
    %549 = math.tanh %548 : vector<8x128xf32>
    %550 = vector.extract_strided_slice %535 {offsets = [0, 384], sizes = [8, 128], strides = [1, 1]} : vector<8x512xf32> to vector<8x128xf32>
    %551 = arith.negf %550 : vector<8x128xf32>
    %552 = math.exp %551 : vector<8x128xf32>
    %cst_353 = arith.constant 1.000000e+00 : f32
    %553 = vector.broadcast %cst_353 : f32 to vector<8x128xf32>
    %554 = arith.addf %553, %552 : vector<8x128xf32>
    %555 = arith.divf %553, %554 : vector<8x128xf32>
    %556 = arith.mulf %547, %519 : vector<8x128xf32>
    %557 = arith.mulf %541, %549 : vector<8x128xf32>
    %558 = arith.addf %556, %557 : vector<8x128xf32>
    %559 = math.tanh %558 : vector<8x128xf32>
    %560 = arith.mulf %555, %559 : vector<8x128xf32>
    %561 = vector.extract_strided_slice %560 {offsets = [0, 0], sizes = [2, 128], strides = [1, 1]} : vector<8x128xf32> to vector<2x128xf32>
    %cst_354 = arith.constant dense<0.000000e+00> : vector<128xf32>
    %562 = vector.multi_reduction <add>, %561, %cst_354 [0] : vector<2x128xf32> to vector<128xf32>
    %563 = vector.shape_cast %562 : vector<128xf32> to vector<1x128xf32>
    %564 = arith.addf %525, %563 : vector<1x128xf32>
    %565 = arith.mulf %561, %561 : vector<2x128xf32>
    %cst_355 = arith.constant dense<0.000000e+00> : vector<128xf32>
    %566 = vector.multi_reduction <add>, %565, %cst_355 [0] : vector<2x128xf32> to vector<128xf32>
    %567 = vector.shape_cast %566 : vector<128xf32> to vector<1x128xf32>
    %568 = arith.addf %529, %567 : vector<1x128xf32>
    %c3_356 = arith.constant 3 : index
    %c0_357 = arith.constant 0 : index
    %c0_358 = arith.constant 0 : index
    %569 = vector.load %arg8[%c3_356, %c0_357, %c0_358] : memref<8x8x512xf32, #tpu.memory_space<vmem>>, vector<1x8x512xf32>
    %570 = vector.shape_cast %569 : vector<1x8x512xf32> to vector<8x512xf32>
    %571 = arith.truncf %560 : vector<8x128xf32> to vector<8x128xbf16>
    %c0_359 = arith.constant 0 : index
    %c0_360 = arith.constant 0 : index
    %572 = vector.load %arg2[%c0_359, %c0_360] : memref<128x512xbf16, #tpu.memory_space<vmem>>, vector<128x512xbf16>
    %cst_361 = arith.constant dense<0.000000e+00> : vector<8x512xf32>
    %573 = tpu.matmul %571, %572, %cst_361 {dimension_numbers = #tpu.dot_dimension_numbers<[1], [0], [0], [1], [0, 0, 1, 1], [], []>} : vector<8x128xbf16>, vector<128x512xbf16>, vector<8x512xf32> -> vector<8x512xf32>
    %574 = arith.addf %570, %573 : vector<8x512xf32>
    %575 = vector.extract_strided_slice %574 {offsets = [0, 0], sizes = [8, 128], strides = [1, 1]} : vector<8x512xf32> to vector<8x128xf32>
    %576 = arith.negf %575 : vector<8x128xf32>
    %577 = math.exp %576 : vector<8x128xf32>
    %cst_362 = arith.constant 1.000000e+00 : f32
    %578 = vector.broadcast %cst_362 : f32 to vector<8x128xf32>
    %579 = arith.addf %578, %577 : vector<8x128xf32>
    %580 = arith.divf %578, %579 : vector<8x128xf32>
    %581 = vector.extract_strided_slice %574 {offsets = [0, 128], sizes = [8, 128], strides = [1, 1]} : vector<8x512xf32> to vector<8x128xf32>
    %582 = arith.negf %581 : vector<8x128xf32>
    %583 = math.exp %582 : vector<8x128xf32>
    %cst_363 = arith.constant 1.000000e+00 : f32
    %584 = vector.broadcast %cst_363 : f32 to vector<8x128xf32>
    %585 = arith.addf %584, %583 : vector<8x128xf32>
    %586 = arith.divf %584, %585 : vector<8x128xf32>
    %587 = vector.extract_strided_slice %574 {offsets = [0, 256], sizes = [8, 128], strides = [1, 1]} : vector<8x512xf32> to vector<8x128xf32>
    %588 = math.tanh %587 : vector<8x128xf32>
    %589 = vector.extract_strided_slice %574 {offsets = [0, 384], sizes = [8, 128], strides = [1, 1]} : vector<8x512xf32> to vector<8x128xf32>
    %590 = arith.negf %589 : vector<8x128xf32>
    %591 = math.exp %590 : vector<8x128xf32>
    %cst_364 = arith.constant 1.000000e+00 : f32
    %592 = vector.broadcast %cst_364 : f32 to vector<8x128xf32>
    %593 = arith.addf %592, %591 : vector<8x128xf32>
    %594 = arith.divf %592, %593 : vector<8x128xf32>
    %595 = arith.mulf %586, %558 : vector<8x128xf32>
    %596 = arith.mulf %580, %588 : vector<8x128xf32>
    %597 = arith.addf %595, %596 : vector<8x128xf32>
    %598 = math.tanh %597 : vector<8x128xf32>
    %599 = arith.mulf %594, %598 : vector<8x128xf32>
    %600 = vector.extract_strided_slice %599 {offsets = [0, 0], sizes = [2, 128], strides = [1, 1]} : vector<8x128xf32> to vector<2x128xf32>
    %cst_365 = arith.constant dense<0.000000e+00> : vector<128xf32>
    %601 = vector.multi_reduction <add>, %600, %cst_365 [0] : vector<2x128xf32> to vector<128xf32>
    %602 = vector.shape_cast %601 : vector<128xf32> to vector<1x128xf32>
    %603 = arith.addf %564, %602 : vector<1x128xf32>
    %604 = arith.mulf %600, %600 : vector<2x128xf32>
    %cst_366 = arith.constant dense<0.000000e+00> : vector<128xf32>
    %605 = vector.multi_reduction <add>, %604, %cst_366 [0] : vector<2x128xf32> to vector<128xf32>
    %606 = vector.shape_cast %605 : vector<128xf32> to vector<1x128xf32>
    %607 = arith.addf %568, %606 : vector<1x128xf32>
    %c4_367 = arith.constant 4 : index
    %c0_368 = arith.constant 0 : index
    %c0_369 = arith.constant 0 : index
    %608 = vector.load %arg8[%c4_367, %c0_368, %c0_369] : memref<8x8x512xf32, #tpu.memory_space<vmem>>, vector<1x8x512xf32>
    %609 = vector.shape_cast %608 : vector<1x8x512xf32> to vector<8x512xf32>
    %610 = arith.truncf %599 : vector<8x128xf32> to vector<8x128xbf16>
    %c0_370 = arith.constant 0 : index
    %c0_371 = arith.constant 0 : index
    %611 = vector.load %arg2[%c0_370, %c0_371] : memref<128x512xbf16, #tpu.memory_space<vmem>>, vector<128x512xbf16>
    %cst_372 = arith.constant dense<0.000000e+00> : vector<8x512xf32>
    %612 = tpu.matmul %610, %611, %cst_372 {dimension_numbers = #tpu.dot_dimension_numbers<[1], [0], [0], [1], [0, 0, 1, 1], [], []>} : vector<8x128xbf16>, vector<128x512xbf16>, vector<8x512xf32> -> vector<8x512xf32>
    %613 = arith.addf %609, %612 : vector<8x512xf32>
    %614 = vector.extract_strided_slice %613 {offsets = [0, 0], sizes = [8, 128], strides = [1, 1]} : vector<8x512xf32> to vector<8x128xf32>
    %615 = arith.negf %614 : vector<8x128xf32>
    %616 = math.exp %615 : vector<8x128xf32>
    %cst_373 = arith.constant 1.000000e+00 : f32
    %617 = vector.broadcast %cst_373 : f32 to vector<8x128xf32>
    %618 = arith.addf %617, %616 : vector<8x128xf32>
    %619 = arith.divf %617, %618 : vector<8x128xf32>
    %620 = vector.extract_strided_slice %613 {offsets = [0, 128], sizes = [8, 128], strides = [1, 1]} : vector<8x512xf32> to vector<8x128xf32>
    %621 = arith.negf %620 : vector<8x128xf32>
    %622 = math.exp %621 : vector<8x128xf32>
    %cst_374 = arith.constant 1.000000e+00 : f32
    %623 = vector.broadcast %cst_374 : f32 to vector<8x128xf32>
    %624 = arith.addf %623, %622 : vector<8x128xf32>
    %625 = arith.divf %623, %624 : vector<8x128xf32>
    %626 = vector.extract_strided_slice %613 {offsets = [0, 256], sizes = [8, 128], strides = [1, 1]} : vector<8x512xf32> to vector<8x128xf32>
    %627 = math.tanh %626 : vector<8x128xf32>
    %628 = vector.extract_strided_slice %613 {offsets = [0, 384], sizes = [8, 128], strides = [1, 1]} : vector<8x512xf32> to vector<8x128xf32>
    %629 = arith.negf %628 : vector<8x128xf32>
    %630 = math.exp %629 : vector<8x128xf32>
    %cst_375 = arith.constant 1.000000e+00 : f32
    %631 = vector.broadcast %cst_375 : f32 to vector<8x128xf32>
    %632 = arith.addf %631, %630 : vector<8x128xf32>
    %633 = arith.divf %631, %632 : vector<8x128xf32>
    %634 = arith.mulf %625, %597 : vector<8x128xf32>
    %635 = arith.mulf %619, %627 : vector<8x128xf32>
    %636 = arith.addf %634, %635 : vector<8x128xf32>
    %637 = math.tanh %636 : vector<8x128xf32>
    %638 = arith.mulf %633, %637 : vector<8x128xf32>
    %639 = vector.extract_strided_slice %638 {offsets = [0, 0], sizes = [2, 128], strides = [1, 1]} : vector<8x128xf32> to vector<2x128xf32>
    %cst_376 = arith.constant dense<0.000000e+00> : vector<128xf32>
    %640 = vector.multi_reduction <add>, %639, %cst_376 [0] : vector<2x128xf32> to vector<128xf32>
    %641 = vector.shape_cast %640 : vector<128xf32> to vector<1x128xf32>
    %642 = arith.addf %603, %641 : vector<1x128xf32>
    %643 = arith.mulf %639, %639 : vector<2x128xf32>
    %cst_377 = arith.constant dense<0.000000e+00> : vector<128xf32>
    %644 = vector.multi_reduction <add>, %643, %cst_377 [0] : vector<2x128xf32> to vector<128xf32>
    %645 = vector.shape_cast %644 : vector<128xf32> to vector<1x128xf32>
    %646 = arith.addf %607, %645 : vector<1x128xf32>
    %c5_378 = arith.constant 5 : index
    %c0_379 = arith.constant 0 : index
    %c0_380 = arith.constant 0 : index
    %647 = vector.load %arg8[%c5_378, %c0_379, %c0_380] : memref<8x8x512xf32, #tpu.memory_space<vmem>>, vector<1x8x512xf32>
    %648 = vector.shape_cast %647 : vector<1x8x512xf32> to vector<8x512xf32>
    %649 = arith.truncf %638 : vector<8x128xf32> to vector<8x128xbf16>
    %c0_381 = arith.constant 0 : index
    %c0_382 = arith.constant 0 : index
    %650 = vector.load %arg2[%c0_381, %c0_382] : memref<128x512xbf16, #tpu.memory_space<vmem>>, vector<128x512xbf16>
    %cst_383 = arith.constant dense<0.000000e+00> : vector<8x512xf32>
    %651 = tpu.matmul %649, %650, %cst_383 {dimension_numbers = #tpu.dot_dimension_numbers<[1], [0], [0], [1], [0, 0, 1, 1], [], []>} : vector<8x128xbf16>, vector<128x512xbf16>, vector<8x512xf32> -> vector<8x512xf32>
    %652 = arith.addf %648, %651 : vector<8x512xf32>
    %653 = vector.extract_strided_slice %652 {offsets = [0, 0], sizes = [8, 128], strides = [1, 1]} : vector<8x512xf32> to vector<8x128xf32>
    %654 = arith.negf %653 : vector<8x128xf32>
    %655 = math.exp %654 : vector<8x128xf32>
    %cst_384 = arith.constant 1.000000e+00 : f32
    %656 = vector.broadcast %cst_384 : f32 to vector<8x128xf32>
    %657 = arith.addf %656, %655 : vector<8x128xf32>
    %658 = arith.divf %656, %657 : vector<8x128xf32>
    %659 = vector.extract_strided_slice %652 {offsets = [0, 128], sizes = [8, 128], strides = [1, 1]} : vector<8x512xf32> to vector<8x128xf32>
    %660 = arith.negf %659 : vector<8x128xf32>
    %661 = math.exp %660 : vector<8x128xf32>
    %cst_385 = arith.constant 1.000000e+00 : f32
    %662 = vector.broadcast %cst_385 : f32 to vector<8x128xf32>
    %663 = arith.addf %662, %661 : vector<8x128xf32>
    %664 = arith.divf %662, %663 : vector<8x128xf32>
    %665 = vector.extract_strided_slice %652 {offsets = [0, 256], sizes = [8, 128], strides = [1, 1]} : vector<8x512xf32> to vector<8x128xf32>
    %666 = math.tanh %665 : vector<8x128xf32>
    %667 = vector.extract_strided_slice %652 {offsets = [0, 384], sizes = [8, 128], strides = [1, 1]} : vector<8x512xf32> to vector<8x128xf32>
    %668 = arith.negf %667 : vector<8x128xf32>
    %669 = math.exp %668 : vector<8x128xf32>
    %cst_386 = arith.constant 1.000000e+00 : f32
    %670 = vector.broadcast %cst_386 : f32 to vector<8x128xf32>
    %671 = arith.addf %670, %669 : vector<8x128xf32>
    %672 = arith.divf %670, %671 : vector<8x128xf32>
    %673 = arith.mulf %664, %636 : vector<8x128xf32>
    %674 = arith.mulf %658, %666 : vector<8x128xf32>
    %675 = arith.addf %673, %674 : vector<8x128xf32>
    %676 = math.tanh %675 : vector<8x128xf32>
    %677 = arith.mulf %672, %676 : vector<8x128xf32>
    %678 = vector.extract_strided_slice %677 {offsets = [0, 0], sizes = [2, 128], strides = [1, 1]} : vector<8x128xf32> to vector<2x128xf32>
    %cst_387 = arith.constant dense<0.000000e+00> : vector<128xf32>
    %679 = vector.multi_reduction <add>, %678, %cst_387 [0] : vector<2x128xf32> to vector<128xf32>
    %680 = vector.shape_cast %679 : vector<128xf32> to vector<1x128xf32>
    %681 = arith.addf %642, %680 : vector<1x128xf32>
    %682 = arith.mulf %678, %678 : vector<2x128xf32>
    %cst_388 = arith.constant dense<0.000000e+00> : vector<128xf32>
    %683 = vector.multi_reduction <add>, %682, %cst_388 [0] : vector<2x128xf32> to vector<128xf32>
    %684 = vector.shape_cast %683 : vector<128xf32> to vector<1x128xf32>
    %685 = arith.addf %646, %684 : vector<1x128xf32>
    %c6_389 = arith.constant 6 : index
    %c0_390 = arith.constant 0 : index
    %c0_391 = arith.constant 0 : index
    %686 = vector.load %arg8[%c6_389, %c0_390, %c0_391] : memref<8x8x512xf32, #tpu.memory_space<vmem>>, vector<1x8x512xf32>
    %687 = vector.shape_cast %686 : vector<1x8x512xf32> to vector<8x512xf32>
    %688 = arith.truncf %677 : vector<8x128xf32> to vector<8x128xbf16>
    %c0_392 = arith.constant 0 : index
    %c0_393 = arith.constant 0 : index
    %689 = vector.load %arg2[%c0_392, %c0_393] : memref<128x512xbf16, #tpu.memory_space<vmem>>, vector<128x512xbf16>
    %cst_394 = arith.constant dense<0.000000e+00> : vector<8x512xf32>
    %690 = tpu.matmul %688, %689, %cst_394 {dimension_numbers = #tpu.dot_dimension_numbers<[1], [0], [0], [1], [0, 0, 1, 1], [], []>} : vector<8x128xbf16>, vector<128x512xbf16>, vector<8x512xf32> -> vector<8x512xf32>
    %691 = arith.addf %687, %690 : vector<8x512xf32>
    %692 = vector.extract_strided_slice %691 {offsets = [0, 0], sizes = [8, 128], strides = [1, 1]} : vector<8x512xf32> to vector<8x128xf32>
    %693 = arith.negf %692 : vector<8x128xf32>
    %694 = math.exp %693 : vector<8x128xf32>
    %cst_395 = arith.constant 1.000000e+00 : f32
    %695 = vector.broadcast %cst_395 : f32 to vector<8x128xf32>
    %696 = arith.addf %695, %694 : vector<8x128xf32>
    %697 = arith.divf %695, %696 : vector<8x128xf32>
    %698 = vector.extract_strided_slice %691 {offsets = [0, 128], sizes = [8, 128], strides = [1, 1]} : vector<8x512xf32> to vector<8x128xf32>
    %699 = arith.negf %698 : vector<8x128xf32>
    %700 = math.exp %699 : vector<8x128xf32>
    %cst_396 = arith.constant 1.000000e+00 : f32
    %701 = vector.broadcast %cst_396 : f32 to vector<8x128xf32>
    %702 = arith.addf %701, %700 : vector<8x128xf32>
    %703 = arith.divf %701, %702 : vector<8x128xf32>
    %704 = vector.extract_strided_slice %691 {offsets = [0, 256], sizes = [8, 128], strides = [1, 1]} : vector<8x512xf32> to vector<8x128xf32>
    %705 = math.tanh %704 : vector<8x128xf32>
    %706 = vector.extract_strided_slice %691 {offsets = [0, 384], sizes = [8, 128], strides = [1, 1]} : vector<8x512xf32> to vector<8x128xf32>
    %707 = arith.negf %706 : vector<8x128xf32>
    %708 = math.exp %707 : vector<8x128xf32>
    %cst_397 = arith.constant 1.000000e+00 : f32
    %709 = vector.broadcast %cst_397 : f32 to vector<8x128xf32>
    %710 = arith.addf %709, %708 : vector<8x128xf32>
    %711 = arith.divf %709, %710 : vector<8x128xf32>
    %712 = arith.mulf %703, %675 : vector<8x128xf32>
    %713 = arith.mulf %697, %705 : vector<8x128xf32>
    %714 = arith.addf %712, %713 : vector<8x128xf32>
    %715 = math.tanh %714 : vector<8x128xf32>
    %716 = arith.mulf %711, %715 : vector<8x128xf32>
    %717 = vector.extract_strided_slice %716 {offsets = [0, 0], sizes = [2, 128], strides = [1, 1]} : vector<8x128xf32> to vector<2x128xf32>
    %cst_398 = arith.constant dense<0.000000e+00> : vector<128xf32>
    %718 = vector.multi_reduction <add>, %717, %cst_398 [0] : vector<2x128xf32> to vector<128xf32>
    %719 = vector.shape_cast %718 : vector<128xf32> to vector<1x128xf32>
    %720 = arith.addf %681, %719 : vector<1x128xf32>
    %721 = arith.mulf %717, %717 : vector<2x128xf32>
    %cst_399 = arith.constant dense<0.000000e+00> : vector<128xf32>
    %722 = vector.multi_reduction <add>, %721, %cst_399 [0] : vector<2x128xf32> to vector<128xf32>
    %723 = vector.shape_cast %722 : vector<128xf32> to vector<1x128xf32>
    %724 = arith.addf %685, %723 : vector<1x128xf32>
    %c7_400 = arith.constant 7 : index
    %c0_401 = arith.constant 0 : index
    %c0_402 = arith.constant 0 : index
    %725 = vector.load %arg8[%c7_400, %c0_401, %c0_402] : memref<8x8x512xf32, #tpu.memory_space<vmem>>, vector<1x8x512xf32>
    %726 = vector.shape_cast %725 : vector<1x8x512xf32> to vector<8x512xf32>
    %727 = arith.truncf %716 : vector<8x128xf32> to vector<8x128xbf16>
    %c0_403 = arith.constant 0 : index
    %c0_404 = arith.constant 0 : index
    %728 = vector.load %arg2[%c0_403, %c0_404] : memref<128x512xbf16, #tpu.memory_space<vmem>>, vector<128x512xbf16>
    %cst_405 = arith.constant dense<0.000000e+00> : vector<8x512xf32>
    %729 = tpu.matmul %727, %728, %cst_405 {dimension_numbers = #tpu.dot_dimension_numbers<[1], [0], [0], [1], [0, 0, 1, 1], [], []>} : vector<8x128xbf16>, vector<128x512xbf16>, vector<8x512xf32> -> vector<8x512xf32>
    %730 = arith.addf %726, %729 : vector<8x512xf32>
    %731 = vector.extract_strided_slice %730 {offsets = [0, 0], sizes = [8, 128], strides = [1, 1]} : vector<8x512xf32> to vector<8x128xf32>
    %732 = arith.negf %731 : vector<8x128xf32>
    %733 = math.exp %732 : vector<8x128xf32>
    %cst_406 = arith.constant 1.000000e+00 : f32
    %734 = vector.broadcast %cst_406 : f32 to vector<8x128xf32>
    %735 = arith.addf %734, %733 : vector<8x128xf32>
    %736 = arith.divf %734, %735 : vector<8x128xf32>
    %737 = vector.extract_strided_slice %730 {offsets = [0, 128], sizes = [8, 128], strides = [1, 1]} : vector<8x512xf32> to vector<8x128xf32>
    %738 = arith.negf %737 : vector<8x128xf32>
    %739 = math.exp %738 : vector<8x128xf32>
    %cst_407 = arith.constant 1.000000e+00 : f32
    %740 = vector.broadcast %cst_407 : f32 to vector<8x128xf32>
    %741 = arith.addf %740, %739 : vector<8x128xf32>
    %742 = arith.divf %740, %741 : vector<8x128xf32>
    %743 = vector.extract_strided_slice %730 {offsets = [0, 256], sizes = [8, 128], strides = [1, 1]} : vector<8x512xf32> to vector<8x128xf32>
    %744 = math.tanh %743 : vector<8x128xf32>
    %745 = vector.extract_strided_slice %730 {offsets = [0, 384], sizes = [8, 128], strides = [1, 1]} : vector<8x512xf32> to vector<8x128xf32>
    %746 = arith.negf %745 : vector<8x128xf32>
    %747 = math.exp %746 : vector<8x128xf32>
    %cst_408 = arith.constant 1.000000e+00 : f32
    %748 = vector.broadcast %cst_408 : f32 to vector<8x128xf32>
    %749 = arith.addf %748, %747 : vector<8x128xf32>
    %750 = arith.divf %748, %749 : vector<8x128xf32>
    %751 = arith.mulf %742, %714 : vector<8x128xf32>
    %752 = arith.mulf %736, %744 : vector<8x128xf32>
    %753 = arith.addf %751, %752 : vector<8x128xf32>
    %754 = math.tanh %753 : vector<8x128xf32>
    %755 = arith.mulf %750, %754 : vector<8x128xf32>
    %756 = vector.extract_strided_slice %755 {offsets = [0, 0], sizes = [2, 128], strides = [1, 1]} : vector<8x128xf32> to vector<2x128xf32>
    %cst_409 = arith.constant dense<0.000000e+00> : vector<128xf32>
    %757 = vector.multi_reduction <add>, %756, %cst_409 [0] : vector<2x128xf32> to vector<128xf32>
    %758 = vector.shape_cast %757 : vector<128xf32> to vector<1x128xf32>
    %759 = arith.addf %720, %758 : vector<1x128xf32>
    %760 = arith.mulf %756, %756 : vector<2x128xf32>
    %cst_410 = arith.constant dense<0.000000e+00> : vector<128xf32>
    %761 = vector.multi_reduction <add>, %760, %cst_410 [0] : vector<2x128xf32> to vector<128xf32>
    %762 = vector.shape_cast %761 : vector<128xf32> to vector<1x128xf32>
    %763 = arith.addf %724, %762 : vector<1x128xf32>
    %cst_411 = arith.constant 1.600000e+01 : f32
    %764 = vector.broadcast %cst_411 : f32 to vector<1x128xf32>
    %765 = arith.divf %759, %764 : vector<1x128xf32>
    %cst_412 = arith.constant 1.600000e+01 : f32
    %766 = vector.broadcast %cst_412 : f32 to vector<1x128xf32>
    %767 = arith.divf %763, %766 : vector<1x128xf32>
    %768 = arith.mulf %765, %765 : vector<1x128xf32>
    %769 = arith.subf %767, %768 : vector<1x128xf32>
    %cst_413 = arith.constant 0.000000e+00 : f32
    %770 = vector.broadcast %cst_413 : f32 to vector<1x128xf32>
    %771 = arith.maximumf %769, %770 : vector<1x128xf32>
    %772 = vector.broadcast %765 : vector<1x128xf32> to vector<8x128xf32>
    %773 = arith.subf %755, %772 : vector<8x128xf32>
    %cst_414 = arith.constant 9.99999974E-6 : f32
    %774 = vector.broadcast %cst_414 : f32 to vector<1x128xf32>
    %775 = arith.addf %771, %774 : vector<1x128xf32>
    %776 = math.rsqrt %775 : vector<1x128xf32>
    %777 = vector.broadcast %776 : vector<1x128xf32> to vector<8x128xf32>
    %778 = arith.mulf %773, %777 : vector<8x128xf32>
    %c0_415 = arith.constant 0 : index
    %c0_416 = arith.constant 0 : index
    %779 = vector.load %arg3[%c0_415, %c0_416] : memref<1x128xf32, #tpu.memory_space<vmem>>, vector<1x128xf32>
    %780 = vector.broadcast %779 : vector<1x128xf32> to vector<8x128xf32>
    %781 = arith.mulf %778, %780 : vector<8x128xf32>
    %c0_417 = arith.constant 0 : index
    %c0_418 = arith.constant 0 : index
    %782 = vector.load %arg4[%c0_417, %c0_418] : memref<1x128xf32, #tpu.memory_space<vmem>>, vector<1x128xf32>
    %783 = vector.broadcast %782 : vector<1x128xf32> to vector<8x128xf32>
    %784 = arith.addf %781, %783 : vector<8x128xf32>
    %c0_419 = arith.constant 0 : index
    %c0_420 = arith.constant 0 : index
    %785 = vector.load %arg5[%c0_419, %c0_420] : memref<128x128xf32, #tpu.memory_space<vmem>>, vector<128x128xf32>
    %cst_421 = arith.constant dense<0.000000e+00> : vector<8x128xf32>
    %786 = tpu.matmul %784, %785, %cst_421 {dimension_numbers = #tpu.dot_dimension_numbers<[1], [0], [0], [1], [0, 0, 1, 1], [], []>} : vector<8x128xf32>, vector<128x128xf32>, vector<8x128xf32> -> vector<8x128xf32>
    %c0_422 = arith.constant 0 : index
    %c0_423 = arith.constant 0 : index
    %787 = vector.load %arg6[%c0_422, %c0_423] : memref<1x128xf32, #tpu.memory_space<vmem>>, vector<1x128xf32>
    %788 = vector.broadcast %787 : vector<1x128xf32> to vector<8x128xf32>
    %789 = arith.addf %786, %788 : vector<8x128xf32>
    %c0_424 = arith.constant 0 : index
    %c0_425 = arith.constant 0 : index
    %790 = vector.load %arg7[%c0_424, %c0_425] : memref<8x128xf32, #tpu.memory_space<vmem>>, vector<8x128xf32>
    tpu.vector_store %arg7[%c0_424, %c0_425], %789 {strides = array<i32>} : memref<8x128xf32, #tpu.memory_space<vmem>>, vector<8x128xf32>,
    return
  }
}

</mosaic_0001>

<bundles_post_ra>
// kernel: tpu_custom_call.1
= control target key start
LH: loop header
LB: loop body
LE: loop exit
PB: predicated region body
PF: predicated region fallthrough
CT: control target
= control target key end

     0   :  { %12 = vsyncpa [#allocation6], 0  ;;  %s3473_s0 = inlined_call_operand.hbm [shape: s32[64], index: 0, kind: input, shape index: {}]   ;;  %s3474_s1 = inlined_call_operand.hbm [shape: f32[17,1,512], index: 1, kind: input, shape index: {}]   ;;  %s3475_s2 = inlined_call_operand.hbm [shape: bf16[128,512], index: 2, kind: input, shape index: {}]   ;;  %s3476_s3 = inlined_call_operand.vmem [shape: f32[1,128], index: 3, kind: input, shape index: {}]   ;;  %s3477_s4 = inlined_call_operand.vmem [shape: f32[1,128], index: 4, kind: input, shape index: {}]   ;;  %s3478_s5 = inlined_call_operand.hbm [shape: f32[128,128], index: 5, kind: input, shape index: {}]   ;;  %s3479_s6 = inlined_call_operand.vmem [shape: f32[1,128], index: 6, kind: input, shape index: {}]   ;;  %s3480_s7 = inlined_call_operand.hbm [shape: f32[8,128], index: 7, kind: output, shape index: {}]  }
   0x1   :  { %13 = vsyncpa [#allocation4], 0 }
   0x2   :  { %14 = vsyncpa [#allocation9], 0 }
   0x3   :  { %15 = vsyncpa [#allocation5], 0  ;;  %s2686_s24 = smov [#allocation8]   ;;  %s2580_s28 = scalar_lea.hbm %s3475_s2, 4096 }
   0x4   :  { %s41_s25 = sshll.u32 %s2686_s24, 4  ;;  %p2581_p0 = scmp.ne.s32.totalorder %s3475_s2, %s2580_s28  ;;  %s42_s25 = int_to_ptr.vmem [resolvable:$true] %s41_s25 }
   0x5   :  { %p2584_p1 = scmp.lt.u32.totalorder %s2580_s28, %s3475_s2 }
   0x7   :  { %p2586_p2 = pnand %p2584_p1, %p2581_p0 }
   0x9   :  { %2589 = shalt.err (!%p2586_p2)
}
   0xa   :  { %s2590_s10 = scalar_lea.vmem %s42_s25, 4096  ;;  %p2595_p4 = scmp.lt.s32.totalorder %s42_s25, %s42_s25 }
   0xb   :  { %p2591_p3 = scmp.ne.s32.totalorder %s42_s25, %s2590_s10  ;;  %p2596_p5 = scmp.lt.s32.totalorder %s2590_s10, %s2590_s10 }
   0xd   :  { %p2597_p6 = por %p2596_p5, %p2595_p4 }
   0xf   :  { %p2598_p7 = pnand %p2597_p6, %p2591_p3 }
  0x11   :  { %2601 = shalt.err (!%p2598_p7)
}
  0x12   :  { %s2687_s11 = smov 256   ;;  %s2688_s12 = smov 16  }
  0x13   :  { %47 = dma.hbm_to_vmem [thread:$0]  %s3475_s2, 4096, %s42_s25, [#allocation9], %s2687_s11, %s2687_s11, %s2688_s12  }
  0x14   :  { %s2602_s17 = scalar_lea.hbm %s3473_s0, 16 }
  0x15   :  { %p2603_p8 = scmp.ne.s32.totalorder %s3473_s0, %s2602_s17  ;;  %p2606_p9 = scmp.lt.u32.totalorder %s2602_s17, %s3473_s0 }
  0x17   :  { %p2608_p10 = pnand %p2606_p9, %p2603_p8 }
  0x19   :  { %2611 = shalt.err (!%p2608_p10)
}
  0x1a   :  { %s2689_s22 = smov [#allocation3]   ;;  %s2690_s2 = smov [#allocation7]  }
  0x1b   :  { %23 = dma.hbm_to_smem %s3473_s0, 16, %s2689_s22, [#allocation6]  }
  0x1c   :  { %s29_s25 = sshll.u32 %s2690_s2, 4  ;;  %s2612_s28 = scalar_lea.hbm %s3474_s1, 1088  ;;  %s30_s25 = int_to_ptr.vmem [resolvable:$true] %s29_s25 }
  0x1d   :  { %p2613_p11 = scmp.ne.s32.totalorder %s3474_s1, %s2612_s28  ;;  %p2616_p12 = scmp.lt.u32.totalorder %s2612_s28, %s3474_s1 }
  0x1f   :  { %p2618_p13 = pnand %p2616_p12, %p2613_p11 }
  0x21   :  { %2621 = shalt.err (!%p2618_p13)
}
  0x22   :  { %s2622_s10 = scalar_lea.vmem %s30_s25, 1088  ;;  %p2627_p1 = scmp.lt.s32.totalorder %s30_s25, %s30_s25 }
  0x23   :  { %p2623_p0 = scmp.ne.s32.totalorder %s30_s25, %s2622_s10  ;;  %p2628_p2 = scmp.lt.s32.totalorder %s2622_s10, %s2622_s10 }
  0x25   :  { %p2629_p3 = por %p2628_p2, %p2627_p1 }
  0x27   :  { %p2630_p4 = pnand %p2629_p3, %p2623_p0 }
  0x29   :  { %2633 = shalt.err (!%p2630_p4)
}
  0x2a   :  { %s2691_s0 = smov 64   ;;  %s2692_s11 = smov 4  }
  0x2b   :  { %35 = dma.hbm_to_vmem [thread:$0]  %s3474_s1, 1088, %s30_s25, [#allocation4], %s2691_s0, %s2691_s0, %s2692_s11  }
  0x2c   :  { %s2693_s14 = smov [#allocation10]   ;;  %s2634_s18 = scalar_lea.hbm %s3478_s5, 2048 }
  0x2d   :  { %s57_s15 = sshll.u32 %s2693_s14, 4  ;;  %p2635_p5 = scmp.ne.s32.totalorder %s3478_s5, %s2634_s18  ;;  %s58_s15 = int_to_ptr.vmem [resolvable:$true] %s57_s15 }
  0x2e   :  { %p2638_p6 = scmp.lt.u32.totalorder %s2634_s18, %s3478_s5 }
  0x30   :  { %p2640_p7 = pnand %p2638_p6, %p2635_p5 }
  0x32   :  { %2643 = shalt.err (!%p2640_p7)
}
  0x33   :  { %s2644_s23 = scalar_lea.vmem %s58_s15, 2048  ;;  %p2649_p9 = scmp.lt.s32.totalorder %s58_s15, %s58_s15 }
  0x34   :  { %p2645_p8 = scmp.ne.s32.totalorder %s58_s15, %s2644_s23  ;;  %p2650_p10 = scmp.lt.s32.totalorder %s2644_s23, %s2644_s23 }
  0x36   :  { %p2651_p11 = por %p2650_p10, %p2649_p9 }
  0x38   :  { %p2652_p12 = pnand %p2651_p11, %p2645_p8 }
  0x3a   :  { %2655 = shalt.err (!%p2652_p12)
}
  0x3b   :  { %s2694_s1 = smov 128   ;;  %s2695_s24 = smov 8  }
  0x3c   :  { %63 = dma.hbm_to_vmem [thread:$0]  %s3478_s5, 2048, %s58_s15, [#allocation9], %s2694_s1, %s2694_s1, %s2695_s24  }
  0x3d   :  { %2678 = dma.done.wait [#allocation6], 16  }
  0x3e   :  { %2679 = vsyncadd [#allocation6], 4294967280 }
  0x3f   :  { %2680 = dma.done.wait [#allocation4], 1088  }
  0x40   :  { %2681 = vsyncadd [#allocation4], 4294966208 }
  0x41   :  { %2682 = dma.done.wait [#allocation9], 6144  }
  0x42   :  { %2683 = vsyncadd [#allocation9], 4294961152 }
  0x43   :  { %78 = sfence }
  0x44   :  { %v2789_v0 = vld [vmem:[#allocation8 + $0x4] ss:$16 sps:$4 sm:$0xff]   ;;  %v2791_v1 = vld [vmem:[#allocation8] ss:$16 sps:$4 sm:$0xff]   ;;  %v2696_v2 = vmov 0   ;;  %s2806_s5 = sld [smem:[#allocation3]]  ;;  %v84_v19 = vlaneseq }
  0x45   :  { %759 = vmatprep.mubr.bf16.mxu0 %v2696_v2  ;;  %800 = vmatprep.mubr.bf16.mxu1 %v2696_v2  ;;  %v2796_v3 = vld [vmem:[#allocation8 + $0x24] ss:$16 sps:$4 sm:$0xff]   ;;  %v2799_v4 = vld [vmem:[#allocation8 + $0x20] ss:$16 sps:$4 sm:$0xff]   ;;  %v2804_v6 = vld [vmem:[#allocation8 + $0xc] ss:$16 sps:$4 sm:$0xff]  }
  0x46   :  { %727 = vmatprep.subr.bf16.mxu0 %v2789_v0  ;;  %v2802_v5 = vld [vmem:[#allocation8 + $0x44] ss:$16 sps:$4 sm:$0xff]   ;;  %v2808_v7 = vld [vmem:[#allocation8 + $0x40] ss:$16 sps:$4 sm:$0xff]   ;;  %v2810_v8 = vld [vmem:[#allocation8 + $0x8] ss:$16 sps:$4 sm:$0xff]   ;;  %768 = vmatprep.subr.bf16.mxu1 %v2804_v6 }
  0x47   :  { %728 = vmatpush1.bf16.msra.mxu0 %v2791_v1  ;;  %v2813_v9 = vld [vmem:[#allocation8 + $0x64] ss:$16 sps:$4 sm:$0xff]   ;;  %s2816_s26 = sld [smem:[#allocation3 + $0x1]]  ;;  %769 = vmatpush1.bf16.msra.mxu1 %v2810_v8  ;;  %v2820_v10 = vld [vmem:[#allocation8 + $0x2c] ss:$16 sps:$4 sm:$0xff]   ;;  %s2822_s27 = sld [smem:[#allocation3 + $0x2]] }
  0x48   :  { %729 = vmatprep.subr.bf16.mxu0 %v2796_v3  ;;  %v2824_v11 = vld [vmem:[#allocation8 + $0x28] ss:$16 sps:$4 sm:$0xff]   ;;  %s2826_s28 = sld [smem:[#allocation3 + $0x3]]  ;;  %770 = vmatprep.subr.bf16.mxu1 %v2820_v10  ;;  %v2830_v12 = vld [vmem:[#allocation8 + $0x60] ss:$16 sps:$4 sm:$0xff]   ;;  %s2859_s10 = sld [smem:[#allocation3 + $0x4]] }
  0x49   :  { %v2832_v13 = vld [vmem:[#allocation8 + $0x84] ss:$16 sps:$4 sm:$0xff]   ;;  %v2834_v14 = vld [vmem:[#allocation8 + $0x4c] ss:$16 sps:$4 sm:$0xff]   ;;  %v2838_v15 = vld [vmem:[#allocation8 + $0x48] ss:$16 sps:$4 sm:$0xff]  }
  0x4a   :  { %v2841_v16 = vld [vmem:[#allocation8 + $0x6c] ss:$16 sps:$4 sm:$0xff]   ;;  %v2843_v17 = vld [vmem:[#allocation8 + $0x80] ss:$16 sps:$4 sm:$0xff]   ;;  %v2846_v18 = vld [vmem:[#allocation8 + $0xa4] ss:$16 sps:$4 sm:$0xff]  }
  0x4b   :  { %730 = vmatpush1.bf16.msra.mxu0 %v2799_v4  ;;  %771 = vmatpush1.bf16.msra.mxu1 %v2824_v11  ;;  %s2093_s29 = sshll.u32 %s2806_s5, 2  ;;  %v2852_v20 = vld [vmem:[#allocation8 + $0x68] ss:$16 sps:$4 sm:$0xff]   ;;  %v2857_v21 = vld [vmem:[#allocation8 + $0x8c] ss:$16 sps:$4 sm:$0xff]   ;;  %vm2866_vm0 = vcmp.lt.s32.totalorder %v84_v19, 512 }
  0x4c   :  { %731 = vmatprep.subr.bf16.mxu0 %v2802_v5  ;;  %772 = vmatprep.subr.bf16.mxu1 %v2834_v14  ;;  %v2861_v22 = vld [vmem:[#allocation8 + $0xa0] ss:$16 sps:$4 sm:$0xff]   ;;  %v2864_v23 = vld [vmem:[#allocation8 + $0xc4] ss:$16 sps:$4 sm:$0xff]   ;;  %v2872_v25 = vld [vmem:[#allocation8 + $0x88] ss:$16 sps:$4 sm:$0xff]  }
  0x4d   :  { %s2095_s30 = sshll.u32 %s2816_s26, 2  ;;  %s2097_s8 = sshll.u32 %s2822_s27, 2  ;;  %v2877_v26 = vld [vmem:[#allocation8 + $0xac] ss:$16 sps:$4 sm:$0xff]   ;;  %v2886_v31 = vld [vmem:[#allocation8 + $0xc0] ss:$16 sps:$4 sm:$0xff]  }
  0x4e   :  { %s2099_s9 = sshll.u32 %s2826_s28, 2  ;;  %s2874_s0 = sld [smem:[#allocation3 + $0x5]]  ;;  %v2894_v32 = vld [vmem:[#allocation8 + $0xe4] ss:$16 sps:$4 sm:$0xff]   ;;  %v2897_v33 = vld [vmem:[#allocation8 + $0xa8] ss:$16 sps:$4 sm:$0xff]  }
  0x4f   :  { %732 = vmatpush1.bf16.msra.mxu0 %v2808_v7  ;;  %773 = vmatpush1.bf16.msra.mxu1 %v2838_v15  ;;  %s82_s11 = scalar_lea.vmem [#allocation7], %s2093_s29  ;;  %s92_s12 = scalar_lea.vmem [#allocation7], %s2095_s30  ;;  %v2900_v34 = vld [vmem:[#allocation8 + $0xcc] ss:$16 sps:$4 sm:$0xff]   ;;  %v2906_v36 = vld [vmem:[#allocation8 + $0xe0] ss:$16 sps:$4 sm:$0xff]  }
  0x50   :  { %733 = vmatprep.subr.bf16.mxu0 %v2813_v9  ;;  %774 = vmatprep.subr.bf16.mxu1 %v2841_v16  ;;  %v83_v27 = vld [vmem:[%s82_s11] sm:$0xf]  ;;  %s99_s13 = scalar_lea.vmem [#allocation7], %s2097_s8  ;;  %s106_s14 = scalar_lea.vmem [#allocation7], %s2099_s9  ;;  %v2910_v37 = vld [vmem:[#allocation8 + $0xc8] ss:$16 sps:$4 sm:$0xff]  }
  0x51   :  { %v93_v28 = vld [vmem:[%s92_s12] sm:$0xf]  ;;  %88 = vst.msk [vmem:[#allocation2] ss:$8 sm:$0xf] %vm2866_vm0, %v83_v27  ;;  %s2883_s15 = sld [smem:[#allocation3 + $0x6]] }
  0x52   :  { %95 = vst.msk [vmem:[#allocation2 + $0x1] ss:$8 sm:$0xf] %vm2866_vm0, %v93_v28  ;;  %v100_v29 = vld [vmem:[%s99_s13] sm:$0xf]  ;;  %s2101_s16 = sshll.u32 %s2859_s10, 2 }
  0x53   :  { %734 = vmatpush1.bf16.msra.mxu0 %v2830_v12  ;;  %775 = vmatpush1.bf16.msra.mxu1 %v2852_v20  ;;  %v107_v30 = vld [vmem:[%s106_s14] sm:$0xf]  ;;  %102 = vst.msk [vmem:[#allocation2 + $0x2] ss:$8 sm:$0xf] %vm2866_vm0, %v100_v29  ;;  %s2106_s17 = sld [smem:[#allocation3 + $0x7]] }
  0x54   :  { %735 = vmatprep.subr.bf16.mxu0 %v2832_v13  ;;  %776 = vmatprep.subr.bf16.mxu1 %v2857_v21  ;;  %109 = vst.msk [vmem:[#allocation2 + $0x3] ss:$8 sm:$0xf] %vm2866_vm0, %v107_v30  ;;  %s113_s18 = scalar_lea.vmem [#allocation7], %s2101_s16  ;;  %s2103_s19 = sshll.u32 %s2874_s0, 2  ;;  %vm837_vm1 = vcmask 1041408  }
  0x55   :  { %v114_v35 = vld [vmem:[%s113_s18] sm:$0xf]  ;;  %s120_s20 = scalar_lea.vmem [#allocation7], %s2103_s19  ;;  %v2922_v42 = vld [vmem:[#allocation8 + $0xe8] ss:$16 sps:$4 sm:$0xff]   ;;  %s2108_s24 = sld [smem:[#allocation3 + $0x8]] }
  0x56   :  { %116 = vst.msk [vmem:[#allocation2 + $0x4] ss:$8 sm:$0xf] %vm2866_vm0, %v114_v35  ;;  %v121_v38 = vld [vmem:[%s120_s20] sm:$0xf]  ;;  %s2110_s2 = sld [smem:[#allocation3 + $0x9]] }
  0x57   :  { %736 = vmatpush1.bf16.msra.mxu0 %v2843_v17  ;;  %777 = vmatpush1.bf16.msra.mxu1 %v2872_v25  ;;  %s2105_s21 = sshll.u32 %s2883_s15, 2  ;;  %v2914_v39 = vld [vmem:[#allocation8 + $0xec] ss:$16 sps:$4 sm:$0xff]   ;;  %123 = vst.msk [vmem:[#allocation2 + $0x5] ss:$8 sm:$0xf] %vm2866_vm0, %v121_v38 }
  0x58   :  { %737 = vmatprep.subr.bf16.mxu0 %v2846_v18  ;;  %778 = vmatprep.subr.bf16.mxu1 %v2877_v26  ;;  %s127_s23 = scalar_lea.vmem [#allocation7], %s2105_s21  ;;  %s2112_s25 = sld [smem:[#allocation3 + $0xa]]  ;;  %vm2698_vm2 = vmmov 0  }
  0x59   :  { %s2107_s22 = sshll.u32 %s2106_s17, 2  ;;  %v128_v40 = vld [vmem:[%s127_s23] sm:$0xf]  ;;  %s2114_s5 = sld [smem:[#allocation3 + $0xb]] }
  0x5a   :  { %130 = vst.msk [vmem:[#allocation2 + $0x6] ss:$8 sm:$0xf] %vm2866_vm0, %v128_v40  ;;  %s134_s1 = scalar_lea.vmem [#allocation7], %s2107_s22  ;;  %s2116_s26 = sld [smem:[#allocation3 + $0xc]] }
  0x5b   :  { %738 = vmatpush1.bf16.msra.mxu0 %v2861_v22  ;;  %779 = vmatpush1.bf16.msra.mxu1 %v2897_v33  ;;  %v135_v41 = vld [vmem:[%s134_s1] sm:$0xf]  ;;  %s2118_s27 = sld [smem:[#allocation3 + $0xd]]  ;;  %s2120_s28 = sld [smem:[#allocation3 + $0xe]] }
  0x5c   :  { %739 = vmatprep.subr.bf16.mxu0 %v2864_v23  ;;  %780 = vmatprep.subr.bf16.mxu1 %v2900_v34  ;;  %137 = vst.msk [vmem:[#allocation2 + $0x7] ss:$8 sm:$0xf] %vm2866_vm0, %v135_v41  ;;  %s2966_s29 = sld [smem:[#allocation3 + $0xf]]  ;;  %s2109_s30 = sshll.u32 %s2108_s24, 2 }
  0x5d   :  { %s2111_s8 = sshll.u32 %s2110_s2, 2  ;;  %s141_s9 = scalar_lea.vmem [#allocation7], %s2109_s30 }
  0x5e   :  { %v142_v43 = vld [vmem:[%s141_s9] sm:$0xf]  ;;  %s148_s10 = scalar_lea.vmem [#allocation7], %s2111_s8  ;;  %s2113_s0 = sshll.u32 %s2112_s25, 2 }
  0x5f   :  { %740 = vmatpush1.bf16.msra.mxu0 %v2886_v31  ;;  %781 = vmatpush1.bf16.msra.mxu1 %v2910_v37  ;;  %v149_v44 = vld [vmem:[%s148_s10] sm:$0xf]  ;;  %s2115_s11 = sshll.u32 %s2114_s5, 2  ;;  %144 = vst.msk [vmem:[#allocation2 + $0x20] ss:$8 sm:$0xf] %vm2866_vm0, %v142_v43 }
  0x60   :  { %741 = vmatprep.subr.bf16.mxu0 %v2894_v32  ;;  %782 = vmatprep.subr.bf16.mxu1 %v2914_v39  ;;  %151 = vst.msk [vmem:[#allocation2 + $0x21] ss:$8 sm:$0xf] %vm2866_vm0, %v149_v44  ;;  %s155_s12 = scalar_lea.vmem [#allocation7], %s2113_s0  ;;  %s162_s13 = scalar_lea.vmem [#allocation7], %s2115_s11 }
  0x61   :  { %v156_v45 = vld [vmem:[%s155_s12] sm:$0xf]  ;;  %s2117_s14 = sshll.u32 %s2116_s26, 2  ;;  %s2119_s15 = sshll.u32 %s2118_s27, 2 }
  0x62   :  { %v163_v46 = vld [vmem:[%s162_s13] sm:$0xf]  ;;  %158 = vst.msk [vmem:[#allocation2 + $0x22] ss:$8 sm:$0xf] %vm2866_vm0, %v156_v45  ;;  %s169_s16 = scalar_lea.vmem [#allocation7], %s2117_s14 }
  0x63   :  { %742 = vmatpush1.bf16.msra.mxu0 %v2906_v36  ;;  %783 = vmatpush1.bf16.msra.mxu1 %v2922_v42  ;;  %165 = vst.msk [vmem:[#allocation2 + $0x23] ss:$8 sm:$0xf] %vm2866_vm0, %v163_v46  ;;  %v170_v47 = vld [vmem:[%s169_s16] sm:$0xf]  ;;  %s176_s17 = scalar_lea.vmem [#allocation7], %s2119_s15 }
  0x64   :  { %860 = vmatprep.subr.bf16.mxu0 %v2789_v0  ;;  %901 = vmatprep.subr.bf16.mxu1 %v2804_v6  ;;  %v177_v48 = vld [vmem:[%s176_s17] sm:$0xf]  ;;  %s2121_s18 = sshll.u32 %s2120_s28, 2  ;;  %s2123_s19 = sshll.u32 %s2966_s29, 2  ;;  %v532_v52 = vld [vmem:[#allocation2 + $0x8] sm:$0xff]  ;;  %v534_v61 = vld [vmem:[#allocation2 + $0x18] sm:$0xff] }
  0x65   :  { %172 = vst.msk [vmem:[#allocation2 + $0x24] ss:$8 sm:$0xf] %vm2866_vm0, %v170_v47  ;;  %179 = vst.msk [vmem:[#allocation2 + $0x25] ss:$8 sm:$0xf] %vm2866_vm0, %v177_v48 }
  0x66   :  { %760 = vmatmul.mubr.bf16.vlgmr.msra.gmra.mrb[0].mxu0 %v2696_v2  ;;  %801 = vmatmul.mubr.bf16.vlgmr.msra.gmra.mrb[0].mxu1 %v2696_v2  ;;  %s183_s20 = scalar_lea.vmem [#allocation7], %s2121_s18  ;;  %s190_s21 = scalar_lea.vmem [#allocation7], %s2123_s19  ;;  %v531_v51 = vld [vmem:[#allocation2] sm:$0xff]  ;;  %v533_v29 = vld [vmem:[#allocation2 + $0x10] sm:$0xff] }
  0x67   :  { %861 = vmatpush1.bf16.msra.mxu0 %v2791_v1  ;;  %892 = vmatprep.mubr.bf16.mxu0 %v2696_v2  ;;  %v184_v49 = vld [vmem:[%s183_s20] sm:$0xf]  ;;  %s2124_s22 = sld [smem:[#allocation3 + $0x10]]  ;;  %s2126_s23 = sld [smem:[#allocation3 + $0x11]] }
  0x68   :  { %862 = vmatprep.subr.bf16.mxu0 %v2796_v3  ;;  %902 = vmatpush1.bf16.msra.mxu1 %v2810_v8  ;;  %v191_v50 = vld [vmem:[%s190_s21] sm:$0xf]  ;;  %186 = vst.msk [vmem:[#allocation2 + $0x26] ss:$8 sm:$0xf] %vm2866_vm0, %v184_v49  ;;  %s2128_s1 = sld [smem:[#allocation3 + $0x12]] }
  0x69   :  { %903 = vmatprep.subr.bf16.mxu1 %v2820_v10  ;;  %933 = vmatprep.mubr.bf16.mxu1 %v2696_v2  ;;  %193 = vst.msk [vmem:[#allocation2 + $0x27] ss:$8 sm:$0xf] %vm2866_vm0, %v191_v50  ;;  %s2130_s24 = sld [smem:[#allocation3 + $0x13]]  ;;  %s2132_s2 = sld [smem:[#allocation3 + $0x14]] }
  0x6a   :  { %s2134_s25 = sld [smem:[#allocation3 + $0x15]]  ;;  %s2136_s5 = sld [smem:[#allocation3 + $0x16]] }
  0x6b   :  { %863 = vmatpush1.bf16.msra.mxu0 %v2799_v4  ;;  %s3026_s26 = sld [smem:[#allocation3 + $0x17]]  ;;  %s2140_s19 = sld [smem:[#allocation3 + $0x18]] }
  0x6c   :  { %864 = vmatprep.subr.bf16.mxu0 %v2802_v5  ;;  %904 = vmatpush1.bf16.msra.mxu1 %v2824_v11  ;;  %s2142_s20 = sld [smem:[#allocation3 + $0x19]]  ;;  %s2144_s21 = sld [smem:[#allocation3 + $0x1a]] }
  0x6d   :  { %905 = vmatprep.subr.bf16.mxu1 %v2834_v14  ;;  %s2125_s27 = sshll.u32 %s2124_s22, 2  ;;  %s2127_s28 = sshll.u32 %s2126_s23, 2 }
  0x6e   :  { %s197_s29 = scalar_lea.vmem [#allocation7], %s2125_s27  ;;  %s204_s30 = scalar_lea.vmem [#allocation7], %s2127_s28 }
  0x6f   :  { %865 = vmatpush1.bf16.msra.mxu0 %v2808_v7  ;;  %s2129_s8 = sshll.u32 %s2128_s1, 2  ;;  %s2131_s9 = sshll.u32 %s2130_s24, 2 }
  0x70   :  { %866 = vmatprep.subr.bf16.mxu0 %v2813_v9  ;;  %906 = vmatpush1.bf16.msra.mxu1 %v2838_v15  ;;  %s211_s10 = scalar_lea.vmem [#allocation7], %s2129_s8  ;;  %s218_s0 = scalar_lea.vmem [#allocation7], %s2131_s9 }
  0x71   :  { %907 = vmatprep.subr.bf16.mxu1 %v2841_v16  ;;  %s2133_s11 = sshll.u32 %s2132_s2, 2  ;;  %s2135_s12 = sshll.u32 %s2134_s25, 2 }
  0x72   :  { %s225_s13 = scalar_lea.vmem [#allocation7], %s2133_s11  ;;  %s232_s14 = scalar_lea.vmem [#allocation7], %s2135_s12 }
  0x73   :  { %867 = vmatpush1.bf16.msra.mxu0 %v2830_v12  ;;  %s2137_s15 = sshll.u32 %s2136_s5, 2  ;;  %s2139_s16 = sshll.u32 %s3026_s26, 2 }
  0x74   :  { %868 = vmatprep.subr.bf16.mxu0 %v2832_v13  ;;  %908 = vmatpush1.bf16.msra.mxu1 %v2852_v20  ;;  %s239_s17 = scalar_lea.vmem [#allocation7], %s2137_s15  ;;  %s246_s18 = scalar_lea.vmem [#allocation7], %s2139_s16 }
  0x75   :  { %909 = vmatprep.subr.bf16.mxu1 %v2857_v21  ;;  %s2146_s22 = sld [smem:[#allocation3 + $0x1b]]  ;;  %s2148_s23 = sld [smem:[#allocation3 + $0x1c]] }
  0x76   :  { %s2150_s1 = sld [smem:[#allocation3 + $0x1d]]  ;;  %s2152_s24 = sld [smem:[#allocation3 + $0x1e]] }
  0x77   :  { %869 = vmatpush1.bf16.msra.mxu0 %v2843_v17  ;;  %s3094_s2 = sld [smem:[#allocation3 + $0x1f]]  ;;  %s2141_s25 = sshll.u32 %s2140_s19, 2 }
  0x78   :  { %870 = vmatprep.subr.bf16.mxu0 %v2846_v18  ;;  %910 = vmatpush1.bf16.msra.mxu1 %v2872_v25  ;;  %s2143_s5 = sshll.u32 %s2142_s20, 2  ;;  %s253_s26 = scalar_lea.vmem [#allocation7], %s2141_s25 }
  0x79   :  { %911 = vmatprep.subr.bf16.mxu1 %v2877_v26  ;;  %s260_s27 = scalar_lea.vmem [#allocation7], %s2143_s5  ;;  %s2145_s28 = sshll.u32 %s2144_s21, 2 }
  0x7a   :  { %s2156_s16 = sld [smem:[#allocation3 + $0x20]]  ;;  %s2162_s19 = sld [smem:[#allocation3 + $0x23]] }
  0x7b   :  { %871 = vmatpush1.bf16.msra.mxu0 %v2861_v22  ;;  %s2149_s9 = sshll.u32 %s2148_s23, 2  ;;  %s2164_s20 = sld [smem:[#allocation3 + $0x24]] }
  0x7c   :  { %872 = vmatprep.subr.bf16.mxu0 %v2864_v23  ;;  %912 = vmatpush1.bf16.msra.mxu1 %v2897_v33  ;;  %s2153_s12 = sshll.u32 %s2152_s24, 2  ;;  %s2166_s21 = sld [smem:[#allocation3 + $0x25]] }
  0x7d   :  { %913 = vmatprep.subr.bf16.mxu1 %v2900_v34  ;;  %s3187_s23 = sld [smem:[#allocation3 + $0x27]] }
  0x7f   :  { %873 = vmatpush1.bf16.msra.mxu0 %v2886_v31 }
  0x80   :  { %874 = vmatprep.subr.bf16.mxu0 %v2894_v32  ;;  %914 = vmatpush1.bf16.msra.mxu1 %v2910_v37 }
  0x81   :  { %915 = vmatprep.subr.bf16.mxu1 %v2914_v39 }
  0x83   :  { %875 = vmatpush1.bf16.msra.mxu0 %v2906_v36 }
  0x84   :  { %992 = vmatprep.subr.bf16.mxu0 %v2789_v0  ;;  %916 = vmatpush1.bf16.msra.mxu1 %v2922_v42 }
  0x85   :  { %1033 = vmatprep.subr.bf16.mxu1 %v2804_v6 }
 0x139   :  { %v761_v53 = vpop.f32.mrb[0].mxu0  ;;  %v802_v62 = vpop.f32.mrb[0].mxu1 }
 0x13a   :  { %v809_v54 = vadd.f32 %v761_v53, %v531_v51  ;;  %v763_v55 = vpop.f32.mrb[1].mxu0  ;;  %v804_v63 = vpop.f32.mrb[1].mxu1  ;;  %v811_v35 = vadd.f32 %v802_v62, %v533_v29  ;;  %v240_v62 = vld [vmem:[%s239_s17] sm:$0xf]  ;;  %s2158_s17 = sld [smem:[#allocation3 + $0x21]] }
 0x13b   :  { %v810_v56 = vadd.f32 %v763_v55, %v532_v52  ;;  %v765_v57 = vpop.f32.mrb[2].mxu0  ;;  %v812_v19 = vadd.f32 %v804_v63, %v534_v61  ;;  %v806_v27 = vpop.f32.mrb[2].mxu1  ;;  %v233_v61 = vld [vmem:[%s232_s14] sm:$0xf]  ;;  %s295_s14 = scalar_lea.vmem [#allocation7], %s2153_s12 }
 0x13c   :  { %v2252_v58 = vmul.f32 -1.442695, %v809_v54  ;;  %v766_v59 = vpop.f32.mrb[3].mxu0  ;;  %v807_v28 = vpop.f32.mrb[3].mxu1  ;;  %v205_v57 = vld [vmem:[%s204_s30] sm:$0xf] }
 0x13d   :  { %v2253_v60 = vmul.f32 -1.442695, %v810_v56  ;;  %v2254_v30 = vmul.f32 -1.442695, %v812_v19  ;;  %v198_v56 = vld [vmem:[%s197_s29] sm:$0xf] }
 0x13e   :  { %2418 = vpow2.f32 %v2252_v58  ;;  %200 = vst.msk [vmem:[#allocation2 + $0x40] ss:$8 sm:$0xf] %vm2866_vm0, %v198_v56  ;;  %207 = vst.msk [vmem:[#allocation2 + $0x41] ss:$8 sm:$0xf] %vm2866_vm0, %v205_v57 }
 0x13f   :  { %2420 = vpow2.f32 %v2253_v60  ;;  %v212_v58 = vld [vmem:[%s211_s10] sm:$0xf]  ;;  %235 = vst.msk [vmem:[#allocation2 + $0x45] ss:$8 sm:$0xf] %vm2866_vm0, %v233_v61  ;;  %v856_v27 = vld [vmem:[#allocation2 + $0x28] sm:$0xff] }
 0x140   :  { %2422 = vpow2.f32 %v2254_v30  ;;  %v219_v59 = vld [vmem:[%s218_s0] sm:$0xf]  ;;  %214 = vst.msk [vmem:[#allocation2 + $0x42] ss:$8 sm:$0xf] %vm2866_vm0, %v212_v58  ;;  %s2147_s29 = sshll.u32 %s2146_s22, 2 }
 0x141   :  { %2424 = vtanh.f32 %v811_v35  ;;  %221 = vst.msk [vmem:[#allocation2 + $0x43] ss:$8 sm:$0xf] %vm2866_vm0, %v219_v59  ;;  %v226_v60 = vld [vmem:[%s225_s13] sm:$0xf]  ;;  %s267_s30 = scalar_lea.vmem [#allocation7], %s2145_s28 }
 0x142   :  { %228 = vst.msk [vmem:[#allocation2 + $0x44] ss:$8 sm:$0xf] %vm2866_vm0, %v226_v60  ;;  %v247_v63 = vld [vmem:[%s246_s18] sm:$0xf]  ;;  %s274_s8 = scalar_lea.vmem [#allocation7], %s2147_s29 }
 0x143   :  { %242 = vst.msk [vmem:[#allocation2 + $0x46] ss:$8 sm:$0xf] %vm2866_vm0, %v240_v62  ;;  %249 = vst.msk [vmem:[#allocation2 + $0x47] ss:$8 sm:$0xf] %vm2866_vm0, %v247_v63 }
 0x144   :  { %v855_v19 = vld [vmem:[#allocation2 + $0x20] sm:$0xff]  ;;  %s2151_s10 = sshll.u32 %s2150_s1, 2  ;;  %s281_s0 = scalar_lea.vmem [#allocation7], %s2149_s9 }
 0x145   :  { %s288_s11 = scalar_lea.vmem [#allocation7], %s2151_s10  ;;  %s2155_s13 = sshll.u32 %s3094_s2, 2 }
 0x146   :  { %s302_s15 = scalar_lea.vmem [#allocation7], %s2155_s13  ;;  %s2160_s18 = sld [smem:[#allocation3 + $0x22]] }
 0x147   :  { %s2168_s22 = sld [smem:[#allocation3 + $0x26]]  ;;  %s2157_s1 = sshll.u32 %s2156_s16, 2 }
 0x148   :  { %v2419_v38 = vpop.eup %2418  ;;  %s2159_s24 = sshll.u32 %s2158_s17, 2  ;;  %s309_s2 = scalar_lea.vmem [#allocation7], %s2157_s1 }
 0x149   :  { %v2421_v40 = vpop.eup %2420  ;;  %v816_v41 = vadd.f32 1.0, %v2419_v38  ;;  %s316_s25 = scalar_lea.vmem [#allocation7], %s2159_s24  ;;  %s2165_s29 = sshll.u32 %s2164_s20, 2 }
 0x14a   :  { %v822_v43 = vadd.f32 1.0, %v2421_v40  ;;  %v2423_v44 = vpop.eup %2422  ;;  %s2172_s13 = sld [smem:[#allocation3 + $0x28]]  ;;  %s2178_s16 = sld [smem:[#allocation3 + $0x2b]] }
 0x14b   :  { %2426 = vrcp.f32 %v816_v41  ;;  %v2425_v45 = vpop.eup %2424  ;;  %v829_v47 = vadd.f32 1.0, %v2423_v44  ;;  %s2180_s17 = sld [smem:[#allocation3 + $0x2c]]  ;;  %s3288_s20 = sld [smem:[#allocation3 + $0x2f]] }
 0x14c   :  { %2428 = vrcp.f32 %v822_v43  ;;  %s2161_s5 = sshll.u32 %s2160_s18, 2  ;;  %s2182_s18 = sld [smem:[#allocation3 + $0x2d]] }
 0x14d   :  { %2430 = vrcp.f32 %v829_v47  ;;  %s2169_s10 = sshll.u32 %s2168_s22, 2 }
 0x155   :  { %v2427_v46 = vpop.eup %2426 }
 0x156   :  { %v2429_v48 = vpop.eup %2428  ;;  %v833_v49 = vmul.f32 %v2427_v46, %v2425_v45 }
 0x157   :  { %v832_v50 = vmul.f32 0.0, %v2429_v48  ;;  %v2431_v52 = vpop.eup %2430  ;;  %v858_v48 = vld [vmem:[#allocation2 + $0x38] sm:$0xff] }
 0x159   :  { %v2985_v51 = vadd.f32 %v833_v49, %v832_v50  ;;  %v857_v50 = vld [vmem:[#allocation2 + $0x30] sm:$0xff] }
 0x15b   :  { %2432 = vtanh.f32 %v2985_v51 }
 0x165   :  { %v2433_v53 = vpop.eup %2432 }
 0x166   :  { %v2988_v54 = vmul.f32 %v2433_v53, %v2431_v52 }
 0x168   :  { %v859_v55 = vpack.c.bf16 %v2988_v54, %v2988_v54 }
 0x16a   :  { %893 = vmatmul.mubr.bf16.vlgmr.msra.gmra.mrb[4].mxu0 %v859_v55  ;;  %934 = vmatmul.mubr.bf16.vlgmr.msra.gmra.mrb[4].mxu1 %v859_v55 }
 0x16b   :  { %993 = vmatpush1.bf16.msra.mxu0 %v2791_v1  ;;  %1034 = vmatpush1.bf16.msra.mxu1 %v2810_v8 }
 0x16c   :  { %994 = vmatprep.subr.bf16.mxu0 %v2796_v3  ;;  %1035 = vmatprep.subr.bf16.mxu1 %v2820_v10 }
 0x16d   :  { %1024 = vmatprep.mubr.bf16.mxu0 %v2696_v2  ;;  %1065 = vmatprep.mubr.bf16.mxu1 %v2696_v2 }
 0x16f   :  { %995 = vmatpush1.bf16.msra.mxu0 %v2799_v4  ;;  %1036 = vmatpush1.bf16.msra.mxu1 %v2824_v11 }
 0x170   :  { %996 = vmatprep.subr.bf16.mxu0 %v2802_v5  ;;  %1037 = vmatprep.subr.bf16.mxu1 %v2834_v14 }
 0x173   :  { %997 = vmatpush1.bf16.msra.mxu0 %v2808_v7  ;;  %1038 = vmatpush1.bf16.msra.mxu1 %v2838_v15 }
 0x174   :  { %998 = vmatprep.subr.bf16.mxu0 %v2813_v9  ;;  %1039 = vmatprep.subr.bf16.mxu1 %v2841_v16 }
 0x177   :  { %999 = vmatpush1.bf16.msra.mxu0 %v2830_v12  ;;  %1040 = vmatpush1.bf16.msra.mxu1 %v2852_v20 }
 0x178   :  { %1000 = vmatprep.subr.bf16.mxu0 %v2832_v13  ;;  %1041 = vmatprep.subr.bf16.mxu1 %v2857_v21 }
 0x17b   :  { %1001 = vmatpush1.bf16.msra.mxu0 %v2843_v17  ;;  %1042 = vmatpush1.bf16.msra.mxu1 %v2872_v25 }
 0x17c   :  { %1002 = vmatprep.subr.bf16.mxu0 %v2846_v18  ;;  %1043 = vmatprep.subr.bf16.mxu1 %v2877_v26 }
 0x17f   :  { %1003 = vmatpush1.bf16.msra.mxu0 %v2861_v22  ;;  %1044 = vmatpush1.bf16.msra.mxu1 %v2897_v33 }
 0x180   :  { %1004 = vmatprep.subr.bf16.mxu0 %v2864_v23  ;;  %1045 = vmatprep.subr.bf16.mxu1 %v2900_v34 }
 0x183   :  { %1005 = vmatpush1.bf16.msra.mxu0 %v2886_v31  ;;  %1046 = vmatpush1.bf16.msra.mxu1 %v2910_v37 }
 0x184   :  { %1006 = vmatprep.subr.bf16.mxu0 %v2894_v32  ;;  %1047 = vmatprep.subr.bf16.mxu1 %v2914_v39 }
 0x187   :  { %1007 = vmatpush1.bf16.msra.mxu0 %v2906_v36  ;;  %1048 = vmatpush1.bf16.msra.mxu1 %v2922_v42 }
 0x188   :  { %1124 = vmatprep.subr.bf16.mxu0 %v2789_v0  ;;  %1165 = vmatprep.subr.bf16.mxu1 %v2804_v6 }
 0x23d   :  { %v894_v28 = vpop.f32.mrb[4].mxu0  ;;  %v935_v29 = vpop.f32.mrb[4].mxu1 }
 0x23e   :  { %v942_v30 = vadd.f32 %v894_v28, %v855_v19  ;;  %v896_v35 = vpop.f32.mrb[5].mxu0  ;;  %v937_v38 = vpop.f32.mrb[5].mxu1  ;;  %v944_v53 = vadd.f32 %v935_v29, %v857_v50  ;;  %v846_v29 = vmul.f32 %v2988_v54, %v2988_v54 }
 0x23f   :  { %v943_v40 = vadd.f32 %v896_v35, %v856_v27  ;;  %v898_v41 = vpop.f32.mrb[6].mxu0  ;;  %v939_v43 = vpop.f32.mrb[6].mxu1  ;;  %v945_v49 = vadd.f32 %v937_v38, %v858_v48 }
 0x240   :  { %v2255_v44 = vmul.f32 -1.442695, %v942_v30  ;;  %v899_v45 = vpop.f32.mrb[7].mxu0  ;;  %v940_v46 = vpop.f32.mrb[7].mxu1  ;;  %v838_v30 = vsel %vm837_vm1, %v2988_v54, 0.0  ;;  %v847_v35 = vsel %vm837_vm1, %v846_v29, 0.0 }
 0x241   :  { %v2256_v47 = vmul.f32 -1.442695, %v943_v40  ;;  %v2257_v52 = vmul.f32 -1.442695, %v945_v49  ;;  %v839_v38 = vrot.slane %v838_v30, 4  ;;  %v848_v40 = vrot.slane %v847_v35, 4 }
 0x242   :  { %2434 = vpow2.f32 %v2255_v44 }
 0x243   :  { %2436 = vpow2.f32 %v2256_v47  ;;  %v840_v41 = vadd.f32 %v839_v38, %v838_v30  ;;  %v987_v30 = vld [vmem:[#allocation2 + $0x40] sm:$0xff] }
 0x244   :  { %2438 = vpow2.f32 %v2257_v52 }
 0x245   :  { %2440 = vtanh.f32 %v944_v53  ;;  %v841_v46 = vrot.slane %v840_v41, 2 }
 0x247   :  { %v842_v54 = vadd.f32 %v841_v46, %v840_v41 }
 0x24c   :  { %v2435_v55 = vpop.eup %2434 }
 0x24d   :  { %v2437_v56 = vpop.eup %2436  ;;  %v949_v57 = vadd.f32 1.0, %v2435_v55 }
 0x24e   :  { %v955_v58 = vadd.f32 1.0, %v2437_v56  ;;  %v2439_v59 = vpop.eup %2438 }
 0x24f   :  { %2442 = vrcp.f32 %v949_v57  ;;  %v2441_v60 = vpop.eup %2440  ;;  %v962_v19 = vadd.f32 1.0, %v2439_v59 }
 0x250   :  { %2444 = vrcp.f32 %v955_v58 }
 0x251   :  { %2446 = vrcp.f32 %v962_v19 }
 0x259   :  { %v2443_v61 = vpop.eup %2442 }
 0x25a   :  { %v2445_v62 = vpop.eup %2444  ;;  %v966_v63 = vmul.f32 %v2443_v61, %v2441_v60  ;;  %v843_v60 = vrot.slane %v842_v54, 1 }
 0x25b   :  { %v965_v27 = vmul.f32 %v2445_v62, %v2985_v51  ;;  %v2447_v43 = vpop.eup %2446  ;;  %v849_v51 = vadd.f32 %v848_v40, %v847_v35  ;;  %v988_v35 = vld [vmem:[#allocation2 + $0x48] sm:$0xff] }
 0x25d   :  { %v3046_v28 = vadd.f32 %v966_v63, %v965_v27  ;;  %v850_v50 = vrot.slane %v849_v51, 2  ;;  %v844_v63 = vadd.f32 %v843_v60, %v842_v54  ;;  %v989_v54 = vld [vmem:[#allocation2 + $0x50] sm:$0xff] }
 0x25f   :  { %2448 = vtanh.f32 %v3046_v28  ;;  %v851_v57 = vadd.f32 %v850_v50, %v849_v51 }
 0x269   :  { %v2449_v44 = vpop.eup %2448 }
 0x26a   :  { %v969_v45 = vmul.f32 %v2449_v44, %v2447_v43 }
 0x26c   :  { %v970_v47 = vsel %vm837_vm1, %v969_v45, 0.0  ;;  %v978_v48 = vmul.f32 %v969_v45, %v969_v45  ;;  %v991_v49 = vpack.c.bf16 %v969_v45, %v969_v45 }
 0x26d   :  { %v971_v52 = vrot.slane %v970_v47, 4 }
 0x26e   :  { %v979_v53 = vsel %vm837_vm1, %v978_v48, 0.0  ;;  %1025 = vmatmul.mubr.bf16.vlgmr.msra.gmra.mrb[8].mxu0 %v991_v49  ;;  %1066 = vmatmul.mubr.bf16.vlgmr.msra.gmra.mrb[8].mxu1 %v991_v49 }
 0x26f   :  { %v972_v55 = vadd.f32 %v971_v52, %v970_v47  ;;  %v980_v56 = vrot.slane %v979_v53, 4  ;;  %1125 = vmatpush1.bf16.msra.mxu0 %v2791_v1  ;;  %1166 = vmatpush1.bf16.msra.mxu1 %v2810_v8  ;;  %v852_v1 = vrot.slane %v851_v57, 1  ;;  %v990_v52 = vld [vmem:[#allocation2 + $0x58] sm:$0xff] }
 0x270   :  { %1126 = vmatprep.subr.bf16.mxu0 %v2796_v3  ;;  %1167 = vmatprep.subr.bf16.mxu1 %v2820_v10 }
 0x271   :  { %v973_v58 = vrot.slane %v972_v55, 2  ;;  %v981_v59 = vadd.f32 %v980_v56, %v979_v53  ;;  %1156 = vmatprep.mubr.bf16.mxu0 %v2696_v2  ;;  %1197 = vmatprep.mubr.bf16.mxu1 %v2696_v2 }
 0x273   :  { %v974_v61 = vadd.f32 %v973_v58, %v972_v55  ;;  %v982_v62 = vrot.slane %v981_v59, 2  ;;  %1127 = vmatpush1.bf16.msra.mxu0 %v2799_v4  ;;  %1168 = vmatpush1.bf16.msra.mxu1 %v2824_v11  ;;  %v853_v4 = vadd.f32 %v852_v1, %v851_v57 }
 0x274   :  { %1128 = vmatprep.subr.bf16.mxu0 %v2802_v5  ;;  %1169 = vmatprep.subr.bf16.mxu1 %v2834_v14 }
 0x275   :  { %v975_v3 = vrot.slane %v974_v61, 1  ;;  %v983_v8 = vadd.f32 %v982_v62, %v981_v59 }
 0x277   :  { %v976_v19 = vadd.f32 %v975_v3, %v974_v61  ;;  %v984_v27 = vrot.slane %v983_v8, 1  ;;  %1129 = vmatpush1.bf16.msra.mxu0 %v2808_v7  ;;  %1170 = vmatpush1.bf16.msra.mxu1 %v2838_v15  ;;  %v254_v7 = vld [vmem:[%s253_s26] sm:$0xf]  ;;  %s2163_s26 = sshll.u32 %s2162_s19, 2  ;;  %s2184_s19 = sld [smem:[#allocation3 + $0x2e]] }
 0x278   :  { %1130 = vmatprep.subr.bf16.mxu0 %v2813_v9  ;;  %1171 = vmatprep.subr.bf16.mxu1 %v2841_v16  ;;  %v261_v9 = vld [vmem:[%s260_s27] sm:$0xf]  ;;  %256 = vst.msk [vmem:[#allocation2 + $0x60] ss:$8 sm:$0xf] %vm2866_vm0, %v254_v7  ;;  %s323_s27 = scalar_lea.vmem [#allocation7], %s2161_s5 }
 0x279   :  { %v3070_v11 = vadd.f32 %v976_v19, %v844_v63  ;;  %v985_v5 = vadd.f32 %v984_v27, %v983_v8  ;;  %263 = vst.msk [vmem:[#allocation2 + $0x61] ss:$8 sm:$0xf] %vm2866_vm0, %v261_v9  ;;  %s330_s28 = scalar_lea.vmem [#allocation7], %s2163_s26  ;;  %s2181_s26 = sshll.u32 %s2180_s17, 2 }
 0x27a   :  { %s3353_s17 = sld [smem:[#allocation3 + $0x37]] }
 0x27b   :  { %v3072_v29 = vadd.f32 %v985_v5, %v853_v4  ;;  %1131 = vmatpush1.bf16.msra.mxu0 %v2830_v12  ;;  %1172 = vmatpush1.bf16.msra.mxu1 %v2852_v20  ;;  %v282_v12 = vld [vmem:[%s281_s0] sm:$0xf]  ;;  %s2171_s0 = sshll.u32 %s3187_s23, 2 }
 0x27c   :  { %1132 = vmatprep.subr.bf16.mxu0 %v2832_v13  ;;  %1173 = vmatprep.subr.bf16.mxu1 %v2857_v21  ;;  %v289_v13 = vld [vmem:[%s288_s11] sm:$0xf]  ;;  %284 = vst.msk [vmem:[#allocation2 + $0x64] ss:$8 sm:$0xf] %vm2866_vm0, %v282_v12  ;;  %s351_s11 = scalar_lea.vmem [#allocation7], %s2169_s10 }
 0x27d   :  { %291 = vst.msk [vmem:[#allocation2 + $0x65] ss:$8 sm:$0xf] %vm2866_vm0, %v289_v13  ;;  %s358_s12 = scalar_lea.vmem [#allocation7], %s2171_s0  ;;  %s2188_s0 = sld [smem:[#allocation3 + $0x30]] }
 0x27f   :  { %1133 = vmatpush1.bf16.msra.mxu0 %v2843_v17  ;;  %1174 = vmatpush1.bf16.msra.mxu1 %v2872_v25  ;;  %v296_v17 = vld [vmem:[%s295_s14] sm:$0xf]  ;;  %s2174_s14 = sld [smem:[#allocation3 + $0x29]] }
 0x280   :  { %1134 = vmatprep.subr.bf16.mxu0 %v2846_v18  ;;  %1175 = vmatprep.subr.bf16.mxu1 %v2877_v26  ;;  %v303_v18 = vld [vmem:[%s302_s15] sm:$0xf]  ;;  %298 = vst.msk [vmem:[#allocation2 + $0x66] ss:$8 sm:$0xf] %vm2866_vm0, %v296_v17  ;;  %s2176_s15 = sld [smem:[#allocation3 + $0x2a]] }
 0x281   :  { %305 = vst.msk [vmem:[#allocation2 + $0x67] ss:$8 sm:$0xf] %vm2866_vm0, %v303_v18 }
 0x283   :  { %1135 = vmatpush1.bf16.msra.mxu0 %v2861_v22  ;;  %1176 = vmatpush1.bf16.msra.mxu1 %v2897_v33 }
 0x284   :  { %1136 = vmatprep.subr.bf16.mxu0 %v2864_v23  ;;  %1177 = vmatprep.subr.bf16.mxu1 %v2900_v34 }
 0x285   :  { %s2175_s22 = sshll.u32 %s2174_s14, 2  ;;  %s2196_s14 = sld [smem:[#allocation3 + $0x34]] }
 0x286   :  { %s372_s1 = scalar_lea.vmem [#allocation7], %s2175_s22  ;;  %s2177_s24 = sshll.u32 %s2176_s15, 2 }
 0x287   :  { %1137 = vmatpush1.bf16.msra.mxu0 %v2886_v31  ;;  %1178 = vmatpush1.bf16.msra.mxu1 %v2910_v37  ;;  %s2198_s15 = sld [smem:[#allocation3 + $0x35]] }
 0x288   :  { %1138 = vmatprep.subr.bf16.mxu0 %v2894_v32  ;;  %1179 = vmatprep.subr.bf16.mxu1 %v2914_v39 }
 0x28b   :  { %1139 = vmatpush1.bf16.msra.mxu0 %v2906_v36  ;;  %1180 = vmatpush1.bf16.msra.mxu1 %v2922_v42 }
 0x28c   :  { %1256 = vmatprep.subr.bf16.mxu0 %v2789_v0  ;;  %1297 = vmatprep.subr.bf16.mxu1 %v2804_v6  ;;  %v268_v0 = vld [vmem:[%s267_s30] sm:$0xf]  ;;  %s2167_s30 = sshll.u32 %s2166_s21, 2  ;;  %s2173_s21 = sshll.u32 %s2172_s13, 2 }
 0x28d   :  { %v275_v6 = vld [vmem:[%s274_s8] sm:$0xf]  ;;  %270 = vst.msk [vmem:[#allocation2 + $0x62] ss:$8 sm:$0xf] %vm2866_vm0, %v268_v0  ;;  %s337_s8 = scalar_lea.vmem [#allocation7], %s2165_s29 }
 0x28e   :  { %277 = vst.msk [vmem:[#allocation2 + $0x63] ss:$8 sm:$0xf] %vm2866_vm0, %v275_v6  ;;  %s344_s9 = scalar_lea.vmem [#allocation7], %s2167_s30  ;;  %s365_s23 = scalar_lea.vmem [#allocation7], %s2173_s21 }
 0x28f   :  { %s2185_s30 = sshll.u32 %s2184_s19, 2  ;;  %s2194_s13 = sld [smem:[#allocation3 + $0x33]] }
 0x341   :  { %v1026_v38 = vpop.f32.mrb[8].mxu0  ;;  %v1067_v40 = vpop.f32.mrb[8].mxu1 }
 0x342   :  { %v1074_v41 = vadd.f32 %v1026_v38, %v987_v30  ;;  %v1028_v43 = vpop.f32.mrb[9].mxu0  ;;  %v1069_v44 = vpop.f32.mrb[9].mxu1  ;;  %v1076_v56 = vadd.f32 %v1067_v40, %v989_v54  ;;  %v3122_v30 = vld [vmem:[#allocation8 + $0x8] ss:$16 sps:$4 sm:$0xff]   ;;  %v3155_v54 = vld [vmem:[#allocation8 + $0x60] ss:$16 sps:$4 sm:$0xff]  }
 0x343   :  { %v1075_v51 = vadd.f32 %v1028_v43, %v988_v35  ;;  %v1030_v45 = vpop.f32.mrb[10].mxu0  ;;  %v1071_v46 = vpop.f32.mrb[10].mxu1  ;;  %v1077_v53 = vadd.f32 %v1069_v44, %v990_v52  ;;  %v3125_v35 = vld [vmem:[#allocation8 + $0x24] ss:$16 sps:$4 sm:$0xff]   ;;  %v3131_v44 = vld [vmem:[#allocation8 + $0x20] ss:$16 sps:$4 sm:$0xff]  }
 0x344   :  { %v2258_v47 = vmul.f32 -1.442695, %v1074_v41  ;;  %v1031_v48 = vpop.f32.mrb[11].mxu0  ;;  %v1072_v49 = vpop.f32.mrb[11].mxu1  ;;  %v3137_v45 = vld [vmem:[#allocation8 + $0x44] ss:$16 sps:$4 sm:$0xff]  }
 0x345   :  { %v2259_v50 = vmul.f32 -1.442695, %v1075_v51  ;;  %v2260_v55 = vmul.f32 -1.442695, %v1077_v53  ;;  %v3134_v51 = vld [vmem:[#allocation8 + $0x28] ss:$16 sps:$4 sm:$0xff]  }
 0x346   :  { %2450 = vpow2.f32 %v2258_v47  ;;  %v3141_v49 = vld [vmem:[#allocation8 + $0x40] ss:$16 sps:$4 sm:$0xff]  }
 0x347   :  { %2452 = vpow2.f32 %v2259_v50  ;;  %v3145_v50 = vld [vmem:[#allocation8 + $0x64] ss:$16 sps:$4 sm:$0xff]  }
 0x348   :  { %2454 = vpow2.f32 %v2260_v55 }
 0x349   :  { %2456 = vtanh.f32 %v1076_v56 }
 0x350   :  { %v2451_v57 = vpop.eup %2450 }
 0x351   :  { %v2453_v58 = vpop.eup %2452  ;;  %v1081_v59 = vadd.f32 1.0, %v2451_v57 }
 0x352   :  { %v1087_v60 = vadd.f32 1.0, %v2453_v58  ;;  %v2455_v61 = vpop.eup %2454 }
 0x353   :  { %2458 = vrcp.f32 %v1081_v59  ;;  %v2457_v62 = vpop.eup %2456  ;;  %v1094_v63 = vadd.f32 1.0, %v2455_v61 }
 0x354   :  { %2460 = vrcp.f32 %v1087_v60 }
 0x355   :  { %2462 = vrcp.f32 %v1094_v63  ;;  %v1121_v63 = vld [vmem:[#allocation2 + $0x70] sm:$0xff] }
 0x35d   :  { %v2459_v1 = vpop.eup %2458 }
 0x35e   :  { %v2461_v3 = vpop.eup %2460  ;;  %v1098_v8 = vmul.f32 %v2459_v1, %v2457_v62 }
 0x35f   :  { %v1097_v19 = vmul.f32 %v2461_v3, %v3046_v28  ;;  %v2463_v4 = vpop.eup %2462  ;;  %v3119_v28 = vld [vmem:[#allocation8] ss:$16 sps:$4 sm:$0xff]   ;;  %v1122_v3 = vld [vmem:[#allocation2 + $0x78] sm:$0xff] }
 0x361   :  { %v3114_v27 = vadd.f32 %v1098_v8, %v1097_v19 }
 0x363   :  { %2464 = vtanh.f32 %v3114_v27 }
 0x36d   :  { %v2465_v5 = vpop.eup %2464 }
 0x36e   :  { %v1101_v7 = vmul.f32 %v2465_v5, %v2463_v4 }
 0x370   :  { %v1102_v9 = vsel %vm837_vm1, %v1101_v7, 0.0  ;;  %v1110_v0 = vmul.f32 %v1101_v7, %v1101_v7  ;;  %v1123_v6 = vpack.c.bf16 %v1101_v7, %v1101_v7 }
 0x371   :  { %v1103_v12 = vrot.slane %v1102_v9, 4 }
 0x372   :  { %v1111_v13 = vsel %vm837_vm1, %v1110_v0, 0.0  ;;  %1157 = vmatmul.mubr.bf16.vlgmr.msra.gmra.mrb[12].mxu0 %v1123_v6  ;;  %1198 = vmatmul.mubr.bf16.vlgmr.msra.gmra.mrb[12].mxu1 %v1123_v6 }
 0x373   :  { %v1104_v17 = vadd.f32 %v1103_v12, %v1102_v9  ;;  %v1112_v18 = vrot.slane %v1111_v13, 4  ;;  %1257 = vmatpush1.bf16.msra.mxu0 %v3119_v28  ;;  %1298 = vmatpush1.bf16.msra.mxu1 %v3122_v30 }
 0x374   :  { %1258 = vmatprep.subr.bf16.mxu0 %v3125_v35  ;;  %1299 = vmatprep.subr.bf16.mxu1 %v2820_v10 }
 0x375   :  { %v1105_v38 = vrot.slane %v1104_v17, 2  ;;  %v1113_v40 = vadd.f32 %v1112_v18, %v1111_v13  ;;  %1288 = vmatprep.mubr.bf16.mxu0 %v2696_v2  ;;  %1329 = vmatprep.mubr.bf16.mxu1 %v2696_v2 }
 0x377   :  { %v1106_v41 = vadd.f32 %v1105_v38, %v1104_v17  ;;  %v1114_v43 = vrot.slane %v1113_v40, 2  ;;  %1259 = vmatpush1.bf16.msra.mxu0 %v3131_v44  ;;  %1300 = vmatpush1.bf16.msra.mxu1 %v3134_v51 }
 0x378   :  { %1260 = vmatprep.subr.bf16.mxu0 %v3137_v45  ;;  %1301 = vmatprep.subr.bf16.mxu1 %v2834_v14 }
 0x379   :  { %v1107_v10 = vrot.slane %v1106_v41, 1  ;;  %v1115_v46 = vadd.f32 %v1114_v43, %v1113_v40 }
 0x37b   :  { %v1108_v47 = vadd.f32 %v1107_v10, %v1106_v41  ;;  %v1116_v48 = vrot.slane %v1115_v46, 1  ;;  %1261 = vmatpush1.bf16.msra.mxu0 %v3141_v49  ;;  %1302 = vmatpush1.bf16.msra.mxu1 %v2838_v15  ;;  %v3159_v15 = vld [vmem:[#allocation8 + $0x84] ss:$16 sps:$4 sm:$0xff]  }
 0x37c   :  { %1262 = vmatprep.subr.bf16.mxu0 %v3145_v50  ;;  %1303 = vmatprep.subr.bf16.mxu1 %v2841_v16  ;;  %v3163_v16 = vld [vmem:[#allocation8 + $0x80] ss:$16 sps:$4 sm:$0xff]  }
 0x37d   :  { %v3150_v52 = vadd.f32 %v1108_v47, %v3070_v11  ;;  %v1117_v14 = vadd.f32 %v1116_v48, %v1115_v46  ;;  %v3167_v11 = vld [vmem:[#allocation8 + $0xa4] ss:$16 sps:$4 sm:$0xff]  }
 0x37f   :  { %v3153_v53 = vadd.f32 %v1117_v14, %v3072_v29  ;;  %1263 = vmatpush1.bf16.msra.mxu0 %v3155_v54  ;;  %1304 = vmatpush1.bf16.msra.mxu1 %v2852_v20  ;;  %v3181_v20 = vld [vmem:[#allocation8 + $0x4] ss:$16 sps:$4 sm:$0xff]  }
 0x380   :  { %1264 = vmatprep.subr.bf16.mxu0 %v3159_v15  ;;  %1305 = vmatprep.subr.bf16.mxu1 %v2857_v21  ;;  %v3184_v21 = vld [vmem:[#allocation8 + $0xc] ss:$16 sps:$4 sm:$0xff]  }
 0x383   :  { %1265 = vmatpush1.bf16.msra.mxu0 %v3163_v16  ;;  %1306 = vmatpush1.bf16.msra.mxu1 %v2872_v25  ;;  %v324_v25 = vld [vmem:[%s323_s27] sm:$0xf]  ;;  %s2183_s27 = sshll.u32 %s2182_s18, 2  ;;  %s2189_s18 = sshll.u32 %s2188_s0, 2 }
 0x384   :  { %1266 = vmatprep.subr.bf16.mxu0 %v3167_v11  ;;  %1307 = vmatprep.subr.bf16.mxu1 %v2877_v26  ;;  %v331_v26 = vld [vmem:[%s330_s28] sm:$0xf]  ;;  %326 = vst.msk [vmem:[#allocation2 + $0x82] ss:$8 sm:$0xf] %vm2866_vm0, %v324_v25  ;;  %s393_s28 = scalar_lea.vmem [#allocation7], %s2181_s26 }
 0x385   :  { %333 = vst.msk [vmem:[#allocation2 + $0x83] ss:$8 sm:$0xf] %vm2866_vm0, %v331_v26  ;;  %s400_s29 = scalar_lea.vmem [#allocation7], %s2183_s27  ;;  %s2210_s0 = sld [smem:[#allocation3 + $0x3b]] }
 0x387   :  { %1267 = vmatpush1.bf16.msra.mxu0 %v2861_v22  ;;  %1308 = vmatpush1.bf16.msra.mxu1 %v2897_v33  ;;  %v310_v22 = vld [vmem:[%s309_s2] sm:$0xf]  ;;  %s2179_s2 = sshll.u32 %s2178_s16, 2  ;;  %s2200_s16 = sld [smem:[#allocation3 + $0x36]] }
 0x388   :  { %1268 = vmatprep.subr.bf16.mxu0 %v2864_v23  ;;  %1309 = vmatprep.subr.bf16.mxu1 %v2900_v34  ;;  %v317_v23 = vld [vmem:[%s316_s25] sm:$0xf]  ;;  %312 = vst.msk [vmem:[#allocation2 + $0x80] ss:$8 sm:$0xf] %vm2866_vm0, %v310_v22  ;;  %s379_s25 = scalar_lea.vmem [#allocation7], %s2177_s24 }
 0x389   :  { %319 = vst.msk [vmem:[#allocation2 + $0x81] ss:$8 sm:$0xf] %vm2866_vm0, %v317_v23  ;;  %v352_v33 = vld [vmem:[%s351_s11] sm:$0xf]  ;;  %s386_s5 = scalar_lea.vmem [#allocation7], %s2179_s2 }
 0x38a   :  { %v359_v34 = vld [vmem:[%s358_s12] sm:$0xf]  ;;  %354 = vst.msk [vmem:[#allocation2 + $0x86] ss:$8 sm:$0xf] %vm2866_vm0, %v352_v33  ;;  %s2190_s11 = sld [smem:[#allocation3 + $0x31]] }
 0x38b   :  { %1269 = vmatpush1.bf16.msra.mxu0 %v2886_v31  ;;  %1310 = vmatpush1.bf16.msra.mxu1 %v2910_v37  ;;  %v338_v31 = vld [vmem:[%s337_s8] sm:$0xf]  ;;  %361 = vst.msk [vmem:[#allocation2 + $0x87] ss:$8 sm:$0xf] %vm2866_vm0, %v359_v34  ;;  %v1120_v37 = vld [vmem:[#allocation2 + $0x68] sm:$0xff] }
 0x38c   :  { %1270 = vmatprep.subr.bf16.mxu0 %v2894_v32  ;;  %1311 = vmatprep.subr.bf16.mxu1 %v2914_v39  ;;  %v345_v32 = vld [vmem:[%s344_s9] sm:$0xf]  ;;  %340 = vst.msk [vmem:[#allocation2 + $0x84] ss:$8 sm:$0xf] %vm2866_vm0, %v338_v31  ;;  %s2187_s8 = sshll.u32 %s3288_s20, 2 }
 0x38d   :  { %347 = vst.msk [vmem:[#allocation2 + $0x85] ss:$8 sm:$0xf] %vm2866_vm0, %v345_v32  ;;  %s407_s9 = scalar_lea.vmem [#allocation7], %s2185_s30  ;;  %s414_s10 = scalar_lea.vmem [#allocation7], %s2187_s8 }
 0x38e   :  { %s2192_s12 = sld [smem:[#allocation3 + $0x32]]  ;;  %s421_s20 = scalar_lea.vmem [#allocation7], %s2189_s18 }
 0x38f   :  { %1271 = vmatpush1.bf16.msra.mxu0 %v2906_v36  ;;  %1312 = vmatpush1.bf16.msra.mxu1 %v2922_v42  ;;  %v1119_v36 = vld [vmem:[#allocation2 + $0x60] sm:$0xff]  ;;  %s2197_s2 = sshll.u32 %s2196_s14, 2  ;;  %s2201_s27 = sshll.u32 %s2200_s16, 2 }
 0x390   :  { %1388 = vmatprep.subr.bf16.mxu0 %v3181_v20  ;;  %1429 = vmatprep.subr.bf16.mxu1 %v3184_v21  ;;  %s2191_s19 = sshll.u32 %s2190_s11, 2  ;;  %s2204_s8 = sld [smem:[#allocation3 + $0x38]] }
 0x391   :  { %s428_s21 = scalar_lea.vmem [#allocation7], %s2191_s19  ;;  %s2212_s11 = sld [smem:[#allocation3 + $0x3c]] }
 0x392   :  { %s3416_s14 = sld [smem:[#allocation3 + $0x3f]] }
 0x394   :  { %s2193_s22 = sshll.u32 %s2192_s12, 2  ;;  %s2214_s12 = sld [smem:[#allocation3 + $0x3d]] }
 0x445   :  { %v1158_v39 = vpop.f32.mrb[12].mxu0  ;;  %v1199_v42 = vpop.f32.mrb[12].mxu1 }
 0x446   :  { %v1206_v29 = vadd.f32 %v1158_v39, %v1119_v36  ;;  %v1160_v55 = vpop.f32.mrb[13].mxu0  ;;  %v1201_v56 = vpop.f32.mrb[13].mxu1  ;;  %v1208_v4 = vadd.f32 %v1199_v42, %v1121_v63  ;;  %v3223_v36 = vld [vmem:[#allocation8 + $0x4c] ss:$16 sps:$4 sm:$0xff]   ;;  %v3268_v63 = vld [vmem:[#allocation8 + $0xc0] ss:$16 sps:$4 sm:$0xff]  }
 0x447   :  { %v1207_v57 = vadd.f32 %v1160_v55, %v1120_v37  ;;  %v1162_v58 = vpop.f32.mrb[14].mxu0  ;;  %v1203_v59 = vpop.f32.mrb[14].mxu1  ;;  %v1209_v8 = vadd.f32 %v1201_v56, %v1122_v3  ;;  %v3227_v55 = vld [vmem:[#allocation8 + $0x48] ss:$16 sps:$4 sm:$0xff]   ;;  %v3231_v56 = vld [vmem:[#allocation8 + $0x6c] ss:$16 sps:$4 sm:$0xff]  }
 0x448   :  { %v2261_v60 = vmul.f32 -1.442695, %v1206_v29  ;;  %v1163_v61 = vpop.f32.mrb[15].mxu0  ;;  %v1204_v62 = vpop.f32.mrb[15].mxu1  ;;  %v3262_v3 = vld [vmem:[#allocation8 + $0xc4] ss:$16 sps:$4 sm:$0xff]  }
 0x449   :  { %v2262_v1 = vmul.f32 -1.442695, %v1207_v57  ;;  %v2263_v19 = vmul.f32 -1.442695, %v1209_v8  ;;  %v3245_v61 = vld [vmem:[#allocation8 + $0x8c] ss:$16 sps:$4 sm:$0xff]  }
 0x44a   :  { %2466 = vpow2.f32 %v2261_v60  ;;  %v3241_v60 = vld [vmem:[#allocation8 + $0x68] ss:$16 sps:$4 sm:$0xff]   ;;  %v3256_v62 = vld [vmem:[#allocation8 + $0xa0] ss:$16 sps:$4 sm:$0xff]   ;;  %v3265_v8 = vld [vmem:[#allocation8 + $0xcc] ss:$16 sps:$4 sm:$0xff]  }
 0x44b   :  { %2468 = vpow2.f32 %v2262_v1  ;;  %v3259_v1 = vld [vmem:[#allocation8 + $0xa8] ss:$16 sps:$4 sm:$0xff]  }
 0x44c   :  { %2470 = vpow2.f32 %v2263_v19  ;;  %v3271_v19 = vld [vmem:[#allocation8 + $0xc8] ss:$16 sps:$4 sm:$0xff]  }
 0x44d   :  { %2472 = vtanh.f32 %v1208_v4  ;;  %v3274_v4 = vld [vmem:[#allocation8 + $0xe4] ss:$16 sps:$4 sm:$0xff]  }
 0x454   :  { %v2467_v5 = vpop.eup %2466 }
 0x455   :  { %v2469_v7 = vpop.eup %2468  ;;  %v1213_v9 = vadd.f32 1.0, %v2467_v5  ;;  %v3277_v5 = vld [vmem:[#allocation8 + $0xec] ss:$16 sps:$4 sm:$0xff]  }
 0x456   :  { %v1219_v0 = vadd.f32 1.0, %v2469_v7  ;;  %v2471_v6 = vpop.eup %2470  ;;  %v3280_v7 = vld [vmem:[#allocation8 + $0xe0] ss:$16 sps:$4 sm:$0xff]  }
 0x457   :  { %2474 = vrcp.f32 %v1213_v9  ;;  %v2473_v12 = vpop.eup %2472  ;;  %v1226_v38 = vadd.f32 1.0, %v2471_v6  ;;  %v3283_v9 = vld [vmem:[#allocation8 + $0xe8] ss:$16 sps:$4 sm:$0xff]   ;;  %v373_v6 = vld [vmem:[%s372_s1] sm:$0xf]  ;;  %s435_s1 = scalar_lea.vmem [#allocation7], %s2193_s22 }
 0x458   :  { %2476 = vrcp.f32 %v1219_v0  ;;  %v366_v0 = vld [vmem:[%s365_s23] sm:$0xf]  ;;  %375 = vst.msk [vmem:[#allocation2 + $0xa1] ss:$8 sm:$0xf] %vm2866_vm0, %v373_v6  ;;  %s2195_s23 = sshll.u32 %s2194_s13, 2 }
 0x459   :  { %2478 = vrcp.f32 %v1226_v38  ;;  %368 = vst.msk [vmem:[#allocation2 + $0xa0] ss:$8 sm:$0xf] %vm2866_vm0, %v366_v0  ;;  %v408_v38 = vld [vmem:[%s407_s9] sm:$0xf]  ;;  %s442_s24 = scalar_lea.vmem [#allocation7], %s2195_s23 }
 0x45a   :  { %410 = vst.msk [vmem:[#allocation2 + $0xa6] ss:$8 sm:$0xf] %vm2866_vm0, %v408_v38  ;;  %s2206_s9 = sld [smem:[#allocation3 + $0x39]]  ;;  %s2216_s13 = sld [smem:[#allocation3 + $0x3e]] }
 0x45b   :  { %s2213_s23 = sshll.u32 %s2212_s11, 2 }
 0x460   :  { %s2207_s16 = sshll.u32 %s2206_s9, 2 }
 0x461   :  { %v2475_v13 = vpop.eup %2474  ;;  %s484_s18 = scalar_lea.vmem [#allocation7], %s2207_s16 }
 0x462   :  { %v2477_v17 = vpop.eup %2476  ;;  %v1230_v18 = vmul.f32 %v2475_v13, %v2473_v12  ;;  %v380_v12 = vld [vmem:[%s379_s25] sm:$0xf]  ;;  %s2199_s25 = sshll.u32 %s2198_s15, 2  ;;  %s2205_s15 = sshll.u32 %s2204_s8, 2 }
 0x463   :  { %v1229_v40 = vmul.f32 %v2477_v17, %v3114_v27  ;;  %v2479_v43 = vpop.eup %2478  ;;  %v3215_v27 = vld [vmem:[#allocation8 + $0x2c] ss:$16 sps:$4 sm:$0xff]   ;;  %382 = vst.msk [vmem:[#allocation2 + $0xa2] ss:$8 sm:$0xf] %vm2866_vm0, %v380_v12  ;;  %s456_s26 = scalar_lea.vmem [#allocation7], %s2199_s25 }
 0x464   :  { %v387_v13 = vld [vmem:[%s386_s5] sm:$0xf]  ;;  %s449_s5 = scalar_lea.vmem [#allocation7], %s2197_s2  ;;  %s2217_s25 = sshll.u32 %s2216_s13, 2 }
 0x465   :  { %v3207_v41 = vadd.f32 %v1230_v18, %v1229_v40  ;;  %389 = vst.msk [vmem:[#allocation2 + $0xa3] ss:$8 sm:$0xf] %vm2866_vm0, %v387_v13  ;;  %v394_v17 = vld [vmem:[%s393_s28] sm:$0xf]  ;;  %s2203_s28 = sshll.u32 %s3353_s17, 2 }
 0x466   :  { %v401_v18 = vld [vmem:[%s400_s29] sm:$0xf]  ;;  %396 = vst.msk [vmem:[#allocation2 + $0xa4] ss:$8 sm:$0xf] %vm2866_vm0, %v394_v17  ;;  %s463_s29 = scalar_lea.vmem [#allocation7], %s2201_s27 }
 0x467   :  { %2480 = vtanh.f32 %v3207_v41  ;;  %403 = vst.msk [vmem:[#allocation2 + $0xa5] ss:$8 sm:$0xf] %vm2866_vm0, %v401_v18  ;;  %v415_v40 = vld [vmem:[%s414_s10] sm:$0xf]  ;;  %s470_s30 = scalar_lea.vmem [#allocation7], %s2203_s28 }
 0x468   :  { %417 = vst.msk [vmem:[#allocation2 + $0xa7] ss:$8 sm:$0xf] %vm2866_vm0, %v415_v40  ;;  %s2208_s10 = sld [smem:[#allocation3 + $0x3a]]  ;;  %s477_s17 = scalar_lea.vmem [#allocation7], %s2205_s15 }
 0x46e   :  { %s2209_s19 = sshll.u32 %s2208_s10, 2 }
 0x471   :  { %v2481_v10 = vpop.eup %2480 }
 0x472   :  { %v1233_v46 = vmul.f32 %v2481_v10, %v2479_v43  ;;  %v1251_v43 = vld [vmem:[#allocation2 + $0x80] sm:$0xff]  ;;  %v1252_v10 = vld [vmem:[#allocation2 + $0x88] sm:$0xff] }
 0x474   :  { %v1234_v47 = vsel %vm837_vm1, %v1233_v46, 0.0  ;;  %v1242_v48 = vmul.f32 %v1233_v46, %v1233_v46  ;;  %v1255_v14 = vpack.c.bf16 %v1233_v46, %v1233_v46 }
 0x475   :  { %v1235_v22 = vrot.slane %v1234_v47, 4 }
 0x476   :  { %v1243_v23 = vsel %vm837_vm1, %v1242_v48, 0.0  ;;  %1289 = vmatmul.mubr.bf16.vlgmr.msra.gmra.mrb[16].mxu0 %v1255_v14  ;;  %1330 = vmatmul.mubr.bf16.vlgmr.msra.gmra.mrb[16].mxu1 %v1255_v14 }
 0x477   :  { %v1236_v25 = vadd.f32 %v1235_v22, %v1234_v47  ;;  %v1244_v26 = vrot.slane %v1243_v23, 4  ;;  %1389 = vmatpush1.bf16.msra.mxu0 %v3119_v28  ;;  %1430 = vmatpush1.bf16.msra.mxu1 %v3122_v30 }
 0x478   :  { %1390 = vmatprep.subr.bf16.mxu0 %v3125_v35  ;;  %1431 = vmatprep.subr.bf16.mxu1 %v3215_v27 }
 0x479   :  { %v1237_v31 = vrot.slane %v1236_v25, 2  ;;  %v1245_v32 = vadd.f32 %v1244_v26, %v1243_v23  ;;  %1420 = vmatprep.mubr.bf16.mxu0 %v2696_v2  ;;  %1461 = vmatprep.mubr.bf16.mxu1 %v2696_v2 }
 0x47b   :  { %v1238_v33 = vadd.f32 %v1237_v31, %v1236_v25  ;;  %v1246_v34 = vrot.slane %v1245_v32, 2  ;;  %1391 = vmatpush1.bf16.msra.mxu0 %v3131_v44  ;;  %1432 = vmatpush1.bf16.msra.mxu1 %v3134_v51 }
 0x47c   :  { %1392 = vmatprep.subr.bf16.mxu0 %v3137_v45  ;;  %1433 = vmatprep.subr.bf16.mxu1 %v3223_v36 }
 0x47d   :  { %v1239_v37 = vrot.slane %v1238_v33, 1  ;;  %v1247_v39 = vadd.f32 %v1246_v34, %v1245_v32 }
 0x47f   :  { %v1240_v42 = vadd.f32 %v1239_v37, %v1238_v33  ;;  %v1248_v29 = vrot.slane %v1247_v39, 1  ;;  %1393 = vmatpush1.bf16.msra.mxu0 %v3141_v49  ;;  %1434 = vmatpush1.bf16.msra.mxu1 %v3227_v55  ;;  %v1254_v37 = vld [vmem:[#allocation2 + $0x98] sm:$0xff] }
 0x480   :  { %1394 = vmatprep.subr.bf16.mxu0 %v3145_v50  ;;  %1435 = vmatprep.subr.bf16.mxu1 %v3231_v56 }
 0x481   :  { %v3235_v57 = vadd.f32 %v1240_v42, %v3150_v52  ;;  %v1249_v58 = vadd.f32 %v1248_v29, %v1247_v39  ;;  %v3249_v52 = vld [vmem:[#allocation8 + $0x88] ss:$16 sps:$4 sm:$0xff]   ;;  %v1253_v42 = vld [vmem:[#allocation2 + $0x90] sm:$0xff] }
 0x483   :  { %v3238_v59 = vadd.f32 %v1249_v58, %v3153_v53  ;;  %1395 = vmatpush1.bf16.msra.mxu0 %v3155_v54  ;;  %1436 = vmatpush1.bf16.msra.mxu1 %v3241_v60  ;;  %v3253_v53 = vld [vmem:[#allocation8 + $0xac] ss:$16 sps:$4 sm:$0xff]  }
 0x484   :  { %1396 = vmatprep.subr.bf16.mxu0 %v3159_v15  ;;  %1437 = vmatprep.subr.bf16.mxu1 %v3245_v61 }
 0x487   :  { %1397 = vmatpush1.bf16.msra.mxu0 %v3163_v16  ;;  %1438 = vmatpush1.bf16.msra.mxu1 %v3249_v52 }
 0x488   :  { %1398 = vmatprep.subr.bf16.mxu0 %v3167_v11  ;;  %1439 = vmatprep.subr.bf16.mxu1 %v3253_v53 }
 0x48b   :  { %1399 = vmatpush1.bf16.msra.mxu0 %v3256_v62  ;;  %1440 = vmatpush1.bf16.msra.mxu1 %v3259_v1 }
 0x48c   :  { %1400 = vmatprep.subr.bf16.mxu0 %v3262_v3  ;;  %1441 = vmatprep.subr.bf16.mxu1 %v3265_v8 }
 0x48f   :  { %1401 = vmatpush1.bf16.msra.mxu0 %v3268_v63  ;;  %1442 = vmatpush1.bf16.msra.mxu1 %v3271_v19 }
 0x490   :  { %1402 = vmatprep.subr.bf16.mxu0 %v3274_v4  ;;  %1443 = vmatprep.subr.bf16.mxu1 %v3277_v5 }
 0x493   :  { %1403 = vmatpush1.bf16.msra.mxu0 %v3280_v7  ;;  %1444 = vmatpush1.bf16.msra.mxu1 %v3283_v9 }
 0x494   :  { %1520 = vmatprep.subr.bf16.mxu0 %v3181_v20  ;;  %1561 = vmatprep.subr.bf16.mxu1 %v3184_v21 }
 0x549   :  { %v1290_v46 = vpop.f32.mrb[16].mxu0  ;;  %v1331_v47 = vpop.f32.mrb[16].mxu1 }
 0x54a   :  { %v1338_v48 = vadd.f32 %v1290_v46, %v1251_v43  ;;  %v1292_v14 = vpop.f32.mrb[17].mxu0  ;;  %v1333_v22 = vpop.f32.mrb[17].mxu1  ;;  %v1340_v58 = vadd.f32 %v1331_v47, %v1253_v42 }
 0x54b   :  { %v1339_v23 = vadd.f32 %v1292_v14, %v1252_v10  ;;  %v1294_v25 = vpop.f32.mrb[18].mxu0  ;;  %v1335_v26 = vpop.f32.mrb[18].mxu1  ;;  %v1341_v39 = vadd.f32 %v1333_v22, %v1254_v37 }
 0x54c   :  { %v2264_v31 = vmul.f32 -1.442695, %v1338_v48  ;;  %v1295_v32 = vpop.f32.mrb[19].mxu0  ;;  %v1336_v33 = vpop.f32.mrb[19].mxu1 }
 0x54d   :  { %v2265_v34 = vmul.f32 -1.442695, %v1339_v23  ;;  %v2266_v29 = vmul.f32 -1.442695, %v1341_v39 }
 0x54e   :  { %2482 = vpow2.f32 %v2264_v31 }
 0x54f   :  { %2484 = vpow2.f32 %v2265_v34 }
 0x550   :  { %2486 = vpow2.f32 %v2266_v29 }
 0x551   :  { %2488 = vtanh.f32 %v1340_v58 }
 0x558   :  { %v2483_v0 = vpop.eup %2482 }
 0x559   :  { %v2485_v6 = vpop.eup %2484  ;;  %v1345_v12 = vadd.f32 1.0, %v2483_v0 }
 0x55a   :  { %v1351_v13 = vadd.f32 1.0, %v2485_v6  ;;  %v2487_v17 = vpop.eup %2486 }
 0x55b   :  { %2490 = vrcp.f32 %v1345_v12  ;;  %v2489_v18 = vpop.eup %2488  ;;  %v1358_v10 = vadd.f32 1.0, %v2487_v17 }
 0x55c   :  { %2492 = vrcp.f32 %v1351_v13 }
 0x55d   :  { %2494 = vrcp.f32 %v1358_v10  ;;  %v1383_v10 = vld [vmem:[#allocation2 + $0xa0] sm:$0xff] }
 0x565   :  { %v2491_v38 = vpop.eup %2490 }
 0x566   :  { %v2493_v40 = vpop.eup %2492  ;;  %v1362_v43 = vmul.f32 %v2491_v38, %v2489_v18  ;;  %v450_v18 = vld [vmem:[%s449_s5] sm:$0xf]  ;;  %s2219_s5 = sshll.u32 %s3416_s14, 2 }
 0x567   :  { %v1361_v46 = vmul.f32 %v2493_v40, %v3207_v41  ;;  %v2495_v47 = vpop.eup %2494  ;;  %v457_v38 = vld [vmem:[%s456_s26] sm:$0xf]  ;;  %452 = vst.msk [vmem:[#allocation2 + $0xc4] ss:$8 sm:$0xf] %vm2866_vm0, %v450_v18  ;;  %s519_s26 = scalar_lea.vmem [#allocation7], %s2217_s25 }
 0x568   :  { %459 = vst.msk [vmem:[#allocation2 + $0xc5] ss:$8 sm:$0xf] %vm2866_vm0, %v457_v38  ;;  %v464_v40 = vld [vmem:[%s463_s29] sm:$0xf]  ;;  %s526_s27 = scalar_lea.vmem [#allocation7], %s2219_s5 }
 0x569   :  { %v3308_v48 = vadd.f32 %v1362_v43, %v1361_v46  ;;  %v471_v43 = vld [vmem:[%s470_s30] sm:$0xf]  ;;  %466 = vst.msk [vmem:[#allocation2 + $0xc6] ss:$8 sm:$0xf] %vm2866_vm0, %v464_v40  ;;  %v1384_v46 = vld [vmem:[#allocation2 + $0xa8] sm:$0xff] }
 0x56a   :  { %473 = vst.msk [vmem:[#allocation2 + $0xc7] ss:$8 sm:$0xf] %vm2866_vm0, %v471_v43 }
 0x56b   :  { %2496 = vtanh.f32 %v3308_v48 }
 0x575   :  { %v2497_v14 = vpop.eup %2496 }
 0x576   :  { %v1365_v22 = vmul.f32 %v2497_v14, %v2495_v47 }
 0x578   :  { %v1366_v23 = vsel %vm837_vm1, %v1365_v22, 0.0  ;;  %v1374_v25 = vmul.f32 %v1365_v22, %v1365_v22  ;;  %v1387_v26 = vpack.c.bf16 %v1365_v22, %v1365_v22 }
 0x579   :  { %v1367_v31 = vrot.slane %v1366_v23, 4 }
 0x57a   :  { %v1375_v32 = vsel %vm837_vm1, %v1374_v25, 0.0  ;;  %1421 = vmatmul.mubr.bf16.vlgmr.msra.gmra.mrb[20].mxu0 %v1387_v26  ;;  %1462 = vmatmul.mubr.bf16.vlgmr.msra.gmra.mrb[20].mxu1 %v1387_v26 }
 0x57b   :  { %v1368_v33 = vadd.f32 %v1367_v31, %v1366_v23  ;;  %v1376_v34 = vrot.slane %v1375_v32, 4  ;;  %1521 = vmatpush1.bf16.msra.mxu0 %v3119_v28  ;;  %1562 = vmatpush1.bf16.msra.mxu1 %v3122_v30 }
 0x57c   :  { %1522 = vmatprep.subr.bf16.mxu0 %v3125_v35  ;;  %1563 = vmatprep.subr.bf16.mxu1 %v3215_v27 }
 0x57d   :  { %v1369_v41 = vrot.slane %v1368_v33, 2  ;;  %v1377_v37 = vadd.f32 %v1376_v34, %v1375_v32  ;;  %1552 = vmatprep.mubr.bf16.mxu0 %v2696_v2  ;;  %1593 = vmatprep.mubr.bf16.mxu1 %v2696_v2 }
 0x57f   :  { %v1370_v39 = vadd.f32 %v1369_v41, %v1368_v33  ;;  %v1378_v42 = vrot.slane %v1377_v37, 2  ;;  %1523 = vmatpush1.bf16.msra.mxu0 %v3131_v44  ;;  %1564 = vmatpush1.bf16.msra.mxu1 %v3134_v51 }
 0x580   :  { %1524 = vmatprep.subr.bf16.mxu0 %v3137_v45  ;;  %1565 = vmatprep.subr.bf16.mxu1 %v3223_v36 }
 0x581   :  { %v1371_v29 = vrot.slane %v1370_v39, 1  ;;  %v1379_v58 = vadd.f32 %v1378_v42, %v1377_v37 }
 0x583   :  { %v1372_v0 = vadd.f32 %v1371_v29, %v1370_v39  ;;  %v1380_v6 = vrot.slane %v1379_v58, 1  ;;  %1525 = vmatpush1.bf16.msra.mxu0 %v3141_v49  ;;  %1566 = vmatpush1.bf16.msra.mxu1 %v3227_v55  ;;  %v1386_v39 = vld [vmem:[#allocation2 + $0xb8] sm:$0xff]  ;;  %v1385_v29 = vld [vmem:[#allocation2 + $0xb0] sm:$0xff] }
 0x584   :  { %1526 = vmatprep.subr.bf16.mxu0 %v3145_v50  ;;  %1567 = vmatprep.subr.bf16.mxu1 %v3231_v56 }
 0x585   :  { %v1381_v12 = vadd.f32 %v1380_v6, %v1379_v58  ;;  %v3328_v13 = vadd.f32 %v1372_v0, %v3235_v57  ;;  %v422_v57 = vld [vmem:[%s421_s20] sm:$0xf]  ;;  %s2211_s20 = sshll.u32 %s2210_s0, 2  ;;  %s2700_s0 = smov [#allocation11]  }
 0x586   :  { %424 = vst.msk [vmem:[#allocation2 + $0xc0] ss:$8 sm:$0xf] %vm2866_vm0, %v422_v57  ;;  %s498_s22 = scalar_lea.vmem [#allocation7], %s2211_s20  ;;  %s1905_s11 = sshll.u32 %s2700_s0, 4  ;;  %s1906_s11 = int_to_ptr.vmem [resolvable:$true] %s1905_s11 }
 0x587   :  { %v3331_v17 = vadd.f32 %v1381_v12, %v3238_v59  ;;  %1527 = vmatpush1.bf16.msra.mxu0 %v3155_v54  ;;  %1568 = vmatpush1.bf16.msra.mxu1 %v3241_v60  ;;  %v429_v59 = vld [vmem:[%s428_s21] sm:$0xf]  ;;  %s491_s21 = scalar_lea.vmem [#allocation7], %s2209_s19  ;;  %p2661_p0 = scmp.lt.s32.totalorder %s1906_s11, %s1906_s11 }
 0x588   :  { %1528 = vmatprep.subr.bf16.mxu0 %v3159_v15  ;;  %1569 = vmatprep.subr.bf16.mxu1 %v3245_v61  ;;  %431 = vst.msk [vmem:[#allocation2 + $0xc1] ss:$8 sm:$0xf] %vm2866_vm0, %v429_v59 }
 0x58b   :  { %1529 = vmatpush1.bf16.msra.mxu0 %v3163_v16  ;;  %1570 = vmatpush1.bf16.msra.mxu1 %v3249_v52 }
 0x58c   :  { %1530 = vmatprep.subr.bf16.mxu0 %v3167_v11  ;;  %1571 = vmatprep.subr.bf16.mxu1 %v3253_v53 }
 0x58f   :  { %1531 = vmatpush1.bf16.msra.mxu0 %v3256_v62  ;;  %1572 = vmatpush1.bf16.msra.mxu1 %v3259_v1 }
 0x590   :  { %1532 = vmatprep.subr.bf16.mxu0 %v3262_v3  ;;  %1573 = vmatprep.subr.bf16.mxu1 %v3265_v8 }
 0x593   :  { %1533 = vmatpush1.bf16.msra.mxu0 %v3268_v63  ;;  %1574 = vmatpush1.bf16.msra.mxu1 %v3271_v19 }
 0x594   :  { %1534 = vmatprep.subr.bf16.mxu0 %v3274_v4  ;;  %1575 = vmatprep.subr.bf16.mxu1 %v3277_v5 }
 0x597   :  { %1535 = vmatpush1.bf16.msra.mxu0 %v3280_v7  ;;  %1576 = vmatpush1.bf16.msra.mxu1 %v3283_v9 }
 0x598   :  { %1652 = vmatprep.subr.bf16.mxu0 %v3181_v20  ;;  %1693 = vmatprep.subr.bf16.mxu1 %v3184_v21  ;;  %v436_v20 = vld [vmem:[%s435_s1] sm:$0xf]  ;;  %s2215_s1 = sshll.u32 %s2214_s12, 2 }
 0x599   :  { %v443_v21 = vld [vmem:[%s442_s24] sm:$0xf]  ;;  %438 = vst.msk [vmem:[#allocation2 + $0xc2] ss:$8 sm:$0xf] %vm2866_vm0, %v436_v20  ;;  %s505_s24 = scalar_lea.vmem [#allocation7], %s2213_s23 }
 0x59a   :  { %445 = vst.msk [vmem:[#allocation2 + $0xc3] ss:$8 sm:$0xf] %vm2866_vm0, %v443_v21  ;;  %s512_s2 = scalar_lea.vmem [#allocation7], %s2215_s1 }
 0x5a1   :  { %v1517_v24 = vld [vmem:[#allocation2 + $0xd0] sm:$0xff] }
 0x64d   :  { %v1422_v47 = vpop.f32.mrb[20].mxu0  ;;  %v1463_v14 = vpop.f32.mrb[20].mxu1 }
 0x64e   :  { %v1470_v22 = vadd.f32 %v1422_v47, %v1383_v10  ;;  %v1424_v23 = vpop.f32.mrb[21].mxu0  ;;  %v1465_v25 = vpop.f32.mrb[21].mxu1  ;;  %v1472_v0 = vadd.f32 %v1463_v14, %v1385_v29 }
 0x64f   :  { %v1471_v26 = vadd.f32 %v1424_v23, %v1384_v46  ;;  %v1426_v31 = vpop.f32.mrb[22].mxu0  ;;  %v1467_v32 = vpop.f32.mrb[22].mxu1  ;;  %v1473_v42 = vadd.f32 %v1465_v25, %v1386_v39 }
 0x650   :  { %v2267_v33 = vmul.f32 -1.442695, %v1470_v22  ;;  %v1427_v34 = vpop.f32.mrb[23].mxu0  ;;  %v1468_v41 = vpop.f32.mrb[23].mxu1 }
 0x651   :  { %v2268_v37 = vmul.f32 -1.442695, %v1471_v26  ;;  %v2269_v58 = vmul.f32 -1.442695, %v1473_v42 }
 0x652   :  { %2498 = vpow2.f32 %v2267_v33 }
 0x653   :  { %2500 = vpow2.f32 %v2268_v37 }
 0x654   :  { %2502 = vpow2.f32 %v2269_v58 }
 0x655   :  { %2504 = vtanh.f32 %v1472_v0 }
 0x65c   :  { %v2499_v6 = vpop.eup %2498 }
 0x65d   :  { %v2501_v12 = vpop.eup %2500  ;;  %v1477_v57 = vadd.f32 1.0, %v2499_v6 }
 0x65e   :  { %v1483_v59 = vadd.f32 1.0, %v2501_v12  ;;  %v2503_v20 = vpop.eup %2502 }
 0x65f   :  { %2506 = vrcp.f32 %v1477_v57  ;;  %v2505_v21 = vpop.eup %2504  ;;  %v1490_v43 = vadd.f32 1.0, %v2503_v20 }
 0x660   :  { %2508 = vrcp.f32 %v1483_v59 }
 0x661   :  { %2510 = vrcp.f32 %v1490_v43 }
 0x669   :  { %v2507_v18 = vpop.eup %2506 }
 0x66a   :  { %v2509_v38 = vpop.eup %2508  ;;  %v1494_v40 = vmul.f32 %v2507_v18, %v2505_v21 }
 0x66b   :  { %v1493_v10 = vmul.f32 %v2509_v38, %v3308_v48  ;;  %v2511_v47 = vpop.eup %2510 }
 0x66d   :  { %v3373_v46 = vadd.f32 %v1494_v40, %v1493_v10 }
 0x66f   :  { %2512 = vtanh.f32 %v3373_v46 }
 0x679   :  { %v2513_v14 = vpop.eup %2512 }
 0x67a   :  { %v1497_v22 = vmul.f32 %v2513_v14, %v2511_v47 }
 0x67c   :  { %v1498_v23 = vsel %vm837_vm1, %v1497_v22, 0.0  ;;  %v1506_v25 = vmul.f32 %v1497_v22, %v1497_v22  ;;  %v1519_v26 = vpack.c.bf16 %v1497_v22, %v1497_v22 }
 0x67d   :  { %v1499_v31 = vrot.slane %v1498_v23, 4 }
 0x67e   :  { %v1507_v32 = vsel %vm837_vm1, %v1506_v25, 0.0  ;;  %1553 = vmatmul.mubr.bf16.vlgmr.msra.gmra.mrb[24].mxu0 %v1519_v26  ;;  %1594 = vmatmul.mubr.bf16.vlgmr.msra.gmra.mrb[24].mxu1 %v1519_v26 }
 0x67f   :  { %v1500_v33 = vadd.f32 %v1499_v31, %v1498_v23  ;;  %v1508_v34 = vrot.slane %v1507_v32, 4  ;;  %1653 = vmatpush1.bf16.msra.mxu0 %v3119_v28  ;;  %1694 = vmatpush1.bf16.msra.mxu1 %v3122_v30 }
 0x680   :  { %1654 = vmatprep.subr.bf16.mxu0 %v3125_v35  ;;  %1695 = vmatprep.subr.bf16.mxu1 %v3215_v27 }
 0x681   :  { %v1501_v48 = vrot.slane %v1500_v33, 2  ;;  %v1509_v41 = vadd.f32 %v1508_v34, %v1507_v32  ;;  %1684 = vmatprep.mubr.bf16.mxu0 %v2696_v2  ;;  %1725 = vmatprep.mubr.bf16.mxu1 %v2696_v2 }
 0x683   :  { %v1502_v37 = vadd.f32 %v1501_v48, %v1500_v33  ;;  %v1510_v39 = vrot.slane %v1509_v41, 2  ;;  %1655 = vmatpush1.bf16.msra.mxu0 %v3131_v44  ;;  %1696 = vmatpush1.bf16.msra.mxu1 %v3134_v51 }
 0x684   :  { %1656 = vmatprep.subr.bf16.mxu0 %v3137_v45  ;;  %1697 = vmatprep.subr.bf16.mxu1 %v3223_v36  ;;  %v478_v45 = vld [vmem:[%s477_s17] sm:$0xf] }
 0x685   :  { %v1503_v28 = vrot.slane %v1502_v37, 1  ;;  %v1511_v30 = vadd.f32 %v1510_v39, %v1509_v41  ;;  %480 = vst.msk [vmem:[#allocation2 + $0xe0] ss:$8 sm:$0xf] %vm2866_vm0, %v478_v45  ;;  %v527_v36 = vld [vmem:[%s526_s27] sm:$0xf] }
 0x686   :  { %529 = vst.msk [vmem:[#allocation2 + $0xe7] ss:$8 sm:$0xf] %vm2866_vm0, %v527_v36  ;;  %v1807_v45 = vld [vmem:[#allocation10 + $0x10] sm:$0xff]  ;;  %v1810_v36 = vld [vmem:[#allocation10 + $0x28] sm:$0xff] }
 0x687   :  { %v1504_v35 = vadd.f32 %v1503_v28, %v1502_v37  ;;  %v1512_v27 = vrot.slane %v1511_v30, 1  ;;  %1657 = vmatpush1.bf16.msra.mxu0 %v3141_v49  ;;  %1698 = vmatpush1.bf16.msra.mxu1 %v3227_v55  ;;  %v485_v49 = vld [vmem:[%s484_s18] sm:$0xf] }
 0x688   :  { %1658 = vmatprep.subr.bf16.mxu0 %v3145_v50  ;;  %1699 = vmatprep.subr.bf16.mxu1 %v3231_v56  ;;  %487 = vst.msk [vmem:[#allocation2 + $0xe1] ss:$8 sm:$0xf] %vm2866_vm0, %v485_v49  ;;  %v492_v50 = vld [vmem:[%s491_s21] sm:$0xf]  ;;  %v1516_v56 = vld [vmem:[#allocation2 + $0xc8] sm:$0xff] }
 0x689   :  { %v1513_v2 = vadd.f32 %v1512_v27, %v1511_v30  ;;  %v3393_v44 = vadd.f32 %v1504_v35, %v3328_v13  ;;  %494 = vst.msk [vmem:[#allocation2 + $0xe2] ss:$8 sm:$0xf] %vm2866_vm0, %v492_v50  ;;  %v1515_v55 = vld [vmem:[#allocation2 + $0xc0] sm:$0xff]  ;;  %v2697_v49 = vmov 0.0|0.0  }
 0x68a   :  { %v1805_v27 = vld [vmem:[#allocation10] sm:$0xff] }
 0x68b   :  { %v3396_v51 = vadd.f32 %v1513_v2, %v3331_v17  ;;  %1659 = vmatpush1.bf16.msra.mxu0 %v3155_v54  ;;  %1700 = vmatpush1.bf16.msra.mxu1 %v3241_v60  ;;  %v499_v54 = vld [vmem:[%s498_s22] sm:$0xf]  ;;  %v1806_v2 = vld [vmem:[#allocation10 + $0x8] sm:$0xff] }
 0x68c   :  { %1660 = vmatprep.subr.bf16.mxu0 %v3159_v15  ;;  %1701 = vmatprep.subr.bf16.mxu1 %v3245_v61  ;;  %501 = vst.msk [vmem:[#allocation2 + $0xe3] ss:$8 sm:$0xf] %vm2866_vm0, %v499_v54  ;;  %v506_v15 = vld [vmem:[%s505_s24] sm:$0xf]  ;;  %v2332_v50 = vpack.c.bf16 %v1806_v2, %v1805_v27 }
 0x68d   :  { %508 = vst.msk [vmem:[#allocation2 + $0xe4] ss:$8 sm:$0xf] %vm2866_vm0, %v506_v15  ;;  %v1808_v54 = vld [vmem:[#allocation10 + $0x18] sm:$0xff]  ;;  %v2699_v15 = vmov 0.0  }
 0x68f   :  { %1661 = vmatpush1.bf16.msra.mxu0 %v3163_v16  ;;  %1702 = vmatpush1.bf16.msra.mxu1 %v3249_v52  ;;  %v513_v16 = vld [vmem:[%s512_s2] sm:$0xf] }
 0x690   :  { %1662 = vmatprep.subr.bf16.mxu0 %v3167_v11  ;;  %1703 = vmatprep.subr.bf16.mxu1 %v3253_v53  ;;  %515 = vst.msk [vmem:[#allocation2 + $0xe5] ss:$8 sm:$0xf] %vm2866_vm0, %v513_v16  ;;  %v520_v11 = vld [vmem:[%s519_s26] sm:$0xf]  ;;  %v2335_v16 = vpack.c.bf16 %v1808_v54, %v1807_v45 }
 0x691   :  { %522 = vst.msk [vmem:[#allocation2 + $0xe6] ss:$8 sm:$0xf] %vm2866_vm0, %v520_v11  ;;  %v1809_v11 = vld [vmem:[#allocation10 + $0x20] sm:$0xff] }
 0x693   :  { %1663 = vmatpush1.bf16.msra.mxu0 %v3256_v62  ;;  %1704 = vmatpush1.bf16.msra.mxu1 %v3259_v1 }
 0x694   :  { %1664 = vmatprep.subr.bf16.mxu0 %v3262_v3  ;;  %1705 = vmatprep.subr.bf16.mxu1 %v3265_v8 }
 0x697   :  { %1665 = vmatpush1.bf16.msra.mxu0 %v3268_v63  ;;  %1706 = vmatpush1.bf16.msra.mxu1 %v3271_v19 }
 0x698   :  { %1666 = vmatprep.subr.bf16.mxu0 %v3274_v4  ;;  %1707 = vmatprep.subr.bf16.mxu1 %v3277_v5 }
 0x69b   :  { %1667 = vmatpush1.bf16.msra.mxu0 %v3280_v7  ;;  %1708 = vmatpush1.bf16.msra.mxu1 %v3283_v9  ;;  %v1518_v7 = vld [vmem:[#allocation2 + $0xd8] sm:$0xff] }
 0x69c   :  { %2331 = vmatprep.subr.bf16.mxu0 %v2697_v49 }
 0x751   :  { %v1554_v60 = vpop.f32.mrb[24].mxu0  ;;  %v1595_v61 = vpop.f32.mrb[24].mxu1 }
 0x752   :  { %v1602_v52 = vadd.f32 %v1554_v60, %v1515_v55  ;;  %v1556_v53 = vpop.f32.mrb[25].mxu0  ;;  %v1597_v62 = vpop.f32.mrb[25].mxu1  ;;  %v1604_v17 = vadd.f32 %v1595_v61, %v1517_v24  ;;  %v1812_v55 = vld [vmem:[#allocation10 + $0x38] sm:$0xff]  ;;  %v1813_v60 = vld [vmem:[#allocation10 + $0x40] sm:$0xff]  ;;  %v1814_v61 = vld [vmem:[#allocation10 + $0x48] sm:$0xff] }
 0x753   :  { %v1603_v1 = vadd.f32 %v1556_v53, %v1516_v56  ;;  %v1558_v3 = vpop.f32.mrb[26].mxu0  ;;  %v1599_v8 = vpop.f32.mrb[26].mxu1  ;;  %v1605_v9 = vadd.f32 %v1597_v62, %v1518_v7  ;;  %v1815_v53 = vld [vmem:[#allocation10 + $0x50] sm:$0xff]  ;;  %v1816_v62 = vld [vmem:[#allocation10 + $0x58] sm:$0xff] }
 0x754   :  { %v2270_v63 = vmul.f32 -1.442695, %v1602_v52  ;;  %v1559_v19 = vpop.f32.mrb[27].mxu0  ;;  %v1600_v4 = vpop.f32.mrb[27].mxu1  ;;  %v2344_v52 = vpack.c.bf16 %v1814_v61, %v1813_v60  ;;  %v1817_v3 = vld [vmem:[#allocation10 + $0x60] sm:$0xff]  ;;  %v1818_v8 = vld [vmem:[#allocation10 + $0x68] sm:$0xff] }
 0x755   :  { %v2271_v5 = vmul.f32 -1.442695, %v1603_v1  ;;  %v2272_v13 = vmul.f32 -1.442695, %v1605_v9  ;;  %v2347_v1 = vpack.c.bf16 %v1816_v62, %v1815_v53  ;;  %v1819_v19 = vld [vmem:[#allocation10 + $0x70] sm:$0xff]  ;;  %v1820_v4 = vld [vmem:[#allocation10 + $0x78] sm:$0xff] }
 0x756   :  { %2514 = vpow2.f32 %v2270_v63  ;;  %v2350_v63 = vpack.c.bf16 %v1818_v8, %v1817_v3  ;;  %v1647_v7 = vld [vmem:[#allocation2 + $0xe0] sm:$0xff]  ;;  %v1648_v9 = vld [vmem:[#allocation2 + $0xe8] sm:$0xff] }
 0x757   :  { %2516 = vpow2.f32 %v2271_v5  ;;  %v2353_v5 = vpack.c.bf16 %v1820_v4, %v1819_v19  ;;  %v2276_v19 = vld [vmem:[%s3476_s3] ss:$0 sm:$0xff]  ;;  %s2656_s3 = scalar_lea.vmem %s1906_s11, 128 }
 0x758   :  { %2518 = vpow2.f32 %v2272_v13  ;;  %p2657_p13 = scmp.ne.s32.totalorder %s1906_s11, %s2656_s3  ;;  %p2662_p1 = scmp.lt.s32.totalorder %s2656_s3, %s2656_s3 }
 0x759   :  { %2520 = vtanh.f32 %v1604_v17 }
 0x75a   :  { %p2663_p2 = por %p2662_p1, %p2661_p0 }
 0x75c   :  { %p2664_p3 = pnand %p2663_p2, %p2657_p13 }
 0x760   :  { %v2515_v42 = vpop.eup %2514 }
 0x761   :  { %v2517_v29 = vpop.eup %2516  ;;  %v1609_v58 = vadd.f32 1.0, %v2515_v42 }
 0x762   :  { %v1615_v0 = vadd.f32 1.0, %v2517_v29  ;;  %v2519_v6 = vpop.eup %2518 }
 0x763   :  { %2522 = vrcp.f32 %v1609_v58  ;;  %v2521_v12 = vpop.eup %2520  ;;  %v1622_v21 = vadd.f32 1.0, %v2519_v6 }
 0x764   :  { %2524 = vrcp.f32 %v1615_v0 }
 0x765   :  { %2526 = vrcp.f32 %v1622_v21  ;;  %v1650_v21 = vld [vmem:[#allocation2 + $0xf8] sm:$0xff] }
 0x76d   :  { %v2523_v57 = vpop.eup %2522 }
 0x76e   :  { %v2525_v59 = vpop.eup %2524  ;;  %v1626_v20 = vmul.f32 %v2523_v57, %v2521_v12 }
 0x76f   :  { %v1625_v18 = vmul.f32 %v2525_v59, %v3373_v46  ;;  %v2527_v40 = vpop.eup %2526 }
 0x771   :  { %v3436_v38 = vadd.f32 %v1626_v20, %v1625_v18 }
 0x773   :  { %2528 = vtanh.f32 %v3436_v38 }
 0x77d   :  { %v2529_v43 = vpop.eup %2528 }
 0x77e   :  { %v1629_v10 = vmul.f32 %v2529_v43, %v2527_v40  ;;  %v1649_v40 = vld [vmem:[#allocation2 + $0xf0] sm:$0xff] }
 0x780   :  { %v1630_v47 = vsel %vm837_vm1, %v1629_v10, 0.0  ;;  %v1638_v14 = vmul.f32 %v1629_v10, %v1629_v10  ;;  %v1651_v22 = vpack.c.bf16 %v1629_v10, %v1629_v10 }
 0x781   :  { %v1631_v23 = vrot.slane %v1630_v47, 4 }
 0x782   :  { %v1639_v25 = vsel %vm837_vm1, %v1638_v14, 0.0  ;;  %1685 = vmatmul.mubr.bf16.vlgmr.msra.gmra.mrb[28].mxu0 %v1651_v22  ;;  %1726 = vmatmul.mubr.bf16.vlgmr.msra.gmra.mrb[28].mxu1 %v1651_v22 }
 0x783   :  { %v1632_v26 = vadd.f32 %v1631_v23, %v1630_v47  ;;  %v1640_v31 = vrot.slane %v1639_v25, 4  ;;  %2328 = vmatprep.mubr.msk.f32.mxu0 %vm2698_vm2, %v2699_v15  ;;  %2333 = vmatpush3.bf16.msra.mxu0 %v2332_v50 }
 0x784   :  { %2334 = vmatprep.subr.bf16.mxu0 %v2697_v49 }
 0x785   :  { %v1633_v46 = vrot.slane %v1632_v26, 2  ;;  %v1641_v32 = vadd.f32 %v1640_v31, %v1639_v25 }
 0x787   :  { %v1634_v33 = vadd.f32 %v1633_v46, %v1632_v26  ;;  %v1642_v34 = vrot.slane %v1641_v32, 2  ;;  %2336 = vmatpush3.bf16.msra.mxu0 %v2335_v16 }
 0x788   :  { %2337 = vmatprep.subr.bf16.mxu0 %v2697_v49 }
 0x789   :  { %v1635_v48 = vrot.slane %v1634_v33, 1  ;;  %v1643_v41 = vadd.f32 %v1642_v34, %v1641_v32 }
 0x78b   :  { %v1644_v37 = vrot.slane %v1643_v41, 1  ;;  %v1636_v39 = vadd.f32 %v1635_v48, %v1634_v33 }
 0x78d   :  { %v1645_v28 = vadd.f32 %v1644_v37, %v1643_v41  ;;  %v3442_v30 = vadd.f32 %v1636_v39, %v3393_v44  ;;  %v2338_v44 = vpack.c.bf16 %v1810_v36, %v1809_v11 }
 0x78f   :  { %v3445_v35 = vadd.f32 %v1645_v28, %v3396_v51  ;;  %v1811_v51 = vld [vmem:[#allocation10 + $0x30] sm:$0xff]  ;;  %2339 = vmatpush3.bf16.msra.mxu0 %v2338_v44 }
 0x790   :  { %v2341_v56 = vpack.c.bf16 %v1812_v55, %v1811_v51  ;;  %2340 = vmatprep.subr.bf16.mxu0 %v2697_v49 }
 0x793   :  { %2342 = vmatpush3.bf16.msra.mxu0 %v2341_v56 }
 0x794   :  { %2343 = vmatprep.subr.bf16.mxu0 %v2697_v49 }
 0x797   :  { %2345 = vmatpush3.bf16.msra.mxu0 %v2344_v52 }
 0x798   :  { %2346 = vmatprep.subr.bf16.mxu0 %v2697_v49 }
 0x79b   :  { %2348 = vmatpush3.bf16.msra.mxu0 %v2347_v1 }
 0x79c   :  { %2349 = vmatprep.subr.bf16.mxu0 %v2697_v49 }
 0x79f   :  { %2351 = vmatpush3.bf16.msra.mxu0 %v2350_v63 }
 0x7a0   :  { %2352 = vmatprep.subr.bf16.mxu0 %v2697_v49 }
 0x7a3   :  { %2354 = vmatpush3.bf16.msra.mxu0 %v2353_v5 }
 0x855   :  { %v1686_v24 = vpop.f32.mrb[28].mxu0  ;;  %v1727_v13 = vpop.f32.mrb[28].mxu1 }
 0x856   :  { %v1734_v17 = vadd.f32 %v1686_v24, %v1647_v7  ;;  %v1688_v42 = vpop.f32.mrb[29].mxu0  ;;  %v1729_v29 = vpop.f32.mrb[29].mxu1  ;;  %v1736_v10 = vadd.f32 %v1727_v13, %v1649_v40  ;;  %v2278_v7 = vld [vmem:[%s3479_s6] ss:$0 sm:$0xff] }
 0x857   :  { %v1735_v58 = vadd.f32 %v1688_v42, %v1648_v9  ;;  %v1690_v0 = vpop.f32.mrb[30].mxu0  ;;  %v1731_v6 = vpop.f32.mrb[30].mxu1  ;;  %v1737_v18 = vadd.f32 %v1729_v29, %v1650_v21 }
 0x858   :  { %v2273_v12 = vmul.f32 -1.442695, %v1734_v17  ;;  %v1691_v57 = vpop.f32.mrb[31].mxu0  ;;  %v1732_v59 = vpop.f32.mrb[31].mxu1 }
 0x859   :  { %v2274_v20 = vmul.f32 -1.442695, %v1735_v58  ;;  %v2275_v43 = vmul.f32 -1.442695, %v1737_v18 }
 0x85a   :  { %2530 = vpow2.f32 %v2273_v12 }
 0x85b   :  { %2532 = vpow2.f32 %v2274_v20 }
 0x85c   :  { %2534 = vpow2.f32 %v2275_v43 }
 0x85d   :  { %2536 = vtanh.f32 %v1736_v10 }
 0x864   :  { %v2531_v47 = vpop.eup %2530 }
 0x865   :  { %v2533_v14 = vpop.eup %2532  ;;  %v1741_v22 = vadd.f32 1.0, %v2531_v47 }
 0x866   :  { %v1747_v23 = vadd.f32 1.0, %v2533_v14  ;;  %v2535_v25 = vpop.eup %2534 }
 0x867   :  { %2538 = vrcp.f32 %v1741_v22  ;;  %v2537_v26 = vpop.eup %2536  ;;  %v1754_v33 = vadd.f32 1.0, %v2535_v25 }
 0x868   :  { %2540 = vrcp.f32 %v1747_v23 }
 0x869   :  { %2542 = vrcp.f32 %v1754_v33 }
 0x871   :  { %v2539_v31 = vpop.eup %2538 }
 0x872   :  { %v2541_v46 = vpop.eup %2540  ;;  %v1758_v32 = vmul.f32 %v2539_v31, %v2537_v26 }
 0x873   :  { %v1757_v34 = vmul.f32 %v2541_v46, %v3436_v38  ;;  %v2543_v41 = vpop.eup %2542 }
 0x875   :  { %v1759_v48 = vadd.f32 %v1758_v32, %v1757_v34 }
 0x877   :  { %2544 = vtanh.f32 %v1759_v48 }
 0x881   :  { %v2545_v37 = vpop.eup %2544 }
 0x882   :  { %v1761_v39 = vmul.f32 %v2545_v37, %v2543_v41 }
 0x884   :  { %v1762_v28 = vsel %vm837_vm1, %v1761_v39, 0.0  ;;  %v1770_v27 = vmul.f32 %v1761_v39, %v1761_v39 }
 0x885   :  { %v1763_v2 = vrot.slane %v1762_v28, 4 }
 0x886   :  { %v1771_v45 = vsel %vm837_vm1, %v1770_v27, 0.0 }
 0x887   :  { %v1764_v49 = vadd.f32 %v1763_v2, %v1762_v28  ;;  %v1772_v50 = vrot.slane %v1771_v45, 4 }
 0x889   :  { %v1773_v54 = vadd.f32 %v1772_v50, %v1771_v45  ;;  %v1765_v15 = vrot.slane %v1764_v49, 2 }
 0x88b   :  { %v1774_v16 = vrot.slane %v1773_v54, 2  ;;  %v1766_v11 = vadd.f32 %v1765_v15, %v1764_v49 }
 0x88d   :  { %v1775_v36 = vadd.f32 %v1774_v16, %v1773_v54  ;;  %v1767_v38 = vrot.slane %v1766_v11, 1 }
 0x88f   :  { %v1768_v44 = vadd.f32 %v1767_v38, %v1766_v11  ;;  %v1776_v51 = vrot.slane %v1775_v36, 1 }
 0x891   :  { %v1769_v55 = vadd.f32 %v1768_v44, %v3442_v30  ;;  %v1777_v56 = vadd.f32 %v1776_v51, %v1775_v36  ;;  %v2277_v30 = vld [vmem:[%s3477_s4] ss:$0 sm:$0xff] }
 0x893   :  { %v1778_v60 = vadd.f32 %v1777_v56, %v3445_v35  ;;  %v1780_v61 = vmul.f32 0.0625, %v1769_v55 }
 0x895   :  { %v1781_v52 = vmul.f32 0.0625, %v1778_v60  ;;  %v1782_v53 = vmul.f32 %v1780_v61, %v1780_v61  ;;  %v1785_v62 = vsub.f32 %v1761_v39, %v1780_v61 }
 0x897   :  { %v1783_v1 = vsub.f32 %v1781_v52, %v1782_v53 }
 0x899   :  { %v1784_v3 = vmax.f32 %v1783_v1, 0.0 }
 0x89b   :  { %v1786_v8 = vadd.f32 1e-05, %v1784_v3 }
 0x89d   :  { %2546 = vrsqrt.f32 %v1786_v8 }
 0x8a7   :  { %v2547_v63 = vpop.eup %2546 }
 0x8a8   :  { %v1788_v4 = vmul.f32 %v2547_v63, %v1785_v62 }
 0x8aa   :  { %v1796_v5 = vmul.f32 %v2276_v19, %v1788_v4 }
 0x8ac   :  { %v1804_v35 = vadd.f32 %v2277_v30, %v1796_v5 }
 0x8ae   :  { %2329 = vmatmul.mubr.f32.vlgmr.msra.gmra.mrb[32].mxu0 %v1804_v35 }
 0x981   :  { %v1894_v9 = vpop.f32.mrb[32].mxu0 }
 0x982   :  { %v1895_v24 = vadd.f32 %v2278_v7, %v1894_v9  ;;  %v2330_v13 = vpop.f32.mrb[33].mxu0 }
 0x984   :  { %1898 = vst [vmem:[#allocation11] sm:$0xff] %v1895_v24 }
 0x985   :  { %2667 = shalt.err (!%p2664_p3)
}
 0x986   :  { %s2668_s13 = scalar_lea.hbm %s3480_s7, 128 }
 0x987   :  { %p2669_p4 = scmp.ne.s32.totalorder %s3480_s7, %s2668_s13  ;;  %p2672_p5 = scmp.lt.u32.totalorder %s2668_s13, %s3480_s7 }
 0x989   :  { %p2674_p6 = pnand %p2672_p5, %p2669_p4 }
 0x98b   :  { %2677 = shalt.err (!%p2674_p6)
}
 0x98c   :  { %1908 = dma.vmem_to_hbm [thread:$0]  %s1906_s11, 128, %s3480_s7, [#allocation5]  }
 0x98d   :  { %2684 = dma.done.wait [#allocation5], 128  }
 0x98e   :  { %2685 = vsyncadd [#allocation5], 4294967168 }
 0x98f   :  { %1912 = vsyncpa [#allocation4], 1 }
 0x990   :  { %1913 = vsyncpa [#allocation9], 1 }
 0x991   :  { %1914 = vsyncpa [#allocation5], 1 }
 0x992   :  { %1915 = vsyncpa [#allocation6], 1 }

</bundles_post_ra>
